<compile_context>
chip_gen: v7x
topology: tpu7x:2x2x1
jax: 0.10.0
libtpu: 0.0.40
codegen_flags: <defaults>
</compile_context>

<pallas_src>
import jax
import jax.numpy as jnp
from jax.experimental import pallas as pl
from jax.experimental.pallas import tpu as pltpu

# ----------------------------- model dims -----------------------------------
INPUT_SIZE = 42
HIDDEN_SIZE = 40
NUM_LAYERS = 2          # hard-wired to 2 in the kernel below
NUM_CLASSES = 7

GP = 128                # per-gate lane padding (vreg lane width)


# ----------------------------- Pallas kernel --------------------------------
def lstm_fc_kernel(x_ref,                       # (T, Bp, GP)  padded, time-major
                   wih0_ref, whh0_ref, b0_ref,  # layer-0 packed params
                   wih1_ref, whh1_ref, b1_ref,  # layer-1 packed params
                   wfc_ref, bfc_ref,            # fc packed params
                   out_ref):                    # (Bp, GP) output
    T, Bp, _ = x_ref.shape

    # Hoist weight loads / bias broadcasts out of the time loop.
    whh0 = whh0_ref[...]                                    # (GP, 4*GP)
    wih1 = wih1_ref[...]                                    # (GP, 4*GP)
    whh1 = whh1_ref[...]                                    # (GP, 4*GP)
    b1 = jnp.broadcast_to(b1_ref[...], (Bp, 4 * GP))

    # Pre-compute layer-0 input projections for ALL timesteps in one MXU call:
    #   (T*Bp, GP) @ (GP, 4*GP) + b0  -> removes one matmul/step from the loop.
    x_all = x_ref[...].reshape(T * Bp, GP)
    g0_all = (jnp.dot(x_all, wih0_ref[...], preferred_element_type=jnp.float32)
              + jnp.broadcast_to(b0_ref[...], (T * Bp, 4 * GP))
              ).reshape(T, Bp, 4 * GP)

    def apply_gates(gates, c):
        # gate layout [i|f|g|o], each gate padded to GP=128 lanes
        # -> whole-vreg slices (no cross-lane movement).
        i_g = jax.nn.sigmoid(gates[:, 0 * GP:1 * GP])
        f_g = jax.nn.sigmoid(gates[:, 1 * GP:2 * GP])
        g_g = jnp.tanh(gates[:, 2 * GP:3 * GP])
        o_g = jax.nn.sigmoid(gates[:, 3 * GP:4 * GP])
        c_new = f_g * c + i_g * g_g
        h_new = o_g * jnp.tanh(c_new)
        return h_new, c_new

    z = jnp.zeros((Bp, GP), jnp.float32)
    h0 = c0 = h1 = c1 = z
    # T is a compile-time constant -> static Python loop gives static slices
    # and full scheduler visibility; h/c state stays in vregs.
    for t in range(T):
        g0 = g0_all[t] + jnp.dot(h0, whh0, preferred_element_type=jnp.float32)
        h0, c0 = apply_gates(g0, c0)
        g1 = (jnp.dot(h0, wih1, preferred_element_type=jnp.float32)
              + jnp.dot(h1, whh1, preferred_element_type=jnp.float32)
              + b1)
        h1, c1 = apply_gates(g1, c1)

    # Linear head on the last top-layer hidden state; lane-dense (Bp, 128) store.
    out_ref[...] = (jnp.dot(h1, wfc_ref[...],
                            preferred_element_type=jnp.float32)
                    + jnp.broadcast_to(bfc_ref[...], (Bp, GP)))


# ----------------------------- param packing --------------------------------
def _pack_gate_cols(w, H):
    """w: PyTorch (4H, in_dim) weight -> (GP, 4*GP), transposed with each gate
    zero-padded to a 128-lane block and input dim zero-padded to GP rows."""
    in_dim = w.shape[1]
    out = jnp.zeros((GP, 4 * GP), jnp.float32)
    for g in range(4):
        out = out.at[:in_dim, g * GP:g * GP + H].set(w[g * H:(g + 1) * H, :].T)
    return out


def _pack_bias(bih, bhh, H):
    b = bih + bhh
    out = jnp.zeros((1, 4 * GP), jnp.float32)
    for g in range(4):
        out = out.at[0, g * GP:g * GP + H].set(b[g * H:(g + 1) * H])
    return out


def pack_params(p):
    """PyTorch-layout params -> lane-padded kernel params."""
    H, C = HIDDEN_SIZE, NUM_CLASSES
    wih0 = _pack_gate_cols(p["wih0"], H)          # (GP, 4*GP), rows [0:I)
    whh0 = _pack_gate_cols(p["whh0"], H)          # (GP, 4*GP), rows [0:H)
    b0 = _pack_bias(p["bih0"], p["bhh0"], H)
    wih1 = _pack_gate_cols(p["wih1"], H)
    whh1 = _pack_gate_cols(p["whh1"], H)
    b1 = _pack_bias(p["bih1"], p["bhh1"], H)
    wfc = jnp.zeros((GP, GP), jnp.float32).at[0:H, 0:C].set(p["wfc"].T)
    bfc = jnp.zeros((1, GP), jnp.float32).at[0, 0:C].set(p["bfc"])
    return (wih0, whh0, b0, wih1, whh1, b1, wfc, bfc)


# ----------------------------- wrapper ---------------------------------------
def rnn_forward(x, packed):
    """x: (B, T, I) float32 (batch_first).  Returns (B, NUM_CLASSES)."""
    B, T, I = x.shape
    Bp = ((B + 7) // 8) * 8                      # pad batch to 8 sublanes
    wih0, whh0, b0, wih1, whh1, b1, wfc, bfc = packed

    x_tbi = jnp.transpose(x, (1, 0, 2))          # time-major (T, B, I)
    x_pad = jnp.zeros((T, Bp, GP), jnp.float32).at[:, :B, :I].set(x_tbi)

    vmem = pl.BlockSpec(memory_space=pltpu.MemorySpace.VMEM)
    out = pl.pallas_call(
        lstm_fc_kernel,
        out_shape=jax.ShapeDtypeStruct((Bp, GP), jnp.float32),
        in_specs=[vmem] * 9,
        out_specs=vmem,
    )(x_pad, wih0, whh0, b0, wih1, whh1, b1, wfc, bfc)
    return out[:B, :NUM_CLASSES]


# ----------------------------- param init ------------------------------------
def init_params(key):
    """PyTorch-layout LSTM/Linear params, uniform(-1/sqrt(H), 1/sqrt(H))."""
    H, I, C = HIDDEN_SIZE, INPUT_SIZE, NUM_CLASSES
    bound = 1.0 / (H ** 0.5)
    ks = jax.random.split(key, 10)
    u = lambda k, shp: jax.random.uniform(k, shp, jnp.float32, -bound, bound)
    return dict(
        wih0=u(ks[0], (4 * H, I)),  whh0=u(ks[1], (4 * H, H)),
        bih0=u(ks[2], (4 * H,)),    bhh0=u(ks[3], (4 * H,)),
        wih1=u(ks[4], (4 * H, H)),  whh1=u(ks[5], (4 * H, H)),
        bih1=u(ks[6], (4 * H,)),    bhh1=u(ks[7], (4 * H,)),
        wfc=u(ks[8], (C, H)),       bfc=u(ks[9], (C,)),
    )


# ----------------------------- pure-JAX reference -----------------------------
def rnn_reference(x, p):
    B, T, I = x.shape
    H = HIDDEN_SIZE

    def cell(inp, h, c, wih, whh, bih, bhh):
        g = inp @ wih.T + bih + h @ whh.T + bhh
        i = jax.nn.sigmoid(g[:, 0 * H:1 * H])
        f = jax.nn.sigmoid(g[:, 1 * H:2 * H])
        gg = jnp.tanh(g[:, 2 * H:3 * H])
        o = jax.nn.sigmoid(g[:, 3 * H:4 * H])
        c_new = f * c + i * gg
        return o * jnp.tanh(c_new), c_new

    def step(carry, x_t):
        h0, c0, h1, c1 = carry
        h0, c0 = cell(x_t, h0, c0, p["wih0"], p["whh0"], p["bih0"], p["bhh0"])
        h1, c1 = cell(h0, h1, c1, p["wih1"], p["whh1"], p["bih1"], p["bhh1"])
        return (h0, c0, h1, c1), None

    z = jnp.zeros((B, H), jnp.float32)
    (_, _, h1, _), _ = jax.lax.scan(step, (z, z, z, z),
                                    jnp.transpose(x, (1, 0, 2)))
    return h1 @ p["wfc"].T + p["bfc"]


# ----------------------------- main -------------------------------------------
if __name__ == "__main__":
    key = jax.random.PRNGKey(0)
    k_x, k_p = jax.random.split(key)

    B, T = 4, 8  # small batch / sequence length
    x = jax.random.normal(k_x, (B, T, INPUT_SIZE), dtype=jnp.float32)
    raw_params = init_params(k_p)
    packed = pack_params(raw_params)

    out = rnn_forward(x, packed)
    out = jax.block_until_ready(out)

    ref = rnn_reference(x, raw_params)
    assert out.shape == (B, NUM_CLASSES)
    assert jnp.allclose(out, ref, atol=1e-4, rtol=1e-4), (
        f"max abs err {jnp.max(jnp.abs(out - ref))}")

    print("KERNEL_OK")
</pallas_src>

<mosaic_0001>
module attributes {stable_mosaic.version = 11 : i64} {
  func.func @lstm_fc_kernel(%arg0: memref<8x8x128xf32, #tpu.memory_space<vmem>>, %arg1: memref<128x512xf32, #tpu.memory_space<vmem>>, %arg2: memref<128x512xf32, #tpu.memory_space<vmem>>, %arg3: memref<1x512xf32, #tpu.memory_space<vmem>>, %arg4: memref<128x512xf32, #tpu.memory_space<vmem>>, %arg5: memref<128x512xf32, #tpu.memory_space<vmem>>, %arg6: memref<1x512xf32, #tpu.memory_space<vmem>>, %arg7: memref<128x128xf32, #tpu.memory_space<vmem>>, %arg8: memref<1x128xf32, #tpu.memory_space<vmem>>, %arg9: memref<8x128xf32, #tpu.memory_space<vmem>>) attributes {dimension_semantics = [], scalar_prefetch = 0 : i64, scratch_operands = 0 : i64, tpu.core_type = #tpu.core_type<tc>} {
    %c0 = arith.constant 0 : index
    %c0_0 = arith.constant 0 : index
    %0 = vector.load %arg2[%c0, %c0_0] : memref<128x512xf32, #tpu.memory_space<vmem>>, vector<128x512xf32>
    %c0_1 = arith.constant 0 : index
    %c0_2 = arith.constant 0 : index
    %1 = vector.load %arg4[%c0_1, %c0_2] : memref<128x512xf32, #tpu.memory_space<vmem>>, vector<128x512xf32>
    %c0_3 = arith.constant 0 : index
    %c0_4 = arith.constant 0 : index
    %2 = vector.load %arg5[%c0_3, %c0_4] : memref<128x512xf32, #tpu.memory_space<vmem>>, vector<128x512xf32>
    %c0_5 = arith.constant 0 : index
    %c0_6 = arith.constant 0 : index
    %3 = vector.load %arg6[%c0_5, %c0_6] : memref<1x512xf32, #tpu.memory_space<vmem>>, vector<1x512xf32>
    %4 = vector.shape_cast %3 : vector<1x512xf32> to vector<1x512xf32>
    %5 = vector.broadcast %4 : vector<1x512xf32> to vector<8x512xf32>
    %c0_7 = arith.constant 0 : index
    %c0_8 = arith.constant 0 : index
    %c0_9 = arith.constant 0 : index
    %6 = vector.load %arg0[%c0_7, %c0_8, %c0_9] : memref<8x8x128xf32, #tpu.memory_space<vmem>>, vector<8x8x128xf32>
    %7 = vector.shape_cast %6 : vector<8x8x128xf32> to vector<64x128xf32>
    %c0_10 = arith.constant 0 : index
    %c0_11 = arith.constant 0 : index
    %8 = vector.load %arg1[%c0_10, %c0_11] : memref<128x512xf32, #tpu.memory_space<vmem>>, vector<128x512xf32>
    %cst = arith.constant dense<0.000000e+00> : vector<64x512xf32>
    %9 = tpu.matmul %7, %8, %cst {dimension_numbers = #tpu.dot_dimension_numbers<[1], [0], [0], [1], [0, 0, 1, 1], [], []>} : vector<64x128xf32>, vector<128x512xf32>, vector<64x512xf32> -> vector<64x512xf32>
    %c0_12 = arith.constant 0 : index
    %c0_13 = arith.constant 0 : index
    %10 = vector.load %arg3[%c0_12, %c0_13] : memref<1x512xf32, #tpu.memory_space<vmem>>, vector<1x512xf32>
    %11 = vector.shape_cast %10 : vector<1x512xf32> to vector<1x512xf32>
    %12 = vector.broadcast %11 : vector<1x512xf32> to vector<64x512xf32>
    %13 = arith.addf %9, %12 : vector<64x512xf32>
    %14 = vector.shape_cast %13 : vector<64x512xf32> to vector<8x8x512xf32>
    %cst_14 = arith.constant 0.000000e+00 : f32
    %15 = vector.broadcast %cst_14 : f32 to vector<8x128xf32>
    %16 = vector.extract_strided_slice %14 {offsets = [0, 0, 0], sizes = [1, 8, 512], strides = [1, 1, 1]} : vector<8x8x512xf32> to vector<1x8x512xf32>
    %17 = vector.shape_cast %16 : vector<1x8x512xf32> to vector<8x512xf32>
    %cst_15 = arith.constant dense<0.000000e+00> : vector<8x512xf32>
    %18 = tpu.matmul %15, %0, %cst_15 {dimension_numbers = #tpu.dot_dimension_numbers<[1], [0], [0], [1], [0, 0, 1, 1], [], []>} : vector<8x128xf32>, vector<128x512xf32>, vector<8x512xf32> -> vector<8x512xf32>
    %19 = arith.addf %17, %18 : vector<8x512xf32>
    %20 = vector.extract_strided_slice %19 {offsets = [0, 0], sizes = [8, 128], strides = [1, 1]} : vector<8x512xf32> to vector<8x128xf32>
    %21 = arith.negf %20 : vector<8x128xf32>
    %22 = math.exp %21 : vector<8x128xf32>
    %cst_16 = arith.constant 1.000000e+00 : f32
    %23 = vector.broadcast %cst_16 : f32 to vector<8x128xf32>
    %24 = arith.addf %23, %22 : vector<8x128xf32>
    %25 = arith.divf %23, %24 : vector<8x128xf32>
    %26 = vector.extract_strided_slice %19 {offsets = [0, 128], sizes = [8, 128], strides = [1, 1]} : vector<8x512xf32> to vector<8x128xf32>
    %27 = arith.negf %26 : vector<8x128xf32>
    %28 = math.exp %27 : vector<8x128xf32>
    %cst_17 = arith.constant 1.000000e+00 : f32
    %29 = vector.broadcast %cst_17 : f32 to vector<8x128xf32>
    %30 = arith.addf %29, %28 : vector<8x128xf32>
    %31 = arith.divf %29, %30 : vector<8x128xf32>
    %32 = vector.extract_strided_slice %19 {offsets = [0, 256], sizes = [8, 128], strides = [1, 1]} : vector<8x512xf32> to vector<8x128xf32>
    %33 = math.tanh %32 : vector<8x128xf32>
    %34 = vector.extract_strided_slice %19 {offsets = [0, 384], sizes = [8, 128], strides = [1, 1]} : vector<8x512xf32> to vector<8x128xf32>
    %35 = arith.negf %34 : vector<8x128xf32>
    %36 = math.exp %35 : vector<8x128xf32>
    %cst_18 = arith.constant 1.000000e+00 : f32
    %37 = vector.broadcast %cst_18 : f32 to vector<8x128xf32>
    %38 = arith.addf %37, %36 : vector<8x128xf32>
    %39 = arith.divf %37, %38 : vector<8x128xf32>
    %40 = arith.mulf %31, %15 : vector<8x128xf32>
    %41 = arith.mulf %25, %33 : vector<8x128xf32>
    %42 = arith.addf %40, %41 : vector<8x128xf32>
    %43 = math.tanh %42 : vector<8x128xf32>
    %44 = arith.mulf %39, %43 : vector<8x128xf32>
    %cst_19 = arith.constant dense<0.000000e+00> : vector<8x512xf32>
    %45 = tpu.matmul %44, %1, %cst_19 {dimension_numbers = #tpu.dot_dimension_numbers<[1], [0], [0], [1], [0, 0, 1, 1], [], []>} : vector<8x128xf32>, vector<128x512xf32>, vector<8x512xf32> -> vector<8x512xf32>
    %cst_20 = arith.constant dense<0.000000e+00> : vector<8x512xf32>
    %46 = tpu.matmul %15, %2, %cst_20 {dimension_numbers = #tpu.dot_dimension_numbers<[1], [0], [0], [1], [0, 0, 1, 1], [], []>} : vector<8x128xf32>, vector<128x512xf32>, vector<8x512xf32> -> vector<8x512xf32>
    %47 = arith.addf %45, %46 : vector<8x512xf32>
    %48 = arith.addf %47, %5 : vector<8x512xf32>
    %49 = vector.extract_strided_slice %48 {offsets = [0, 0], sizes = [8, 128], strides = [1, 1]} : vector<8x512xf32> to vector<8x128xf32>
    %50 = arith.negf %49 : vector<8x128xf32>
    %51 = math.exp %50 : vector<8x128xf32>
    %cst_21 = arith.constant 1.000000e+00 : f32
    %52 = vector.broadcast %cst_21 : f32 to vector<8x128xf32>
    %53 = arith.addf %52, %51 : vector<8x128xf32>
    %54 = arith.divf %52, %53 : vector<8x128xf32>
    %55 = vector.extract_strided_slice %48 {offsets = [0, 128], sizes = [8, 128], strides = [1, 1]} : vector<8x512xf32> to vector<8x128xf32>
    %56 = arith.negf %55 : vector<8x128xf32>
    %57 = math.exp %56 : vector<8x128xf32>
    %cst_22 = arith.constant 1.000000e+00 : f32
    %58 = vector.broadcast %cst_22 : f32 to vector<8x128xf32>
    %59 = arith.addf %58, %57 : vector<8x128xf32>
    %60 = arith.divf %58, %59 : vector<8x128xf32>
    %61 = vector.extract_strided_slice %48 {offsets = [0, 256], sizes = [8, 128], strides = [1, 1]} : vector<8x512xf32> to vector<8x128xf32>
    %62 = math.tanh %61 : vector<8x128xf32>
    %63 = vector.extract_strided_slice %48 {offsets = [0, 384], sizes = [8, 128], strides = [1, 1]} : vector<8x512xf32> to vector<8x128xf32>
    %64 = arith.negf %63 : vector<8x128xf32>
    %65 = math.exp %64 : vector<8x128xf32>
    %cst_23 = arith.constant 1.000000e+00 : f32
    %66 = vector.broadcast %cst_23 : f32 to vector<8x128xf32>
    %67 = arith.addf %66, %65 : vector<8x128xf32>
    %68 = arith.divf %66, %67 : vector<8x128xf32>
    %69 = arith.mulf %60, %15 : vector<8x128xf32>
    %70 = arith.mulf %54, %62 : vector<8x128xf32>
    %71 = arith.addf %69, %70 : vector<8x128xf32>
    %72 = math.tanh %71 : vector<8x128xf32>
    %73 = arith.mulf %68, %72 : vector<8x128xf32>
    %74 = vector.extract_strided_slice %14 {offsets = [1, 0, 0], sizes = [1, 8, 512], strides = [1, 1, 1]} : vector<8x8x512xf32> to vector<1x8x512xf32>
    %75 = vector.shape_cast %74 : vector<1x8x512xf32> to vector<8x512xf32>
    %cst_24 = arith.constant dense<0.000000e+00> : vector<8x512xf32>
    %76 = tpu.matmul %44, %0, %cst_24 {dimension_numbers = #tpu.dot_dimension_numbers<[1], [0], [0], [1], [0, 0, 1, 1], [], []>} : vector<8x128xf32>, vector<128x512xf32>, vector<8x512xf32> -> vector<8x512xf32>
    %77 = arith.addf %75, %76 : vector<8x512xf32>
    %78 = vector.extract_strided_slice %77 {offsets = [0, 0], sizes = [8, 128], strides = [1, 1]} : vector<8x512xf32> to vector<8x128xf32>
    %79 = arith.negf %78 : vector<8x128xf32>
    %80 = math.exp %79 : vector<8x128xf32>
    %cst_25 = arith.constant 1.000000e+00 : f32
    %81 = vector.broadcast %cst_25 : f32 to vector<8x128xf32>
    %82 = arith.addf %81, %80 : vector<8x128xf32>
    %83 = arith.divf %81, %82 : vector<8x128xf32>
    %84 = vector.extract_strided_slice %77 {offsets = [0, 128], sizes = [8, 128], strides = [1, 1]} : vector<8x512xf32> to vector<8x128xf32>
    %85 = arith.negf %84 : vector<8x128xf32>
    %86 = math.exp %85 : vector<8x128xf32>
    %cst_26 = arith.constant 1.000000e+00 : f32
    %87 = vector.broadcast %cst_26 : f32 to vector<8x128xf32>
    %88 = arith.addf %87, %86 : vector<8x128xf32>
    %89 = arith.divf %87, %88 : vector<8x128xf32>
    %90 = vector.extract_strided_slice %77 {offsets = [0, 256], sizes = [8, 128], strides = [1, 1]} : vector<8x512xf32> to vector<8x128xf32>
    %91 = math.tanh %90 : vector<8x128xf32>
    %92 = vector.extract_strided_slice %77 {offsets = [0, 384], sizes = [8, 128], strides = [1, 1]} : vector<8x512xf32> to vector<8x128xf32>
    %93 = arith.negf %92 : vector<8x128xf32>
    %94 = math.exp %93 : vector<8x128xf32>
    %cst_27 = arith.constant 1.000000e+00 : f32
    %95 = vector.broadcast %cst_27 : f32 to vector<8x128xf32>
    %96 = arith.addf %95, %94 : vector<8x128xf32>
    %97 = arith.divf %95, %96 : vector<8x128xf32>
    %98 = arith.mulf %89, %42 : vector<8x128xf32>
    %99 = arith.mulf %83, %91 : vector<8x128xf32>
    %100 = arith.addf %98, %99 : vector<8x128xf32>
    %101 = math.tanh %100 : vector<8x128xf32>
    %102 = arith.mulf %97, %101 : vector<8x128xf32>
    %cst_28 = arith.constant dense<0.000000e+00> : vector<8x512xf32>
    %103 = tpu.matmul %102, %1, %cst_28 {dimension_numbers = #tpu.dot_dimension_numbers<[1], [0], [0], [1], [0, 0, 1, 1], [], []>} : vector<8x128xf32>, vector<128x512xf32>, vector<8x512xf32> -> vector<8x512xf32>
    %cst_29 = arith.constant dense<0.000000e+00> : vector<8x512xf32>
    %104 = tpu.matmul %73, %2, %cst_29 {dimension_numbers = #tpu.dot_dimension_numbers<[1], [0], [0], [1], [0, 0, 1, 1], [], []>} : vector<8x128xf32>, vector<128x512xf32>, vector<8x512xf32> -> vector<8x512xf32>
    %105 = arith.addf %103, %104 : vector<8x512xf32>
    %106 = arith.addf %105, %5 : vector<8x512xf32>
    %107 = vector.extract_strided_slice %106 {offsets = [0, 0], sizes = [8, 128], strides = [1, 1]} : vector<8x512xf32> to vector<8x128xf32>
    %108 = arith.negf %107 : vector<8x128xf32>
    %109 = math.exp %108 : vector<8x128xf32>
    %cst_30 = arith.constant 1.000000e+00 : f32
    %110 = vector.broadcast %cst_30 : f32 to vector<8x128xf32>
    %111 = arith.addf %110, %109 : vector<8x128xf32>
    %112 = arith.divf %110, %111 : vector<8x128xf32>
    %113 = vector.extract_strided_slice %106 {offsets = [0, 128], sizes = [8, 128], strides = [1, 1]} : vector<8x512xf32> to vector<8x128xf32>
    %114 = arith.negf %113 : vector<8x128xf32>
    %115 = math.exp %114 : vector<8x128xf32>
    %cst_31 = arith.constant 1.000000e+00 : f32
    %116 = vector.broadcast %cst_31 : f32 to vector<8x128xf32>
    %117 = arith.addf %116, %115 : vector<8x128xf32>
    %118 = arith.divf %116, %117 : vector<8x128xf32>
    %119 = vector.extract_strided_slice %106 {offsets = [0, 256], sizes = [8, 128], strides = [1, 1]} : vector<8x512xf32> to vector<8x128xf32>
    %120 = math.tanh %119 : vector<8x128xf32>
    %121 = vector.extract_strided_slice %106 {offsets = [0, 384], sizes = [8, 128], strides = [1, 1]} : vector<8x512xf32> to vector<8x128xf32>
    %122 = arith.negf %121 : vector<8x128xf32>
    %123 = math.exp %122 : vector<8x128xf32>
    %cst_32 = arith.constant 1.000000e+00 : f32
    %124 = vector.broadcast %cst_32 : f32 to vector<8x128xf32>
    %125 = arith.addf %124, %123 : vector<8x128xf32>
    %126 = arith.divf %124, %125 : vector<8x128xf32>
    %127 = arith.mulf %118, %71 : vector<8x128xf32>
    %128 = arith.mulf %112, %120 : vector<8x128xf32>
    %129 = arith.addf %127, %128 : vector<8x128xf32>
    %130 = math.tanh %129 : vector<8x128xf32>
    %131 = arith.mulf %126, %130 : vector<8x128xf32>
    %132 = vector.extract_strided_slice %14 {offsets = [2, 0, 0], sizes = [1, 8, 512], strides = [1, 1, 1]} : vector<8x8x512xf32> to vector<1x8x512xf32>
    %133 = vector.shape_cast %132 : vector<1x8x512xf32> to vector<8x512xf32>
    %cst_33 = arith.constant dense<0.000000e+00> : vector<8x512xf32>
    %134 = tpu.matmul %102, %0, %cst_33 {dimension_numbers = #tpu.dot_dimension_numbers<[1], [0], [0], [1], [0, 0, 1, 1], [], []>} : vector<8x128xf32>, vector<128x512xf32>, vector<8x512xf32> -> vector<8x512xf32>
    %135 = arith.addf %133, %134 : vector<8x512xf32>
    %136 = vector.extract_strided_slice %135 {offsets = [0, 0], sizes = [8, 128], strides = [1, 1]} : vector<8x512xf32> to vector<8x128xf32>
    %137 = arith.negf %136 : vector<8x128xf32>
    %138 = math.exp %137 : vector<8x128xf32>
    %cst_34 = arith.constant 1.000000e+00 : f32
    %139 = vector.broadcast %cst_34 : f32 to vector<8x128xf32>
    %140 = arith.addf %139, %138 : vector<8x128xf32>
    %141 = arith.divf %139, %140 : vector<8x128xf32>
    %142 = vector.extract_strided_slice %135 {offsets = [0, 128], sizes = [8, 128], strides = [1, 1]} : vector<8x512xf32> to vector<8x128xf32>
    %143 = arith.negf %142 : vector<8x128xf32>
    %144 = math.exp %143 : vector<8x128xf32>
    %cst_35 = arith.constant 1.000000e+00 : f32
    %145 = vector.broadcast %cst_35 : f32 to vector<8x128xf32>
    %146 = arith.addf %145, %144 : vector<8x128xf32>
    %147 = arith.divf %145, %146 : vector<8x128xf32>
    %148 = vector.extract_strided_slice %135 {offsets = [0, 256], sizes = [8, 128], strides = [1, 1]} : vector<8x512xf32> to vector<8x128xf32>
    %149 = math.tanh %148 : vector<8x128xf32>
    %150 = vector.extract_strided_slice %135 {offsets = [0, 384], sizes = [8, 128], strides = [1, 1]} : vector<8x512xf32> to vector<8x128xf32>
    %151 = arith.negf %150 : vector<8x128xf32>
    %152 = math.exp %151 : vector<8x128xf32>
    %cst_36 = arith.constant 1.000000e+00 : f32
    %153 = vector.broadcast %cst_36 : f32 to vector<8x128xf32>
    %154 = arith.addf %153, %152 : vector<8x128xf32>
    %155 = arith.divf %153, %154 : vector<8x128xf32>
    %156 = arith.mulf %147, %100 : vector<8x128xf32>
    %157 = arith.mulf %141, %149 : vector<8x128xf32>
    %158 = arith.addf %156, %157 : vector<8x128xf32>
    %159 = math.tanh %158 : vector<8x128xf32>
    %160 = arith.mulf %155, %159 : vector<8x128xf32>
    %cst_37 = arith.constant dense<0.000000e+00> : vector<8x512xf32>
    %161 = tpu.matmul %160, %1, %cst_37 {dimension_numbers = #tpu.dot_dimension_numbers<[1], [0], [0], [1], [0, 0, 1, 1], [], []>} : vector<8x128xf32>, vector<128x512xf32>, vector<8x512xf32> -> vector<8x512xf32>
    %cst_38 = arith.constant dense<0.000000e+00> : vector<8x512xf32>
    %162 = tpu.matmul %131, %2, %cst_38 {dimension_numbers = #tpu.dot_dimension_numbers<[1], [0], [0], [1], [0, 0, 1, 1], [], []>} : vector<8x128xf32>, vector<128x512xf32>, vector<8x512xf32> -> vector<8x512xf32>
    %163 = arith.addf %161, %162 : vector<8x512xf32>
    %164 = arith.addf %163, %5 : vector<8x512xf32>
    %165 = vector.extract_strided_slice %164 {offsets = [0, 0], sizes = [8, 128], strides = [1, 1]} : vector<8x512xf32> to vector<8x128xf32>
    %166 = arith.negf %165 : vector<8x128xf32>
    %167 = math.exp %166 : vector<8x128xf32>
    %cst_39 = arith.constant 1.000000e+00 : f32
    %168 = vector.broadcast %cst_39 : f32 to vector<8x128xf32>
    %169 = arith.addf %168, %167 : vector<8x128xf32>
    %170 = arith.divf %168, %169 : vector<8x128xf32>
    %171 = vector.extract_strided_slice %164 {offsets = [0, 128], sizes = [8, 128], strides = [1, 1]} : vector<8x512xf32> to vector<8x128xf32>
    %172 = arith.negf %171 : vector<8x128xf32>
    %173 = math.exp %172 : vector<8x128xf32>
    %cst_40 = arith.constant 1.000000e+00 : f32
    %174 = vector.broadcast %cst_40 : f32 to vector<8x128xf32>
    %175 = arith.addf %174, %173 : vector<8x128xf32>
    %176 = arith.divf %174, %175 : vector<8x128xf32>
    %177 = vector.extract_strided_slice %164 {offsets = [0, 256], sizes = [8, 128], strides = [1, 1]} : vector<8x512xf32> to vector<8x128xf32>
    %178 = math.tanh %177 : vector<8x128xf32>
    %179 = vector.extract_strided_slice %164 {offsets = [0, 384], sizes = [8, 128], strides = [1, 1]} : vector<8x512xf32> to vector<8x128xf32>
    %180 = arith.negf %179 : vector<8x128xf32>
    %181 = math.exp %180 : vector<8x128xf32>
    %cst_41 = arith.constant 1.000000e+00 : f32
    %182 = vector.broadcast %cst_41 : f32 to vector<8x128xf32>
    %183 = arith.addf %182, %181 : vector<8x128xf32>
    %184 = arith.divf %182, %183 : vector<8x128xf32>
    %185 = arith.mulf %176, %129 : vector<8x128xf32>
    %186 = arith.mulf %170, %178 : vector<8x128xf32>
    %187 = arith.addf %185, %186 : vector<8x128xf32>
    %188 = math.tanh %187 : vector<8x128xf32>
    %189 = arith.mulf %184, %188 : vector<8x128xf32>
    %190 = vector.extract_strided_slice %14 {offsets = [3, 0, 0], sizes = [1, 8, 512], strides = [1, 1, 1]} : vector<8x8x512xf32> to vector<1x8x512xf32>
    %191 = vector.shape_cast %190 : vector<1x8x512xf32> to vector<8x512xf32>
    %cst_42 = arith.constant dense<0.000000e+00> : vector<8x512xf32>
    %192 = tpu.matmul %160, %0, %cst_42 {dimension_numbers = #tpu.dot_dimension_numbers<[1], [0], [0], [1], [0, 0, 1, 1], [], []>} : vector<8x128xf32>, vector<128x512xf32>, vector<8x512xf32> -> vector<8x512xf32>
    %193 = arith.addf %191, %192 : vector<8x512xf32>
    %194 = vector.extract_strided_slice %193 {offsets = [0, 0], sizes = [8, 128], strides = [1, 1]} : vector<8x512xf32> to vector<8x128xf32>
    %195 = arith.negf %194 : vector<8x128xf32>
    %196 = math.exp %195 : vector<8x128xf32>
    %cst_43 = arith.constant 1.000000e+00 : f32
    %197 = vector.broadcast %cst_43 : f32 to vector<8x128xf32>
    %198 = arith.addf %197, %196 : vector<8x128xf32>
    %199 = arith.divf %197, %198 : vector<8x128xf32>
    %200 = vector.extract_strided_slice %193 {offsets = [0, 128], sizes = [8, 128], strides = [1, 1]} : vector<8x512xf32> to vector<8x128xf32>
    %201 = arith.negf %200 : vector<8x128xf32>
    %202 = math.exp %201 : vector<8x128xf32>
    %cst_44 = arith.constant 1.000000e+00 : f32
    %203 = vector.broadcast %cst_44 : f32 to vector<8x128xf32>
    %204 = arith.addf %203, %202 : vector<8x128xf32>
    %205 = arith.divf %203, %204 : vector<8x128xf32>
    %206 = vector.extract_strided_slice %193 {offsets = [0, 256], sizes = [8, 128], strides = [1, 1]} : vector<8x512xf32> to vector<8x128xf32>
    %207 = math.tanh %206 : vector<8x128xf32>
    %208 = vector.extract_strided_slice %193 {offsets = [0, 384], sizes = [8, 128], strides = [1, 1]} : vector<8x512xf32> to vector<8x128xf32>
    %209 = arith.negf %208 : vector<8x128xf32>
    %210 = math.exp %209 : vector<8x128xf32>
    %cst_45 = arith.constant 1.000000e+00 : f32
    %211 = vector.broadcast %cst_45 : f32 to vector<8x128xf32>
    %212 = arith.addf %211, %210 : vector<8x128xf32>
    %213 = arith.divf %211, %212 : vector<8x128xf32>
    %214 = arith.mulf %205, %158 : vector<8x128xf32>
    %215 = arith.mulf %199, %207 : vector<8x128xf32>
    %216 = arith.addf %214, %215 : vector<8x128xf32>
    %217 = math.tanh %216 : vector<8x128xf32>
    %218 = arith.mulf %213, %217 : vector<8x128xf32>
    %cst_46 = arith.constant dense<0.000000e+00> : vector<8x512xf32>
    %219 = tpu.matmul %218, %1, %cst_46 {dimension_numbers = #tpu.dot_dimension_numbers<[1], [0], [0], [1], [0, 0, 1, 1], [], []>} : vector<8x128xf32>, vector<128x512xf32>, vector<8x512xf32> -> vector<8x512xf32>
    %cst_47 = arith.constant dense<0.000000e+00> : vector<8x512xf32>
    %220 = tpu.matmul %189, %2, %cst_47 {dimension_numbers = #tpu.dot_dimension_numbers<[1], [0], [0], [1], [0, 0, 1, 1], [], []>} : vector<8x128xf32>, vector<128x512xf32>, vector<8x512xf32> -> vector<8x512xf32>
    %221 = arith.addf %219, %220 : vector<8x512xf32>
    %222 = arith.addf %221, %5 : vector<8x512xf32>
    %223 = vector.extract_strided_slice %222 {offsets = [0, 0], sizes = [8, 128], strides = [1, 1]} : vector<8x512xf32> to vector<8x128xf32>
    %224 = arith.negf %223 : vector<8x128xf32>
    %225 = math.exp %224 : vector<8x128xf32>
    %cst_48 = arith.constant 1.000000e+00 : f32
    %226 = vector.broadcast %cst_48 : f32 to vector<8x128xf32>
    %227 = arith.addf %226, %225 : vector<8x128xf32>
    %228 = arith.divf %226, %227 : vector<8x128xf32>
    %229 = vector.extract_strided_slice %222 {offsets = [0, 128], sizes = [8, 128], strides = [1, 1]} : vector<8x512xf32> to vector<8x128xf32>
    %230 = arith.negf %229 : vector<8x128xf32>
    %231 = math.exp %230 : vector<8x128xf32>
    %cst_49 = arith.constant 1.000000e+00 : f32
    %232 = vector.broadcast %cst_49 : f32 to vector<8x128xf32>
    %233 = arith.addf %232, %231 : vector<8x128xf32>
    %234 = arith.divf %232, %233 : vector<8x128xf32>
    %235 = vector.extract_strided_slice %222 {offsets = [0, 256], sizes = [8, 128], strides = [1, 1]} : vector<8x512xf32> to vector<8x128xf32>
    %236 = math.tanh %235 : vector<8x128xf32>
    %237 = vector.extract_strided_slice %222 {offsets = [0, 384], sizes = [8, 128], strides = [1, 1]} : vector<8x512xf32> to vector<8x128xf32>
    %238 = arith.negf %237 : vector<8x128xf32>
    %239 = math.exp %238 : vector<8x128xf32>
    %cst_50 = arith.constant 1.000000e+00 : f32
    %240 = vector.broadcast %cst_50 : f32 to vector<8x128xf32>
    %241 = arith.addf %240, %239 : vector<8x128xf32>
    %242 = arith.divf %240, %241 : vector<8x128xf32>
    %243 = arith.mulf %234, %187 : vector<8x128xf32>
    %244 = arith.mulf %228, %236 : vector<8x128xf32>
    %245 = arith.addf %243, %244 : vector<8x128xf32>
    %246 = math.tanh %245 : vector<8x128xf32>
    %247 = arith.mulf %242, %246 : vector<8x128xf32>
    %248 = vector.extract_strided_slice %14 {offsets = [4, 0, 0], sizes = [1, 8, 512], strides = [1, 1, 1]} : vector<8x8x512xf32> to vector<1x8x512xf32>
    %249 = vector.shape_cast %248 : vector<1x8x512xf32> to vector<8x512xf32>
    %cst_51 = arith.constant dense<0.000000e+00> : vector<8x512xf32>
    %250 = tpu.matmul %218, %0, %cst_51 {dimension_numbers = #tpu.dot_dimension_numbers<[1], [0], [0], [1], [0, 0, 1, 1], [], []>} : vector<8x128xf32>, vector<128x512xf32>, vector<8x512xf32> -> vector<8x512xf32>
    %251 = arith.addf %249, %250 : vector<8x512xf32>
    %252 = vector.extract_strided_slice %251 {offsets = [0, 0], sizes = [8, 128], strides = [1, 1]} : vector<8x512xf32> to vector<8x128xf32>
    %253 = arith.negf %252 : vector<8x128xf32>
    %254 = math.exp %253 : vector<8x128xf32>
    %cst_52 = arith.constant 1.000000e+00 : f32
    %255 = vector.broadcast %cst_52 : f32 to vector<8x128xf32>
    %256 = arith.addf %255, %254 : vector<8x128xf32>
    %257 = arith.divf %255, %256 : vector<8x128xf32>
    %258 = vector.extract_strided_slice %251 {offsets = [0, 128], sizes = [8, 128], strides = [1, 1]} : vector<8x512xf32> to vector<8x128xf32>
    %259 = arith.negf %258 : vector<8x128xf32>
    %260 = math.exp %259 : vector<8x128xf32>
    %cst_53 = arith.constant 1.000000e+00 : f32
    %261 = vector.broadcast %cst_53 : f32 to vector<8x128xf32>
    %262 = arith.addf %261, %260 : vector<8x128xf32>
    %263 = arith.divf %261, %262 : vector<8x128xf32>
    %264 = vector.extract_strided_slice %251 {offsets = [0, 256], sizes = [8, 128], strides = [1, 1]} : vector<8x512xf32> to vector<8x128xf32>
    %265 = math.tanh %264 : vector<8x128xf32>
    %266 = vector.extract_strided_slice %251 {offsets = [0, 384], sizes = [8, 128], strides = [1, 1]} : vector<8x512xf32> to vector<8x128xf32>
    %267 = arith.negf %266 : vector<8x128xf32>
    %268 = math.exp %267 : vector<8x128xf32>
    %cst_54 = arith.constant 1.000000e+00 : f32
    %269 = vector.broadcast %cst_54 : f32 to vector<8x128xf32>
    %270 = arith.addf %269, %268 : vector<8x128xf32>
    %271 = arith.divf %269, %270 : vector<8x128xf32>
    %272 = arith.mulf %263, %216 : vector<8x128xf32>
    %273 = arith.mulf %257, %265 : vector<8x128xf32>
    %274 = arith.addf %272, %273 : vector<8x128xf32>
    %275 = math.tanh %274 : vector<8x128xf32>
    %276 = arith.mulf %271, %275 : vector<8x128xf32>
    %cst_55 = arith.constant dense<0.000000e+00> : vector<8x512xf32>
    %277 = tpu.matmul %276, %1, %cst_55 {dimension_numbers = #tpu.dot_dimension_numbers<[1], [0], [0], [1], [0, 0, 1, 1], [], []>} : vector<8x128xf32>, vector<128x512xf32>, vector<8x512xf32> -> vector<8x512xf32>
    %cst_56 = arith.constant dense<0.000000e+00> : vector<8x512xf32>
    %278 = tpu.matmul %247, %2, %cst_56 {dimension_numbers = #tpu.dot_dimension_numbers<[1], [0], [0], [1], [0, 0, 1, 1], [], []>} : vector<8x128xf32>, vector<128x512xf32>, vector<8x512xf32> -> vector<8x512xf32>
    %279 = arith.addf %277, %278 : vector<8x512xf32>
    %280 = arith.addf %279, %5 : vector<8x512xf32>
    %281 = vector.extract_strided_slice %280 {offsets = [0, 0], sizes = [8, 128], strides = [1, 1]} : vector<8x512xf32> to vector<8x128xf32>
    %282 = arith.negf %281 : vector<8x128xf32>
    %283 = math.exp %282 : vector<8x128xf32>
    %cst_57 = arith.constant 1.000000e+00 : f32
    %284 = vector.broadcast %cst_57 : f32 to vector<8x128xf32>
    %285 = arith.addf %284, %283 : vector<8x128xf32>
    %286 = arith.divf %284, %285 : vector<8x128xf32>
    %287 = vector.extract_strided_slice %280 {offsets = [0, 128], sizes = [8, 128], strides = [1, 1]} : vector<8x512xf32> to vector<8x128xf32>
    %288 = arith.negf %287 : vector<8x128xf32>
    %289 = math.exp %288 : vector<8x128xf32>
    %cst_58 = arith.constant 1.000000e+00 : f32
    %290 = vector.broadcast %cst_58 : f32 to vector<8x128xf32>
    %291 = arith.addf %290, %289 : vector<8x128xf32>
    %292 = arith.divf %290, %291 : vector<8x128xf32>
    %293 = vector.extract_strided_slice %280 {offsets = [0, 256], sizes = [8, 128], strides = [1, 1]} : vector<8x512xf32> to vector<8x128xf32>
    %294 = math.tanh %293 : vector<8x128xf32>
    %295 = vector.extract_strided_slice %280 {offsets = [0, 384], sizes = [8, 128], strides = [1, 1]} : vector<8x512xf32> to vector<8x128xf32>
    %296 = arith.negf %295 : vector<8x128xf32>
    %297 = math.exp %296 : vector<8x128xf32>
    %cst_59 = arith.constant 1.000000e+00 : f32
    %298 = vector.broadcast %cst_59 : f32 to vector<8x128xf32>
    %299 = arith.addf %298, %297 : vector<8x128xf32>
    %300 = arith.divf %298, %299 : vector<8x128xf32>
    %301 = arith.mulf %292, %245 : vector<8x128xf32>
    %302 = arith.mulf %286, %294 : vector<8x128xf32>
    %303 = arith.addf %301, %302 : vector<8x128xf32>
    %304 = math.tanh %303 : vector<8x128xf32>
    %305 = arith.mulf %300, %304 : vector<8x128xf32>
    %306 = vector.extract_strided_slice %14 {offsets = [5, 0, 0], sizes = [1, 8, 512], strides = [1, 1, 1]} : vector<8x8x512xf32> to vector<1x8x512xf32>
    %307 = vector.shape_cast %306 : vector<1x8x512xf32> to vector<8x512xf32>
    %cst_60 = arith.constant dense<0.000000e+00> : vector<8x512xf32>
    %308 = tpu.matmul %276, %0, %cst_60 {dimension_numbers = #tpu.dot_dimension_numbers<[1], [0], [0], [1], [0, 0, 1, 1], [], []>} : vector<8x128xf32>, vector<128x512xf32>, vector<8x512xf32> -> vector<8x512xf32>
    %309 = arith.addf %307, %308 : vector<8x512xf32>
    %310 = vector.extract_strided_slice %309 {offsets = [0, 0], sizes = [8, 128], strides = [1, 1]} : vector<8x512xf32> to vector<8x128xf32>
    %311 = arith.negf %310 : vector<8x128xf32>
    %312 = math.exp %311 : vector<8x128xf32>
    %cst_61 = arith.constant 1.000000e+00 : f32
    %313 = vector.broadcast %cst_61 : f32 to vector<8x128xf32>
    %314 = arith.addf %313, %312 : vector<8x128xf32>
    %315 = arith.divf %313, %314 : vector<8x128xf32>
    %316 = vector.extract_strided_slice %309 {offsets = [0, 128], sizes = [8, 128], strides = [1, 1]} : vector<8x512xf32> to vector<8x128xf32>
    %317 = arith.negf %316 : vector<8x128xf32>
    %318 = math.exp %317 : vector<8x128xf32>
    %cst_62 = arith.constant 1.000000e+00 : f32
    %319 = vector.broadcast %cst_62 : f32 to vector<8x128xf32>
    %320 = arith.addf %319, %318 : vector<8x128xf32>
    %321 = arith.divf %319, %320 : vector<8x128xf32>
    %322 = vector.extract_strided_slice %309 {offsets = [0, 256], sizes = [8, 128], strides = [1, 1]} : vector<8x512xf32> to vector<8x128xf32>
    %323 = math.tanh %322 : vector<8x128xf32>
    %324 = vector.extract_strided_slice %309 {offsets = [0, 384], sizes = [8, 128], strides = [1, 1]} : vector<8x512xf32> to vector<8x128xf32>
    %325 = arith.negf %324 : vector<8x128xf32>
    %326 = math.exp %325 : vector<8x128xf32>
    %cst_63 = arith.constant 1.000000e+00 : f32
    %327 = vector.broadcast %cst_63 : f32 to vector<8x128xf32>
    %328 = arith.addf %327, %326 : vector<8x128xf32>
    %329 = arith.divf %327, %328 : vector<8x128xf32>
    %330 = arith.mulf %321, %274 : vector<8x128xf32>
    %331 = arith.mulf %315, %323 : vector<8x128xf32>
    %332 = arith.addf %330, %331 : vector<8x128xf32>
    %333 = math.tanh %332 : vector<8x128xf32>
    %334 = arith.mulf %329, %333 : vector<8x128xf32>
    %cst_64 = arith.constant dense<0.000000e+00> : vector<8x512xf32>
    %335 = tpu.matmul %334, %1, %cst_64 {dimension_numbers = #tpu.dot_dimension_numbers<[1], [0], [0], [1], [0, 0, 1, 1], [], []>} : vector<8x128xf32>, vector<128x512xf32>, vector<8x512xf32> -> vector<8x512xf32>
    %cst_65 = arith.constant dense<0.000000e+00> : vector<8x512xf32>
    %336 = tpu.matmul %305, %2, %cst_65 {dimension_numbers = #tpu.dot_dimension_numbers<[1], [0], [0], [1], [0, 0, 1, 1], [], []>} : vector<8x128xf32>, vector<128x512xf32>, vector<8x512xf32> -> vector<8x512xf32>
    %337 = arith.addf %335, %336 : vector<8x512xf32>
    %338 = arith.addf %337, %5 : vector<8x512xf32>
    %339 = vector.extract_strided_slice %338 {offsets = [0, 0], sizes = [8, 128], strides = [1, 1]} : vector<8x512xf32> to vector<8x128xf32>
    %340 = arith.negf %339 : vector<8x128xf32>
    %341 = math.exp %340 : vector<8x128xf32>
    %cst_66 = arith.constant 1.000000e+00 : f32
    %342 = vector.broadcast %cst_66 : f32 to vector<8x128xf32>
    %343 = arith.addf %342, %341 : vector<8x128xf32>
    %344 = arith.divf %342, %343 : vector<8x128xf32>
    %345 = vector.extract_strided_slice %338 {offsets = [0, 128], sizes = [8, 128], strides = [1, 1]} : vector<8x512xf32> to vector<8x128xf32>
    %346 = arith.negf %345 : vector<8x128xf32>
    %347 = math.exp %346 : vector<8x128xf32>
    %cst_67 = arith.constant 1.000000e+00 : f32
    %348 = vector.broadcast %cst_67 : f32 to vector<8x128xf32>
    %349 = arith.addf %348, %347 : vector<8x128xf32>
    %350 = arith.divf %348, %349 : vector<8x128xf32>
    %351 = vector.extract_strided_slice %338 {offsets = [0, 256], sizes = [8, 128], strides = [1, 1]} : vector<8x512xf32> to vector<8x128xf32>
    %352 = math.tanh %351 : vector<8x128xf32>
    %353 = vector.extract_strided_slice %338 {offsets = [0, 384], sizes = [8, 128], strides = [1, 1]} : vector<8x512xf32> to vector<8x128xf32>
    %354 = arith.negf %353 : vector<8x128xf32>
    %355 = math.exp %354 : vector<8x128xf32>
    %cst_68 = arith.constant 1.000000e+00 : f32
    %356 = vector.broadcast %cst_68 : f32 to vector<8x128xf32>
    %357 = arith.addf %356, %355 : vector<8x128xf32>
    %358 = arith.divf %356, %357 : vector<8x128xf32>
    %359 = arith.mulf %350, %303 : vector<8x128xf32>
    %360 = arith.mulf %344, %352 : vector<8x128xf32>
    %361 = arith.addf %359, %360 : vector<8x128xf32>
    %362 = math.tanh %361 : vector<8x128xf32>
    %363 = arith.mulf %358, %362 : vector<8x128xf32>
    %364 = vector.extract_strided_slice %14 {offsets = [6, 0, 0], sizes = [1, 8, 512], strides = [1, 1, 1]} : vector<8x8x512xf32> to vector<1x8x512xf32>
    %365 = vector.shape_cast %364 : vector<1x8x512xf32> to vector<8x512xf32>
    %cst_69 = arith.constant dense<0.000000e+00> : vector<8x512xf32>
    %366 = tpu.matmul %334, %0, %cst_69 {dimension_numbers = #tpu.dot_dimension_numbers<[1], [0], [0], [1], [0, 0, 1, 1], [], []>} : vector<8x128xf32>, vector<128x512xf32>, vector<8x512xf32> -> vector<8x512xf32>
    %367 = arith.addf %365, %366 : vector<8x512xf32>
    %368 = vector.extract_strided_slice %367 {offsets = [0, 0], sizes = [8, 128], strides = [1, 1]} : vector<8x512xf32> to vector<8x128xf32>
    %369 = arith.negf %368 : vector<8x128xf32>
    %370 = math.exp %369 : vector<8x128xf32>
    %cst_70 = arith.constant 1.000000e+00 : f32
    %371 = vector.broadcast %cst_70 : f32 to vector<8x128xf32>
    %372 = arith.addf %371, %370 : vector<8x128xf32>
    %373 = arith.divf %371, %372 : vector<8x128xf32>
    %374 = vector.extract_strided_slice %367 {offsets = [0, 128], sizes = [8, 128], strides = [1, 1]} : vector<8x512xf32> to vector<8x128xf32>
    %375 = arith.negf %374 : vector<8x128xf32>
    %376 = math.exp %375 : vector<8x128xf32>
    %cst_71 = arith.constant 1.000000e+00 : f32
    %377 = vector.broadcast %cst_71 : f32 to vector<8x128xf32>
    %378 = arith.addf %377, %376 : vector<8x128xf32>
    %379 = arith.divf %377, %378 : vector<8x128xf32>
    %380 = vector.extract_strided_slice %367 {offsets = [0, 256], sizes = [8, 128], strides = [1, 1]} : vector<8x512xf32> to vector<8x128xf32>
    %381 = math.tanh %380 : vector<8x128xf32>
    %382 = vector.extract_strided_slice %367 {offsets = [0, 384], sizes = [8, 128], strides = [1, 1]} : vector<8x512xf32> to vector<8x128xf32>
    %383 = arith.negf %382 : vector<8x128xf32>
    %384 = math.exp %383 : vector<8x128xf32>
    %cst_72 = arith.constant 1.000000e+00 : f32
    %385 = vector.broadcast %cst_72 : f32 to vector<8x128xf32>
    %386 = arith.addf %385, %384 : vector<8x128xf32>
    %387 = arith.divf %385, %386 : vector<8x128xf32>
    %388 = arith.mulf %379, %332 : vector<8x128xf32>
    %389 = arith.mulf %373, %381 : vector<8x128xf32>
    %390 = arith.addf %388, %389 : vector<8x128xf32>
    %391 = math.tanh %390 : vector<8x128xf32>
    %392 = arith.mulf %387, %391 : vector<8x128xf32>
    %cst_73 = arith.constant dense<0.000000e+00> : vector<8x512xf32>
    %393 = tpu.matmul %392, %1, %cst_73 {dimension_numbers = #tpu.dot_dimension_numbers<[1], [0], [0], [1], [0, 0, 1, 1], [], []>} : vector<8x128xf32>, vector<128x512xf32>, vector<8x512xf32> -> vector<8x512xf32>
    %cst_74 = arith.constant dense<0.000000e+00> : vector<8x512xf32>
    %394 = tpu.matmul %363, %2, %cst_74 {dimension_numbers = #tpu.dot_dimension_numbers<[1], [0], [0], [1], [0, 0, 1, 1], [], []>} : vector<8x128xf32>, vector<128x512xf32>, vector<8x512xf32> -> vector<8x512xf32>
    %395 = arith.addf %393, %394 : vector<8x512xf32>
    %396 = arith.addf %395, %5 : vector<8x512xf32>
    %397 = vector.extract_strided_slice %396 {offsets = [0, 0], sizes = [8, 128], strides = [1, 1]} : vector<8x512xf32> to vector<8x128xf32>
    %398 = arith.negf %397 : vector<8x128xf32>
    %399 = math.exp %398 : vector<8x128xf32>
    %cst_75 = arith.constant 1.000000e+00 : f32
    %400 = vector.broadcast %cst_75 : f32 to vector<8x128xf32>
    %401 = arith.addf %400, %399 : vector<8x128xf32>
    %402 = arith.divf %400, %401 : vector<8x128xf32>
    %403 = vector.extract_strided_slice %396 {offsets = [0, 128], sizes = [8, 128], strides = [1, 1]} : vector<8x512xf32> to vector<8x128xf32>
    %404 = arith.negf %403 : vector<8x128xf32>
    %405 = math.exp %404 : vector<8x128xf32>
    %cst_76 = arith.constant 1.000000e+00 : f32
    %406 = vector.broadcast %cst_76 : f32 to vector<8x128xf32>
    %407 = arith.addf %406, %405 : vector<8x128xf32>
    %408 = arith.divf %406, %407 : vector<8x128xf32>
    %409 = vector.extract_strided_slice %396 {offsets = [0, 256], sizes = [8, 128], strides = [1, 1]} : vector<8x512xf32> to vector<8x128xf32>
    %410 = math.tanh %409 : vector<8x128xf32>
    %411 = vector.extract_strided_slice %396 {offsets = [0, 384], sizes = [8, 128], strides = [1, 1]} : vector<8x512xf32> to vector<8x128xf32>
    %412 = arith.negf %411 : vector<8x128xf32>
    %413 = math.exp %412 : vector<8x128xf32>
    %cst_77 = arith.constant 1.000000e+00 : f32
    %414 = vector.broadcast %cst_77 : f32 to vector<8x128xf32>
    %415 = arith.addf %414, %413 : vector<8x128xf32>
    %416 = arith.divf %414, %415 : vector<8x128xf32>
    %417 = arith.mulf %408, %361 : vector<8x128xf32>
    %418 = arith.mulf %402, %410 : vector<8x128xf32>
    %419 = arith.addf %417, %418 : vector<8x128xf32>
    %420 = math.tanh %419 : vector<8x128xf32>
    %421 = arith.mulf %416, %420 : vector<8x128xf32>
    %422 = vector.extract_strided_slice %14 {offsets = [7, 0, 0], sizes = [1, 8, 512], strides = [1, 1, 1]} : vector<8x8x512xf32> to vector<1x8x512xf32>
    %423 = vector.shape_cast %422 : vector<1x8x512xf32> to vector<8x512xf32>
    %cst_78 = arith.constant dense<0.000000e+00> : vector<8x512xf32>
    %424 = tpu.matmul %392, %0, %cst_78 {dimension_numbers = #tpu.dot_dimension_numbers<[1], [0], [0], [1], [0, 0, 1, 1], [], []>} : vector<8x128xf32>, vector<128x512xf32>, vector<8x512xf32> -> vector<8x512xf32>
    %425 = arith.addf %423, %424 : vector<8x512xf32>
    %426 = vector.extract_strided_slice %425 {offsets = [0, 0], sizes = [8, 128], strides = [1, 1]} : vector<8x512xf32> to vector<8x128xf32>
    %427 = arith.negf %426 : vector<8x128xf32>
    %428 = math.exp %427 : vector<8x128xf32>
    %cst_79 = arith.constant 1.000000e+00 : f32
    %429 = vector.broadcast %cst_79 : f32 to vector<8x128xf32>
    %430 = arith.addf %429, %428 : vector<8x128xf32>
    %431 = arith.divf %429, %430 : vector<8x128xf32>
    %432 = vector.extract_strided_slice %425 {offsets = [0, 128], sizes = [8, 128], strides = [1, 1]} : vector<8x512xf32> to vector<8x128xf32>
    %433 = arith.negf %432 : vector<8x128xf32>
    %434 = math.exp %433 : vector<8x128xf32>
    %cst_80 = arith.constant 1.000000e+00 : f32
    %435 = vector.broadcast %cst_80 : f32 to vector<8x128xf32>
    %436 = arith.addf %435, %434 : vector<8x128xf32>
    %437 = arith.divf %435, %436 : vector<8x128xf32>
    %438 = vector.extract_strided_slice %425 {offsets = [0, 256], sizes = [8, 128], strides = [1, 1]} : vector<8x512xf32> to vector<8x128xf32>
    %439 = math.tanh %438 : vector<8x128xf32>
    %440 = vector.extract_strided_slice %425 {offsets = [0, 384], sizes = [8, 128], strides = [1, 1]} : vector<8x512xf32> to vector<8x128xf32>
    %441 = arith.negf %440 : vector<8x128xf32>
    %442 = math.exp %441 : vector<8x128xf32>
    %cst_81 = arith.constant 1.000000e+00 : f32
    %443 = vector.broadcast %cst_81 : f32 to vector<8x128xf32>
    %444 = arith.addf %443, %442 : vector<8x128xf32>
    %445 = arith.divf %443, %444 : vector<8x128xf32>
    %446 = arith.mulf %437, %390 : vector<8x128xf32>
    %447 = arith.mulf %431, %439 : vector<8x128xf32>
    %448 = arith.addf %446, %447 : vector<8x128xf32>
    %449 = math.tanh %448 : vector<8x128xf32>
    %450 = arith.mulf %445, %449 : vector<8x128xf32>
    %cst_82 = arith.constant dense<0.000000e+00> : vector<8x512xf32>
    %451 = tpu.matmul %450, %1, %cst_82 {dimension_numbers = #tpu.dot_dimension_numbers<[1], [0], [0], [1], [0, 0, 1, 1], [], []>} : vector<8x128xf32>, vector<128x512xf32>, vector<8x512xf32> -> vector<8x512xf32>
    %cst_83 = arith.constant dense<0.000000e+00> : vector<8x512xf32>
    %452 = tpu.matmul %421, %2, %cst_83 {dimension_numbers = #tpu.dot_dimension_numbers<[1], [0], [0], [1], [0, 0, 1, 1], [], []>} : vector<8x128xf32>, vector<128x512xf32>, vector<8x512xf32> -> vector<8x512xf32>
    %453 = arith.addf %451, %452 : vector<8x512xf32>
    %454 = arith.addf %453, %5 : vector<8x512xf32>
    %455 = vector.extract_strided_slice %454 {offsets = [0, 0], sizes = [8, 128], strides = [1, 1]} : vector<8x512xf32> to vector<8x128xf32>
    %456 = arith.negf %455 : vector<8x128xf32>
    %457 = math.exp %456 : vector<8x128xf32>
    %cst_84 = arith.constant 1.000000e+00 : f32
    %458 = vector.broadcast %cst_84 : f32 to vector<8x128xf32>
    %459 = arith.addf %458, %457 : vector<8x128xf32>
    %460 = arith.divf %458, %459 : vector<8x128xf32>
    %461 = vector.extract_strided_slice %454 {offsets = [0, 128], sizes = [8, 128], strides = [1, 1]} : vector<8x512xf32> to vector<8x128xf32>
    %462 = arith.negf %461 : vector<8x128xf32>
    %463 = math.exp %462 : vector<8x128xf32>
    %cst_85 = arith.constant 1.000000e+00 : f32
    %464 = vector.broadcast %cst_85 : f32 to vector<8x128xf32>
    %465 = arith.addf %464, %463 : vector<8x128xf32>
    %466 = arith.divf %464, %465 : vector<8x128xf32>
    %467 = vector.extract_strided_slice %454 {offsets = [0, 256], sizes = [8, 128], strides = [1, 1]} : vector<8x512xf32> to vector<8x128xf32>
    %468 = math.tanh %467 : vector<8x128xf32>
    %469 = vector.extract_strided_slice %454 {offsets = [0, 384], sizes = [8, 128], strides = [1, 1]} : vector<8x512xf32> to vector<8x128xf32>
    %470 = arith.negf %469 : vector<8x128xf32>
    %471 = math.exp %470 : vector<8x128xf32>
    %cst_86 = arith.constant 1.000000e+00 : f32
    %472 = vector.broadcast %cst_86 : f32 to vector<8x128xf32>
    %473 = arith.addf %472, %471 : vector<8x128xf32>
    %474 = arith.divf %472, %473 : vector<8x128xf32>
    %475 = arith.mulf %466, %419 : vector<8x128xf32>
    %476 = arith.mulf %460, %468 : vector<8x128xf32>
    %477 = arith.addf %475, %476 : vector<8x128xf32>
    %478 = math.tanh %477 : vector<8x128xf32>
    %479 = arith.mulf %474, %478 : vector<8x128xf32>
    %c0_87 = arith.constant 0 : index
    %c0_88 = arith.constant 0 : index
    %480 = vector.load %arg7[%c0_87, %c0_88] : memref<128x128xf32, #tpu.memory_space<vmem>>, vector<128x128xf32>
    %cst_89 = arith.constant dense<0.000000e+00> : vector<8x128xf32>
    %481 = tpu.matmul %479, %480, %cst_89 {dimension_numbers = #tpu.dot_dimension_numbers<[1], [0], [0], [1], [0, 0, 1, 1], [], []>} : vector<8x128xf32>, vector<128x128xf32>, vector<8x128xf32> -> vector<8x128xf32>
    %c0_90 = arith.constant 0 : index
    %c0_91 = arith.constant 0 : index
    %482 = vector.load %arg8[%c0_90, %c0_91] : memref<1x128xf32, #tpu.memory_space<vmem>>, vector<1x128xf32>
    %483 = vector.shape_cast %482 : vector<1x128xf32> to vector<1x128xf32>
    %484 = vector.broadcast %483 : vector<1x128xf32> to vector<8x128xf32>
    %485 = arith.addf %481, %484 : vector<8x128xf32>
    %c0_92 = arith.constant 0 : index
    %c0_93 = arith.constant 0 : index
    %486 = vector.load %arg9[%c0_92, %c0_93] : memref<8x128xf32, #tpu.memory_space<vmem>>, vector<8x128xf32>
    tpu.vector_store %arg9[%c0_92, %c0_93], %485 {strides = array<i32>} : memref<8x128xf32, #tpu.memory_space<vmem>>, vector<8x128xf32>,
    return
  }
}

</mosaic_0001>

<bundles_post_ra>
// kernel: tpu_custom_call.1
= control target key start
LH: loop header
LB: loop body
LE: loop exit
PB: predicated region body
PF: predicated region fallthrough
CT: control target
= control target key end

     0   :  { %14 = vsyncpa [#allocation3], 0  ;;  %s8234_s0 = inlined_call_operand.hbm [shape: f32[8,8,128], index: 0, kind: input, shape index: {}]   ;;  %s8235_s1 = inlined_call_operand.hbm [shape: f32[128,512], index: 1, kind: input, shape index: {}]   ;;  %s8236_s2 = inlined_call_operand.hbm [shape: f32[128,512], index: 2, kind: input, shape index: {}]   ;;  %s8237_s3 = inlined_call_operand.vmem [shape: f32[1,512], index: 3, kind: input, shape index: {}]   ;;  %s8238_s4 = inlined_call_operand.hbm [shape: f32[128,512], index: 4, kind: input, shape index: {}]   ;;  %s8239_s5 = inlined_call_operand.hbm [shape: f32[128,512], index: 5, kind: input, shape index: {}]   ;;  %s8240_s6 = inlined_call_operand.vmem [shape: f32[1,512], index: 6, kind: input, shape index: {}]   ;;  %s8241_s7 = inlined_call_operand.hbm [shape: f32[128,128], index: 7, kind: input, shape index: {}]   ;;  %s8242_s8 = inlined_call_operand.vmem [shape: f32[1,128], index: 8, kind: input, shape index: {}]   ;;  %s8243_s9 = inlined_call_operand.hbm [shape: f32[8,128], index: 9, kind: output, shape index: {}]  }
   0x1   :  { %15 = vsyncpa [#allocation6], 0 }
   0x2   :  { %16 = vsyncpa [#allocation9], 0 }
   0x3   :  { %17 = vsyncpa [#allocation12], 0 }
   0x4   :  { %18 = vsyncpa [#allocation4], 0  ;;  %s6872_s30 = smov [#allocation5]   ;;  %s6708_s13 = scalar_lea.hbm %s8235_s1, 8192 }
   0x5   :  { %s36_s10 = sshll.u32 %s6872_s30, 4  ;;  %p6709_p0 = scmp.ne.s32.totalorder %s8235_s1, %s6708_s13  ;;  %s37_s10 = int_to_ptr.vmem [resolvable:$true] %s36_s10 }
   0x6   :  { %p6712_p1 = scmp.lt.u32.totalorder %s6708_s13, %s8235_s1 }
   0x8   :  { %p6714_p2 = pnand %p6712_p1, %p6709_p0 }
   0xa   :  { %6717 = shalt.err (!%p6714_p2)
}
   0xb   :  { %s6718_s18 = scalar_lea.vmem %s37_s10, 8192  ;;  %p6723_p4 = scmp.lt.s32.totalorder %s37_s10, %s37_s10 }
   0xc   :  { %p6719_p3 = scmp.ne.s32.totalorder %s37_s10, %s6718_s18  ;;  %p6724_p5 = scmp.lt.s32.totalorder %s6718_s18, %s6718_s18 }
   0xe   :  { %p6725_p6 = por %p6724_p5, %p6723_p4 }
  0x10   :  { %p6726_p7 = pnand %p6725_p6, %p6719_p3 }
  0x12   :  { %6729 = shalt.err (!%p6726_p7)
}
  0x13   :  { %s6873_s19 = smov 512   ;;  %s6874_s20 = smov 32  }
  0x14   :  { %42 = dma.hbm_to_vmem [thread:$0]  %s8235_s1, 8192, %s37_s10, [#allocation6], %s6873_s19, %s6873_s19, %s6874_s20  }
  0x15   :  { %s6875_s23 = smov [#allocation8]   ;;  %s6876_s25 = smov [#allocation2]  }
  0x16   :  { %s62_s24 = sshll.u32 %s6875_s23, 4  ;;  %s24_s26 = sshll.u32 %s6876_s25, 4  ;;  %s63_s24 = int_to_ptr.vmem [resolvable:$true] %s62_s24  ;;  %s25_s26 = int_to_ptr.vmem [resolvable:$true] %s24_s26 }
  0x17   :  { %s6730_s29 = scalar_lea.hbm %s8238_s4, 8192 }
  0x18   :  { %p6731_p8 = scmp.ne.s32.totalorder %s8238_s4, %s6730_s29  ;;  %p6734_p9 = scmp.lt.u32.totalorder %s6730_s29, %s8238_s4 }
  0x1a   :  { %p6736_p10 = pnand %p6734_p9, %p6731_p8 }
  0x1c   :  { %6739 = shalt.err (!%p6736_p10)
}
  0x1d   :  { %s6740_s1 = scalar_lea.vmem %s63_s24, 8192  ;;  %p6745_p12 = scmp.lt.s32.totalorder %s63_s24, %s63_s24 }
  0x1e   :  { %p6741_p11 = scmp.ne.s32.totalorder %s63_s24, %s6740_s1  ;;  %p6746_p13 = scmp.lt.s32.totalorder %s6740_s1, %s6740_s1 }
  0x20   :  { %p6747_p0 = por %p6746_p13, %p6745_p12 }
  0x22   :  { %p6748_p1 = pnand %p6747_p0, %p6741_p11 }
  0x24   :  { %6751 = shalt.err (!%p6748_p1)
}
  0x25   :  { %68 = dma.hbm_to_vmem [thread:$0]  %s8238_s4, 8192, %s63_s24, [#allocation9], %s6873_s19, %s6873_s19, %s6874_s20  }
  0x26   :  { %s6752_s17 = scalar_lea.hbm %s8234_s0, 1024 }
  0x27   :  { %p6753_p2 = scmp.ne.s32.totalorder %s8234_s0, %s6752_s17  ;;  %p6756_p3 = scmp.lt.u32.totalorder %s6752_s17, %s8234_s0 }
  0x29   :  { %p6758_p4 = pnand %p6756_p3, %p6753_p2 }
  0x2b   :  { %6761 = shalt.err (!%p6758_p4)
}
  0x2c   :  { %s6762_s25 = scalar_lea.vmem %s25_s26, 1024  ;;  %p6767_p6 = scmp.lt.s32.totalorder %s25_s26, %s25_s26 }
  0x2d   :  { %p6763_p5 = scmp.ne.s32.totalorder %s25_s26, %s6762_s25  ;;  %p6768_p7 = scmp.lt.s32.totalorder %s6762_s25, %s6762_s25 }
  0x2f   :  { %p6769_p8 = por %p6768_p7, %p6767_p6 }
  0x31   :  { %p6770_p9 = pnand %p6769_p8, %p6763_p5 }
  0x33   :  { %6773 = shalt.err (!%p6770_p9)
}
  0x34   :  { %s6877_s4 = smov 128   ;;  %s6878_s24 = smov 8  }
  0x35   :  { %30 = dma.hbm_to_vmem [thread:$0]  %s8234_s0, 1024, %s25_s26, [#allocation3], %s6877_s4, %s6877_s4, %s6878_s24  }
  0x36   :  { %s6879_s29 = smov [#allocation7]   ;;  %s6880_s11 = smov [#allocation10]  }
  0x37   :  { %s48_s30 = sshll.u32 %s6879_s29, 4  ;;  %s74_s12 = sshll.u32 %s6880_s11, 4  ;;  %s49_s30 = int_to_ptr.vmem [resolvable:$true] %s48_s30  ;;  %s75_s12 = int_to_ptr.vmem [resolvable:$true] %s74_s12 }
  0x38   :  { %s6774_s10 = scalar_lea.hbm %s8236_s2, 8192 }
  0x39   :  { %p6775_p10 = scmp.ne.s32.totalorder %s8236_s2, %s6774_s10  ;;  %p6778_p11 = scmp.lt.u32.totalorder %s6774_s10, %s8236_s2 }
  0x3b   :  { %p6780_p12 = pnand %p6778_p11, %p6775_p10 }
  0x3d   :  { %6783 = shalt.err (!%p6780_p12)
}
  0x3e   :  { %s6784_s0 = scalar_lea.vmem %s49_s30, 8192  ;;  %p6789_p0 = scmp.lt.s32.totalorder %s49_s30, %s49_s30 }
  0x3f   :  { %p6785_p13 = scmp.ne.s32.totalorder %s49_s30, %s6784_s0  ;;  %p6790_p1 = scmp.lt.s32.totalorder %s6784_s0, %s6784_s0 }
  0x41   :  { %p6791_p2 = por %p6790_p1, %p6789_p0 }
  0x43   :  { %p6792_p3 = pnand %p6791_p2, %p6785_p13 }
  0x45   :  { %6795 = shalt.err (!%p6792_p3)
}
  0x46   :  { %54 = dma.hbm_to_vmem [thread:$0]  %s8236_s2, 8192, %s49_s30, [#allocation6], %s6873_s19, %s6873_s19, %s6874_s20  }
  0x47   :  { %s6796_s23 = scalar_lea.hbm %s8239_s5, 8192 }
  0x48   :  { %p6797_p4 = scmp.ne.s32.totalorder %s8239_s5, %s6796_s23  ;;  %p6800_p5 = scmp.lt.u32.totalorder %s6796_s23, %s8239_s5 }
  0x4a   :  { %p6802_p6 = pnand %p6800_p5, %p6797_p4 }
  0x4c   :  { %6805 = shalt.err (!%p6802_p6)
}
  0x4d   :  { %s6806_s11 = scalar_lea.vmem %s75_s12, 8192  ;;  %p6811_p8 = scmp.lt.s32.totalorder %s75_s12, %s75_s12 }
  0x4e   :  { %p6807_p7 = scmp.ne.s32.totalorder %s75_s12, %s6806_s11  ;;  %p6812_p9 = scmp.lt.s32.totalorder %s6806_s11, %s6806_s11 }
  0x50   :  { %p6813_p10 = por %p6812_p9, %p6811_p8 }
  0x52   :  { %p6814_p11 = pnand %p6813_p10, %p6807_p7 }
  0x54   :  { %6817 = shalt.err (!%p6814_p11)
}
  0x55   :  { %80 = dma.hbm_to_vmem [thread:$0]  %s8239_s5, 8192, %s75_s12, [#allocation9], %s6873_s19, %s6873_s19, %s6874_s20  }
  0x56   :  { %s6881_s13 = smov [#allocation11]   ;;  %s6818_s15 = scalar_lea.hbm %s8241_s7, 2048 }
  0x57   :  { %s88_s1 = sshll.u32 %s6881_s13, 4  ;;  %p6819_p12 = scmp.ne.s32.totalorder %s8241_s7, %s6818_s15  ;;  %s89_s1 = int_to_ptr.vmem [resolvable:$true] %s88_s1 }
  0x58   :  { %p6822_p13 = scmp.lt.u32.totalorder %s6818_s15, %s8241_s7 }
  0x5a   :  { %p6824_p0 = pnand %p6822_p13, %p6819_p12 }
  0x5c   :  { %6827 = shalt.err (!%p6824_p0)
}
  0x5d   :  { %s6828_s18 = scalar_lea.vmem %s89_s1, 2048  ;;  %p6833_p2 = scmp.lt.s32.totalorder %s89_s1, %s89_s1 }
  0x5e   :  { %p6829_p1 = scmp.ne.s32.totalorder %s89_s1, %s6828_s18  ;;  %p6834_p3 = scmp.lt.s32.totalorder %s6828_s18, %s6828_s18 }
  0x60   :  { %p6835_p4 = por %p6834_p3, %p6833_p2 }
  0x62   :  { %p6836_p5 = pnand %p6835_p4, %p6829_p1 }
  0x64   :  { %6839 = shalt.err (!%p6836_p5)
}
  0x65   :  { %94 = dma.hbm_to_vmem [thread:$0]  %s8241_s7, 2048, %s89_s1, [#allocation12], %s6877_s4, %s6877_s4, %s6878_s24  }
  0x66   :  { %6862 = dma.done.wait [#allocation3], 1024  }
  0x67   :  { %6863 = vsyncadd [#allocation3], 4294966272 }
  0x68   :  { %6864 = dma.done.wait [#allocation6], 16384  }
  0x69   :  { %6865 = vsyncadd [#allocation6], 4294950912 }
  0x6a   :  { %6866 = dma.done.wait [#allocation9], 16384  }
  0x6b   :  { %6867 = vsyncadd [#allocation9], 4294950912 }
  0x6c   :  { %6868 = dma.done.wait [#allocation12], 2048  }
  0x6d   :  { %6869 = vsyncadd [#allocation12], 4294965248  ;;  %v8244_v0 = vmov 0.0   ;;  %v338_v1 = vld [vmem:[#allocation5 + $0x8] sm:$0xff]  ;;  %v340_v3 = vld [vmem:[#allocation5 + $0x18] sm:$0xff]  ;;  %vm6884_vm0 = vmmov 0  }
  0x6e   :  { %487 = vmatprep.mubr.f32.mxu0 %v8244_v0  ;;  %600 = vmatprep.mubr.f32.mxu1 %v8244_v0  ;;  %v342_v2 = vld [vmem:[#allocation5 + $0x28] sm:$0xff]  ;;  %v344_v5 = vld [vmem:[#allocation5 + $0x38] sm:$0xff]  ;;  %v337_v6 = vld [vmem:[#allocation5] sm:$0xff]  ;;  %s6885_s12 = smov [#allocation13]  }
  0x6f   :  { %v4718_v4 = vpack.c.bf16 %v342_v2, %v338_v1  ;;  %v341_v7 = vld [vmem:[#allocation5 + $0x20] sm:$0xff]  ;;  %v4750_v8 = vpack.c.bf16 %v344_v5, %v340_v3  ;;  %v339_v10 = vld [vmem:[#allocation5 + $0x10] sm:$0xff]  ;;  %v346_v12 = vld [vmem:[#allocation5 + $0x48] sm:$0xff]  ;;  %s4605_s21 = sshll.u32 %s6885_s12, 4  ;;  %s4606_s21 = int_to_ptr.vmem [resolvable:$true] %s4605_s21 }
  0x70   :  { %v4720_v9 = vpack.c.bf16 %v341_v7, %v337_v6  ;;  %v343_v11 = vld [vmem:[#allocation5 + $0x30] sm:$0xff]  ;;  %v350_v14 = vld [vmem:[#allocation5 + $0x68] sm:$0xff]  ;;  %v348_v15 = vld [vmem:[#allocation5 + $0x58] sm:$0xff]  ;;  %s6840_s22 = scalar_lea.vmem %s4606_s21, 128  ;;  %p6845_p7 = scmp.lt.s32.totalorder %s4606_s21, %s4606_s21 }
  0x71   :  { %4719 = vmatprep.subr.bf16.mxu0 %v4718_v4  ;;  %v4752_v13 = vpack.c.bf16 %v343_v11, %v339_v10  ;;  %v352_v16 = vld [vmem:[#allocation5 + $0x78] sm:$0xff]  ;;  %4751 = vmatprep.subr.bf16.mxu1 %v4750_v8  ;;  %v4722_v17 = vpack.c.bf16 %v350_v14, %v346_v12  ;;  %v345_v19 = vld [vmem:[#allocation5 + $0x40] sm:$0xff]  ;;  %v347_v21 = vld [vmem:[#allocation5 + $0x50] sm:$0xff]  ;;  %p6841_p6 = scmp.ne.s32.totalorder %s4606_s21, %s6840_s22  ;;  %p6846_p8 = scmp.lt.s32.totalorder %s6840_s22, %s6840_s22 }
  0x72   :  { %4721 = vmatpush1.bf16.msra.mxu0 %v4720_v9  ;;  %v4754_v18 = vpack.c.bf16 %v352_v16, %v348_v15  ;;  %v349_v20 = vld [vmem:[#allocation5 + $0x60] sm:$0xff]  ;;  %v351_v23 = vld [vmem:[#allocation5 + $0x70] sm:$0xff]  ;;  %v354_v24 = vld [vmem:[#allocation5 + $0x88] sm:$0xff] }
  0x73   :  { %4753 = vmatpush1.bf16.msra.mxu1 %v4752_v13  ;;  %v4724_v22 = vpack.c.bf16 %v349_v20, %v345_v19  ;;  %v358_v25 = vld [vmem:[#allocation5 + $0xa8] sm:$0xff]  ;;  %4723 = vmatprep.subr.bf16.mxu0 %v4722_v17  ;;  %v4756_v26 = vpack.c.bf16 %v351_v23, %v347_v21  ;;  %v356_v28 = vld [vmem:[#allocation5 + $0x98] sm:$0xff]  ;;  %v353_v30 = vld [vmem:[#allocation5 + $0x80] sm:$0xff]  ;;  %p6847_p9 = por %p6846_p8, %p6845_p7 }
  0x74   :  { %4755 = vmatprep.subr.bf16.mxu1 %v4754_v18  ;;  %v4726_v27 = vpack.c.bf16 %v358_v25, %v354_v24  ;;  %v360_v29 = vld [vmem:[#allocation5 + $0xb8] sm:$0xff]  ;;  %v357_v32 = vld [vmem:[#allocation5 + $0xa0] sm:$0xff]  ;;  %v355_v33 = vld [vmem:[#allocation5 + $0x90] sm:$0xff] }
  0x75   :  { %v4758_v31 = vpack.c.bf16 %v360_v29, %v356_v28  ;;  %v359_v34 = vld [vmem:[#allocation5 + $0xb0] sm:$0xff]  ;;  %v4728_v35 = vpack.c.bf16 %v357_v32, %v353_v30  ;;  %v362_v36 = vld [vmem:[#allocation5 + $0xc8] sm:$0xff]  ;;  %v364_v38 = vld [vmem:[#allocation5 + $0xd8] sm:$0xff]  ;;  %p6848_p10 = pnand %p6847_p9, %p6841_p6 }
  0x76   :  { %4725 = vmatpush1.bf16.msra.mxu0 %v4724_v22  ;;  %v366_v37 = vld [vmem:[#allocation5 + $0xe8] sm:$0xff]  ;;  %v4760_v39 = vpack.c.bf16 %v359_v34, %v355_v33  ;;  %v368_v41 = vld [vmem:[#allocation5 + $0xf8] sm:$0xff]  ;;  %v361_v42 = vld [vmem:[#allocation5 + $0xc0] sm:$0xff] }
  0x77   :  { %4757 = vmatpush1.bf16.msra.mxu1 %v4756_v26  ;;  %4727 = vmatprep.subr.bf16.mxu0 %v4726_v27  ;;  %v4730_v40 = vpack.c.bf16 %v366_v37, %v362_v36  ;;  %v365_v43 = vld [vmem:[#allocation5 + $0xe0] sm:$0xff]  ;;  %v4762_v44 = vpack.c.bf16 %v368_v41, %v364_v38  ;;  %v363_v45 = vld [vmem:[#allocation5 + $0xd0] sm:$0xff]  ;;  %v370_v47 = vld [vmem:[#allocation5 + $0x108] sm:$0xff] }
  0x78   :  { %4759 = vmatprep.subr.bf16.mxu1 %v4758_v31  ;;  %v367_v46 = vld [vmem:[#allocation5 + $0xf0] sm:$0xff]  ;;  %v374_v48 = vld [vmem:[#allocation5 + $0x128] sm:$0xff]  ;;  %v372_v49 = vld [vmem:[#allocation5 + $0x118] sm:$0xff]  ;;  %v4732_v51 = vpack.c.bf16 %v365_v43, %v361_v42 }
  0x79   :  { %v376_v50 = vld [vmem:[#allocation5 + $0x138] sm:$0xff]  ;;  %v4764_v52 = vpack.c.bf16 %v367_v46, %v363_v45  ;;  %v4734_v53 = vpack.c.bf16 %v374_v48, %v370_v47  ;;  %v369_v54 = vld [vmem:[#allocation5 + $0x100] sm:$0xff]  ;;  %v371_v56 = vld [vmem:[#allocation5 + $0x110] sm:$0xff] }
  0x7a   :  { %4729 = vmatpush1.bf16.msra.mxu0 %v4728_v35  ;;  %v373_v55 = vld [vmem:[#allocation5 + $0x120] sm:$0xff]  ;;  %v4766_v57 = vpack.c.bf16 %v376_v50, %v372_v49  ;;  %v375_v58 = vld [vmem:[#allocation5 + $0x130] sm:$0xff]  ;;  %v378_v59 = vld [vmem:[#allocation5 + $0x148] sm:$0xff] }
  0x7b   :  { %4761 = vmatpush1.bf16.msra.mxu1 %v4760_v39  ;;  %4731 = vmatprep.subr.bf16.mxu0 %v4730_v40  ;;  %v382_v60 = vld [vmem:[#allocation5 + $0x168] sm:$0xff]  ;;  %v380_v61 = vld [vmem:[#allocation5 + $0x158] sm:$0xff]  ;;  %v4736_v63 = vpack.c.bf16 %v373_v55, %v369_v54  ;;  %v4768_v1 = vpack.c.bf16 %v375_v58, %v371_v56  ;;  %v377_v3 = vld [vmem:[#allocation5 + $0x140] sm:$0xff] }
  0x7c   :  { %4763 = vmatprep.subr.bf16.mxu1 %v4762_v44  ;;  %v384_v62 = vld [vmem:[#allocation5 + $0x178] sm:$0xff]  ;;  %v4738_v2 = vpack.c.bf16 %v382_v60, %v378_v59  ;;  %v381_v4 = vld [vmem:[#allocation5 + $0x160] sm:$0xff]  ;;  %v379_v5 = vld [vmem:[#allocation5 + $0x150] sm:$0xff] }
  0x7d   :  { %v4770_v6 = vpack.c.bf16 %v384_v62, %v380_v61  ;;  %v383_v7 = vld [vmem:[#allocation5 + $0x170] sm:$0xff]  ;;  %v386_v8 = vld [vmem:[#allocation5 + $0x188] sm:$0xff]  ;;  %v388_v10 = vld [vmem:[#allocation5 + $0x198] sm:$0xff]  ;;  %v4740_v12 = vpack.c.bf16 %v381_v4, %v377_v3 }
  0x7e   :  { %4733 = vmatpush1.bf16.msra.mxu0 %v4732_v51  ;;  %v390_v9 = vld [vmem:[#allocation5 + $0x1a8] sm:$0xff]  ;;  %v392_v11 = vld [vmem:[#allocation5 + $0x1b8] sm:$0xff]  ;;  %v4772_v13 = vpack.c.bf16 %v383_v7, %v379_v5  ;;  %v385_v15 = vld [vmem:[#allocation5 + $0x180] sm:$0xff] }
  0x7f   :  { %4765 = vmatpush1.bf16.msra.mxu1 %v4764_v52  ;;  %4735 = vmatprep.subr.bf16.mxu0 %v4734_v53  ;;  %v4742_v14 = vpack.c.bf16 %v390_v9, %v386_v8  ;;  %v389_v16 = vld [vmem:[#allocation5 + $0x1a0] sm:$0xff]  ;;  %v387_v17 = vld [vmem:[#allocation5 + $0x190] sm:$0xff]  ;;  %v4774_v18 = vpack.c.bf16 %v392_v11, %v388_v10  ;;  %v394_v20 = vld [vmem:[#allocation5 + $0x1c8] sm:$0xff] }
  0x80   :  { %4767 = vmatprep.subr.bf16.mxu1 %v4766_v57  ;;  %v391_v19 = vld [vmem:[#allocation5 + $0x1b0] sm:$0xff]  ;;  %v398_v21 = vld [vmem:[#allocation5 + $0x1e8] sm:$0xff]  ;;  %v396_v22 = vld [vmem:[#allocation5 + $0x1d8] sm:$0xff]  ;;  %v4744_v24 = vpack.c.bf16 %v389_v16, %v385_v15 }
  0x81   :  { %v400_v23 = vld [vmem:[#allocation5 + $0x1f8] sm:$0xff]  ;;  %v4776_v25 = vpack.c.bf16 %v391_v19, %v387_v17  ;;  %v4746_v26 = vpack.c.bf16 %v398_v21, %v394_v20  ;;  %v393_v27 = vld [vmem:[#allocation5 + $0x1c0] sm:$0xff]  ;;  %v395_v29 = vld [vmem:[#allocation5 + $0x1d0] sm:$0xff] }
  0x82   :  { %4737 = vmatpush1.bf16.msra.mxu0 %v4736_v63  ;;  %v397_v28 = vld [vmem:[#allocation5 + $0x1e0] sm:$0xff]  ;;  %v4778_v30 = vpack.c.bf16 %v400_v23, %v396_v22  ;;  %v399_v31 = vld [vmem:[#allocation5 + $0x1f0] sm:$0xff]  ;;  %v116_v32 = vld [vmem:[#allocation7 + $0x8] sm:$0xff] }
  0x83   :  { %4769 = vmatpush1.bf16.msra.mxu1 %v4768_v1  ;;  %4739 = vmatprep.subr.bf16.mxu0 %v4738_v2  ;;  %v120_v33 = vld [vmem:[#allocation7 + $0x28] sm:$0xff]  ;;  %v118_v34 = vld [vmem:[#allocation7 + $0x18] sm:$0xff]  ;;  %v4748_v36 = vpack.c.bf16 %v397_v28, %v393_v27  ;;  %v4780_v37 = vpack.c.bf16 %v399_v31, %v395_v29  ;;  %v115_v39 = vld [vmem:[#allocation7] sm:$0xff] }
  0x84   :  { %4771 = vmatprep.subr.bf16.mxu1 %v4770_v6  ;;  %v122_v35 = vld [vmem:[#allocation7 + $0x38] sm:$0xff]  ;;  %v7028_v38 = vpack.c.bf16 %v120_v33, %v116_v32  ;;  %v119_v40 = vld [vmem:[#allocation7 + $0x20] sm:$0xff]  ;;  %v117_v42 = vld [vmem:[#allocation7 + $0x10] sm:$0xff] }
  0x85   :  { %v7030_v41 = vpack.c.bf16 %v122_v35, %v118_v34  ;;  %v121_v43 = vld [vmem:[#allocation7 + $0x30] sm:$0xff]  ;;  %v124_v44 = vld [vmem:[#allocation7 + $0x48] sm:$0xff]  ;;  %v329_v46 = vld [vmem:[#allocation2] sm:$0xff]  ;;  %v7032_v47 = vpack.c.bf16 %v119_v40, %v115_v39 }
  0x86   :  { %4741 = vmatpush1.bf16.msra.mxu0 %v4740_v12  ;;  %8445 = vst [vmem:[#allocation19_spill] sm:$0xff] %v7028_v38  ;;  %v128_v45 = vld [vmem:[#allocation7 + $0x68] sm:$0xff]  ;;  %v126_v48 = vld [vmem:[#allocation7 + $0x58] sm:$0xff]  ;;  %v7035_v50 = vpack.c.bf16 %v121_v43, %v117_v42  ;;  %v123_v51 = vld [vmem:[#allocation7 + $0x40] sm:$0xff] }
  0x87   :  { %4773 = vmatpush1.bf16.msra.mxu1 %v4772_v13  ;;  %4743 = vmatprep.subr.bf16.mxu0 %v4742_v14  ;;  %8446 = vst [vmem:[#allocation20_spill] sm:$0xff] %v7030_v41  ;;  %v130_v49 = vld [vmem:[#allocation7 + $0x78] sm:$0xff]  ;;  %v127_v52 = vld [vmem:[#allocation7 + $0x60] sm:$0xff]  ;;  %v7038_v53 = vpack.c.bf16 %v128_v45, %v124_v44  ;;  %v125_v54 = vld [vmem:[#allocation7 + $0x50] sm:$0xff] }
  0x88   :  { %4775 = vmatprep.subr.bf16.mxu1 %v4774_v18  ;;  %v129_v55 = vld [vmem:[#allocation7 + $0x70] sm:$0xff]  ;;  %v7040_v56 = vpack.c.bf16 %v130_v49, %v126_v48  ;;  %v132_v57 = vld [vmem:[#allocation7 + $0x88] sm:$0xff]  ;;  %v7043_v60 = vpack.c.bf16 %v127_v52, %v123_v51  ;;  %v134_v61 = vld [vmem:[#allocation7 + $0x98] sm:$0xff] }
  0x89   :  { %v136_v58 = vld [vmem:[#allocation7 + $0xa8] sm:$0xff]  ;;  %v138_v62 = vld [vmem:[#allocation7 + $0xb8] sm:$0xff]  ;;  %v7047_v63 = vpack.c.bf16 %v129_v55, %v125_v54  ;;  %v131_v1 = vld [vmem:[#allocation7 + $0x80] sm:$0xff] }
  0x8a   :  { %4745 = vmatpush1.bf16.msra.mxu0 %v4744_v24  ;;  %v330_v59 = vld [vmem:[#allocation2 + $0x8] sm:$0xff]  ;;  %v135_v2 = vld [vmem:[#allocation7 + $0xa0] sm:$0xff]  ;;  %v7051_v3 = vpack.c.bf16 %v136_v58, %v132_v57  ;;  %v133_v4 = vld [vmem:[#allocation7 + $0x90] sm:$0xff]  ;;  %v7054_v6 = vpack.c.bf16 %v138_v62, %v134_v61 }
  0x8b   :  { %4777 = vmatpush1.bf16.msra.mxu1 %v4776_v25  ;;  %4747 = vmatprep.subr.bf16.mxu0 %v4746_v26  ;;  %v137_v5 = vld [vmem:[#allocation7 + $0xb0] sm:$0xff]  ;;  %v140_v7 = vld [vmem:[#allocation7 + $0xc8] sm:$0xff]  ;;  %v7057_v10 = vpack.c.bf16 %v135_v2, %v131_v1  ;;  %v142_v11 = vld [vmem:[#allocation7 + $0xd8] sm:$0xff] }
  0x8c   :  { %4779 = vmatprep.subr.bf16.mxu1 %v4778_v30  ;;  %8447 = vst [vmem:[#allocation21_spill] sm:$0xff] %v7051_v3  ;;  %8448 = vst [vmem:[#allocation22_spill] sm:$0xff] %v7054_v6  ;;  %v144_v8 = vld [vmem:[#allocation7 + $0xe8] sm:$0xff]  ;;  %v331_v9 = vld [vmem:[#allocation2 + $0x10] sm:$0xff]  ;;  %v7061_v13 = vpack.c.bf16 %v137_v5, %v133_v4 }
  0x8d   :  { %8449 = vst [vmem:[#allocation23_spill] sm:$0xff] %v7057_v10  ;;  %v146_v12 = vld [vmem:[#allocation7 + $0xf8] sm:$0xff]  ;;  %v139_v14 = vld [vmem:[#allocation7 + $0xc0] sm:$0xff]  ;;  %v7065_v16 = vpack.c.bf16 %v144_v8, %v140_v7  ;;  %v141_v17 = vld [vmem:[#allocation7 + $0xd0] sm:$0xff] }
  0x8e   :  { %4749 = vmatpush1.bf16.msra.mxu0 %v4748_v36  ;;  %8450 = vst [vmem:[#allocation24_spill] sm:$0xff] %v7061_v13  ;;  %v143_v15 = vld [vmem:[#allocation7 + $0xe0] sm:$0xff]  ;;  %v145_v18 = vld [vmem:[#allocation7 + $0xf0] sm:$0xff]  ;;  %v7068_v19 = vpack.c.bf16 %v146_v12, %v142_v11  ;;  %v148_v20 = vld [vmem:[#allocation7 + $0x108] sm:$0xff] }
  0x8f   :  { %4781 = vmatpush1.bf16.msra.mxu1 %v4780_v37  ;;  %4783 = vmatprep.subr.bf16.mxu0 %v7028_v38  ;;  %8451 = vst [vmem:[#allocation25_spill] sm:$0xff] %v7065_v16  ;;  %v152_v21 = vld [vmem:[#allocation7 + $0x128] sm:$0xff]  ;;  %v332_v22 = vld [vmem:[#allocation2 + $0x18] sm:$0xff]  ;;  %v7071_v23 = vpack.c.bf16 %v143_v15, %v139_v14  ;;  %v7075_v26 = vpack.c.bf16 %v145_v18, %v141_v17  ;;  %v147_v27 = vld [vmem:[#allocation7 + $0x100] sm:$0xff] }
  0x90   :  { %4815 = vmatprep.subr.bf16.mxu1 %v7030_v41  ;;  %8452 = vst [vmem:[#allocation26_spill] sm:$0xff] %v7068_v19  ;;  %v150_v24 = vld [vmem:[#allocation7 + $0x118] sm:$0xff]  ;;  %v151_v28 = vld [vmem:[#allocation7 + $0x120] sm:$0xff]  ;;  %v7079_v29 = vpack.c.bf16 %v152_v21, %v148_v20  ;;  %v149_v30 = vld [vmem:[#allocation7 + $0x110] sm:$0xff] }
  0x91   :  { %488 = vmatmul.mubr.f32.vlgmr.msra.gmra.mrb[0].mxu0 %v329_v46  ;;  %8453 = vst [vmem:[#allocation27_spill] sm:$0xff] %v7071_v23  ;;  %v154_v25 = vld [vmem:[#allocation7 + $0x138] sm:$0xff]  ;;  %8454 = vst [vmem:[#allocation28_spill] sm:$0xff] %v7075_v26  ;;  %v153_v31 = vld [vmem:[#allocation7 + $0x130] sm:$0xff]  ;;  %v7085_v36 = vpack.c.bf16 %v151_v28, %v147_v27 }
  0x92   :  { %601 = vmatmul.mubr.f32.vlgmr.msra.gmra.mrb[0].mxu1 %v329_v46  ;;  %4785 = vmatpush1.bf16.msra.mxu0 %v7032_v47  ;;  %8455 = vst [vmem:[#allocation29_spill] sm:$0xff] %v7079_v29  ;;  %v7082_v32 = vpack.c.bf16 %v154_v25, %v150_v24  ;;  %v156_v33 = vld [vmem:[#allocation7 + $0x148] sm:$0xff]  ;;  %v333_v35 = vld [vmem:[#allocation2 + $0x20] sm:$0xff]  ;;  %v158_v37 = vld [vmem:[#allocation7 + $0x158] sm:$0xff]  ;;  %v7089_v40 = vpack.c.bf16 %v153_v31, %v149_v30 }
  0x93   :  { %4817 = vmatpush1.bf16.msra.mxu1 %v7035_v50  ;;  %493 = vmatprep.mubr.f32.mxu0 %v8244_v0  ;;  %v160_v34 = vld [vmem:[#allocation7 + $0x168] sm:$0xff]  ;;  %8457 = vst [vmem:[#allocation31_spill] sm:$0xff] %v7085_v36  ;;  %v162_v39 = vld [vmem:[#allocation7 + $0x178] sm:$0xff]  ;;  %v155_v42 = vld [vmem:[#allocation7 + $0x140] sm:$0xff] }
  0x94   :  { %606 = vmatprep.mubr.f32.mxu1 %v8244_v0  ;;  %4787 = vmatprep.subr.bf16.mxu0 %v7038_v53  ;;  %8456 = vst [vmem:[#allocation30_spill] sm:$0xff] %v7082_v32  ;;  %8458 = vst [vmem:[#allocation32_spill] sm:$0xff] %v7089_v40  ;;  %v159_v43 = vld [vmem:[#allocation7 + $0x160] sm:$0xff]  ;;  %v7093_v44 = vpack.c.bf16 %v160_v34, %v156_v33  ;;  %v157_v45 = vld [vmem:[#allocation7 + $0x150] sm:$0xff]  ;;  %v7096_v48 = vpack.c.bf16 %v162_v39, %v158_v37 }
  0x95   :  { %494 = vmatmul.mubr.f32.gmra.mrb[2].mxu0 %v330_v59  ;;  %4819 = vmatprep.subr.bf16.mxu1 %v7040_v56  ;;  %v161_v46 = vld [vmem:[#allocation7 + $0x170] sm:$0xff]  ;;  %v164_v49 = vld [vmem:[#allocation7 + $0x188] sm:$0xff]  ;;  %v7099_v54 = vpack.c.bf16 %v159_v43, %v155_v42  ;;  %v166_v55 = vld [vmem:[#allocation7 + $0x198] sm:$0xff] }
  0x96   :  { %607 = vmatmul.mubr.f32.gmra.mrb[2].mxu1 %v330_v59  ;;  %4789 = vmatpush1.bf16.msra.mxu0 %v7043_v60  ;;  %8459 = vst [vmem:[#allocation33_spill] sm:$0xff] %v7093_v44  ;;  %8460 = vst [vmem:[#allocation34_spill] sm:$0xff] %v7096_v48  ;;  %v168_v51 = vld [vmem:[#allocation7 + $0x1a8] sm:$0xff]  ;;  %v170_v57 = vld [vmem:[#allocation7 + $0x1b8] sm:$0xff]  ;;  %v7103_v58 = vpack.c.bf16 %v161_v46, %v157_v45 }
  0x97   :  { %4821 = vmatpush1.bf16.msra.mxu1 %v7047_v63  ;;  %499 = vmatprep.mubr.f32.mxu0 %v8244_v0  ;;  %v334_v52 = vld [vmem:[#allocation2 + $0x28] sm:$0xff]  ;;  %8461 = vst [vmem:[#allocation35_spill] sm:$0xff] %v7099_v54  ;;  %v163_v59 = vld [vmem:[#allocation7 + $0x180] sm:$0xff]  ;;  %v7107_v62 = vpack.c.bf16 %v168_v51, %v164_v49  ;;  %v165_v1 = vld [vmem:[#allocation7 + $0x190] sm:$0xff]  ;;  %v7110_v4 = vpack.c.bf16 %v170_v57, %v166_v55 }
  0x98   :  { %612 = vmatprep.mubr.f32.mxu1 %v8244_v0  ;;  %4791 = vmatprep.subr.bf16.mxu0 %v7051_v3  ;;  %8462 = vst [vmem:[#allocation36_spill] sm:$0xff] %v7103_v58  ;;  %v167_v61 = vld [vmem:[#allocation7 + $0x1a0] sm:$0xff]  ;;  %v169_v2 = vld [vmem:[#allocation7 + $0x1b0] sm:$0xff]  ;;  %v172_v5 = vld [vmem:[#allocation7 + $0x1c8] sm:$0xff] }
  0x99   :  { %500 = vmatmul.mubr.f32.gmra.mrb[4].mxu0 %v331_v9  ;;  %4823 = vmatprep.subr.bf16.mxu1 %v7054_v6  ;;  %8463 = vst [vmem:[#allocation37_spill] sm:$0xff] %v7107_v62  ;;  %8464 = vst [vmem:[#allocation38_spill] sm:$0xff] %v7110_v4  ;;  %v176_v7 = vld [vmem:[#allocation7 + $0x1e8] sm:$0xff]  ;;  %v335_v8 = vld [vmem:[#allocation2 + $0x30] sm:$0xff]  ;;  %v7117_v14 = vpack.c.bf16 %v169_v2, %v165_v1 }
  0x9a   :  { %613 = vmatmul.mubr.f32.gmra.mrb[4].mxu1 %v331_v9  ;;  %4793 = vmatpush1.bf16.msra.mxu0 %v7057_v10  ;;  %v7113_v9 = vpack.c.bf16 %v167_v61, %v163_v59  ;;  %v174_v11 = vld [vmem:[#allocation7 + $0x1d8] sm:$0xff]  ;;  %v171_v15 = vld [vmem:[#allocation7 + $0x1c0] sm:$0xff]  ;;  %v7121_v18 = vpack.c.bf16 %v176_v7, %v172_v5  ;;  %v173_v20 = vld [vmem:[#allocation7 + $0x1d0] sm:$0xff] }
  0x9b   :  { %4825 = vmatpush1.bf16.msra.mxu1 %v7061_v13  ;;  %505 = vmatprep.mubr.f32.mxu0 %v8244_v0  ;;  %v178_v12 = vld [vmem:[#allocation7 + $0x1f8] sm:$0xff]  ;;  %8466 = vst [vmem:[#allocation40_spill] sm:$0xff] %v7117_v14  ;;  %v175_v17 = vld [vmem:[#allocation7 + $0x1e0] sm:$0xff]  ;;  %v177_v21 = vld [vmem:[#allocation7 + $0x1f0] sm:$0xff] }
  0x9c   :  { %618 = vmatprep.mubr.f32.mxu1 %v8244_v0  ;;  %4795 = vmatprep.subr.bf16.mxu0 %v7065_v16  ;;  %8465 = vst [vmem:[#allocation39_spill] sm:$0xff] %v7113_v9  ;;  %8467 = vst [vmem:[#allocation41_spill] sm:$0xff] %v7121_v18  ;;  %v244_v24 = vld [vmem:[#allocation10 + $0x8] sm:$0xff]  ;;  %v336_v27 = vld [vmem:[#allocation2 + $0x38] sm:$0xff]  ;;  %v7127_v28 = vpack.c.bf16 %v175_v17, %v171_v15  ;;  %v7131_v33 = vpack.c.bf16 %v177_v21, %v173_v20 }
  0x9d   :  { %506 = vmatmul.mubr.f32.gmra.mrb[6].mxu0 %v332_v22  ;;  %4827 = vmatprep.subr.bf16.mxu1 %v7068_v19  ;;  %v248_v25 = vld [vmem:[#allocation10 + $0x28] sm:$0xff]  ;;  %v246_v30 = vld [vmem:[#allocation10 + $0x18] sm:$0xff]  ;;  %v243_v34 = vld [vmem:[#allocation10] sm:$0xff] }
  0x9e   :  { %619 = vmatmul.mubr.f32.gmra.mrb[6].mxu1 %v332_v22  ;;  %4797 = vmatpush1.bf16.msra.mxu0 %v7071_v23  ;;  %v7124_v22 = vpack.c.bf16 %v178_v12, %v174_v11  ;;  %8469 = vst [vmem:[#allocation43_spill] sm:$0xff] %v7127_v28  ;;  %v250_v31 = vld [vmem:[#allocation10 + $0x38] sm:$0xff]  ;;  %8470 = vst [vmem:[#allocation44_spill] sm:$0xff] %v7131_v33  ;;  %v245_v37 = vld [vmem:[#allocation10 + $0x10] sm:$0xff]  ;;  %v7135_v39 = vpack.c.bf16 %v248_v25, %v244_v24 }
  0x9f   :  { %4829 = vmatpush1.bf16.msra.mxu1 %v7075_v26  ;;  %511 = vmatprep.mubr.f32.mxu0 %v8244_v0  ;;  %v249_v42 = vld [vmem:[#allocation10 + $0x30] sm:$0xff]  ;;  %v252_v43 = vld [vmem:[#allocation10 + $0x48] sm:$0xff]  ;;  %v7138_v46 = vpack.c.bf16 %v250_v31, %v246_v30  ;;  %v254_v49 = vld [vmem:[#allocation10 + $0x58] sm:$0xff] }
  0xa0   :  { %624 = vmatprep.mubr.f32.mxu1 %v8244_v0  ;;  %4799 = vmatprep.subr.bf16.mxu0 %v7079_v29  ;;  %8468 = vst [vmem:[#allocation42_spill] sm:$0xff] %v7124_v22  ;;  %8471 = vst [vmem:[#allocation45_spill] sm:$0xff] %v7135_v39  ;;  %v256_v45 = vld [vmem:[#allocation10 + $0x68] sm:$0xff]  ;;  %v258_v51 = vld [vmem:[#allocation10 + $0x78] sm:$0xff]  ;;  %v7145_v55 = vpack.c.bf16 %v249_v42, %v245_v37 }
  0xa1   :  { %512 = vmatmul.mubr.f32.gmra.mrb[8].mxu0 %v333_v35  ;;  %4831 = vmatprep.subr.bf16.mxu1 %v7082_v32  ;;  %8472 = vst [vmem:[#allocation46_spill] sm:$0xff] %v7138_v46  ;;  %v7147_v57 = vpack.c.bf16 %v256_v45, %v252_v43  ;;  %v251_v59 = vld [vmem:[#allocation10 + $0x40] sm:$0xff]  ;;  %v253_v1 = vld [vmem:[#allocation10 + $0x50] sm:$0xff]  ;;  %v7151_v2 = vpack.c.bf16 %v258_v51, %v254_v49  ;;  %v260_v7 = vld [vmem:[#allocation10 + $0x88] sm:$0xff] }
  0xa2   :  { %625 = vmatmul.mubr.f32.gmra.mrb[8].mxu1 %v333_v35  ;;  %4801 = vmatpush1.bf16.msra.mxu0 %v7085_v36  ;;  %v247_v35 = vld [vmem:[#allocation10 + $0x20] sm:$0xff]  ;;  %8474 = vst [vmem:[#allocation48_spill] sm:$0xff] %v7145_v55  ;;  %v257_v5 = vld [vmem:[#allocation10 + $0x70] sm:$0xff]  ;;  %v262_v11 = vld [vmem:[#allocation10 + $0x98] sm:$0xff] }
  0xa3   :  { %4833 = vmatpush1.bf16.msra.mxu1 %v7089_v40  ;;  %517 = vmatprep.mubr.f32.mxu0 %v8244_v0  ;;  %8475 = vst [vmem:[#allocation49_spill] sm:$0xff] %v7147_v57  ;;  %v255_v61 = vld [vmem:[#allocation10 + $0x60] sm:$0xff]  ;;  %8476 = vst [vmem:[#allocation50_spill] sm:$0xff] %v7151_v2  ;;  %v266_v12 = vld [vmem:[#allocation10 + $0xb8] sm:$0xff]  ;;  %v7161_v17 = vpack.c.bf16 %v257_v5, %v253_v1 }
  0xa4   :  { %630 = vmatprep.mubr.f32.mxu1 %v8244_v0  ;;  %4803 = vmatprep.subr.bf16.mxu0 %v7093_v44  ;;  %v7157_v15 = vpack.c.bf16 %v255_v61, %v251_v59  ;;  %v259_v21 = vld [vmem:[#allocation10 + $0x80] sm:$0xff]  ;;  %v261_v25 = vld [vmem:[#allocation10 + $0x90] sm:$0xff]  ;;  %v268_v31 = vld [vmem:[#allocation10 + $0xc8] sm:$0xff] }
  0xa5   :  { %518 = vmatmul.mubr.f32.gmra.mrb[10].mxu0 %v334_v52  ;;  %4835 = vmatprep.subr.bf16.mxu1 %v7096_v48  ;;  %8478 = vst [vmem:[#allocation52_spill] sm:$0xff] %v7161_v17  ;;  %v263_v24 = vld [vmem:[#allocation10 + $0xa0] sm:$0xff]  ;;  %v265_v30 = vld [vmem:[#allocation10 + $0xb0] sm:$0xff]  ;;  %v274_v37 = vld [vmem:[#allocation10 + $0xf8] sm:$0xff] }
  0xa6   :  { %631 = vmatmul.mubr.f32.gmra.mrb[10].mxu1 %v334_v52  ;;  %4805 = vmatpush1.bf16.msra.mxu0 %v7099_v54  ;;  %v7141_v52 = vpack.c.bf16 %v247_v35, %v243_v34  ;;  %8477 = vst [vmem:[#allocation51_spill] sm:$0xff] %v7157_v15  ;;  %v272_v34 = vld [vmem:[#allocation10 + $0xe8] sm:$0xff]  ;;  %v270_v35 = vld [vmem:[#allocation10 + $0xd8] sm:$0xff]  ;;  %v7171_v42 = vpack.c.bf16 %v263_v24, %v259_v21  ;;  %v267_v49 = vld [vmem:[#allocation10 + $0xc0] sm:$0xff] }
  0xa7   :  { %4837 = vmatpush1.bf16.msra.mxu1 %v7103_v58  ;;  %523 = vmatprep.mubr.f32.mxu0 %v8244_v0  ;;  %v7175_v43 = vpack.c.bf16 %v265_v30, %v261_v25  ;;  %v7177_v45 = vpack.c.bf16 %v272_v34, %v268_v31  ;;  %v271_v51 = vld [vmem:[#allocation10 + $0xe0] sm:$0xff]  ;;  %v269_v59 = vld [vmem:[#allocation10 + $0xd0] sm:$0xff]  ;;  %v7180_v61 = vpack.c.bf16 %v274_v37, %v270_v35  ;;  %v276_v5 = vld [vmem:[#allocation10 + $0x108] sm:$0xff] }
  0xa8   :  { %636 = vmatprep.mubr.f32.mxu1 %v8244_v0  ;;  %4807 = vmatprep.subr.bf16.mxu0 %v7107_v62  ;;  %8473 = vst [vmem:[#allocation47_spill] sm:$0xff] %v7141_v52  ;;  %8481 = vst [vmem:[#allocation55_spill] sm:$0xff] %v7171_v42  ;;  %v273_v1 = vld [vmem:[#allocation10 + $0xf0] sm:$0xff]  ;;  %v275_v25 = vld [vmem:[#allocation10 + $0x100] sm:$0xff] }
  0xa9   :  { %524 = vmatmul.mubr.f32.gmra.mrb[12].mxu0 %v335_v8  ;;  %4839 = vmatprep.subr.bf16.mxu1 %v7110_v4  ;;  %8482 = vst [vmem:[#allocation56_spill] sm:$0xff] %v7175_v43  ;;  %8483 = vst [vmem:[#allocation57_spill] sm:$0xff] %v7177_v45  ;;  %v7187_v21 = vpack.c.bf16 %v273_v1, %v269_v59  ;;  %v279_v30 = vld [vmem:[#allocation10 + $0x120] sm:$0xff]  ;;  %v277_v34 = vld [vmem:[#allocation10 + $0x110] sm:$0xff] }
  0xaa   :  { %637 = vmatmul.mubr.f32.gmra.mrb[12].mxu1 %v335_v8  ;;  %4809 = vmatpush1.bf16.msra.mxu0 %v7113_v9  ;;  %v264_v8 = vld [vmem:[#allocation10 + $0xa8] sm:$0xff]  ;;  %8484 = vst [vmem:[#allocation58_spill] sm:$0xff] %v7180_v61  ;;  %v281_v35 = vld [vmem:[#allocation10 + $0x130] sm:$0xff]  ;;  %v7195_v37 = vpack.c.bf16 %v279_v30, %v275_v25  ;;  %v286_v1 = vld [vmem:[#allocation10 + $0x158] sm:$0xff] }
  0xab   :  { %4841 = vmatpush1.bf16.msra.mxu1 %v7117_v14  ;;  %529 = vmatprep.mubr.f32.mxu0 %v8244_v0  ;;  %v7163_v20 = vpack.c.bf16 %v264_v8, %v260_v7  ;;  %v280_v7 = vld [vmem:[#allocation10 + $0x128] sm:$0xff]  ;;  %v278_v8 = vld [vmem:[#allocation10 + $0x118] sm:$0xff]  ;;  %8486 = vst [vmem:[#allocation60_spill] sm:$0xff] %v7187_v21 }
  0xac   :  { %642 = vmatprep.mubr.f32.mxu1 %v8244_v0  ;;  %4811 = vmatprep.subr.bf16.mxu0 %v7121_v18  ;;  %v7189_v24 = vpack.c.bf16 %v280_v7, %v276_v5  ;;  %8489 = vst [vmem:[#allocation63_spill] sm:$0xff] %v7195_v37  ;;  %v288_v59 = vld [vmem:[#allocation10 + $0x168] sm:$0xff]  ;;  %v290_v7 = vld [vmem:[#allocation10 + $0x178] sm:$0xff] }
  0xad   :  { %530 = vmatmul.mubr.f32.gmra.mrb[14].mxu0 %v336_v27  ;;  %4843 = vmatprep.subr.bf16.mxu1 %v7124_v22  ;;  %8479 = vst [vmem:[#allocation53_spill] sm:$0xff] %v7163_v20  ;;  %v7206_v25 = vpack.c.bf16 %v290_v7, %v286_v1  ;;  %v298_v1 = vld [vmem:[#allocation10 + $0x1b8] sm:$0xff]  ;;  %v291_v7 = vld [vmem:[#allocation10 + $0x180] sm:$0xff] }
  0xae   :  { %643 = vmatmul.mubr.f32.gmra.mrb[14].mxu1 %v336_v27  ;;  %4813 = vmatpush1.bf16.msra.mxu0 %v7127_v28  ;;  %v7166_v27 = vpack.c.bf16 %v266_v12, %v262_v11  ;;  %v282_v11 = vld [vmem:[#allocation10 + $0x138] sm:$0xff]  ;;  %v7183_v12 = vpack.c.bf16 %v271_v51, %v267_v49  ;;  %8487 = vst [vmem:[#allocation61_spill] sm:$0xff] %v7189_v24  ;;  %v284_v51 = vld [vmem:[#allocation10 + $0x148] sm:$0xff] }
  0xaf   :  { %4845 = vmatpush1.bf16.msra.mxu1 %v7131_v33  ;;  %713 = vmatprep.mubr.f32.mxu0 %v8244_v0  ;;  %v7192_v31 = vpack.c.bf16 %v282_v11, %v278_v8  ;;  %v7199_v49 = vpack.c.bf16 %v281_v35, %v277_v34  ;;  %v7204_v5 = vpack.c.bf16 %v288_v59, %v284_v51  ;;  %v283_v8 = vld [vmem:[#allocation10 + $0x140] sm:$0xff]  ;;  %v285_v34 = vld [vmem:[#allocation10 + $0x150] sm:$0xff]  ;;  %v296_v51 = vld [vmem:[#allocation10 + $0x1a8] sm:$0xff] }
  0xb0   :  { %784 = vmatprep.mubr.f32.mxu1 %v8244_v0  ;;  %4847 = vmatprep.subr.bf16.mxu0 %v7135_v39  ;;  %8480 = vst [vmem:[#allocation54_spill] sm:$0xff] %v7166_v27  ;;  %8485 = vst [vmem:[#allocation59_spill] sm:$0xff] %v7183_v12  ;;  %v287_v11 = vld [vmem:[#allocation10 + $0x160] sm:$0xff]  ;;  %v289_v35 = vld [vmem:[#allocation10 + $0x170] sm:$0xff] }
  0xb1   :  { %714 = vmatmul.mubr.f32.vlgmr.msra.gmra.mrb[0].mxu0 %v8244_v0  ;;  %4879 = vmatprep.subr.bf16.mxu1 %v7138_v46  ;;  %8488 = vst [vmem:[#allocation62_spill] sm:$0xff] %v7192_v31  ;;  %8490 = vst [vmem:[#allocation64_spill] sm:$0xff] %v7199_v49  ;;  %v7208_v30 = vpack.c.bf16 %v287_v11, %v283_v8  ;;  %v294_v59 = vld [vmem:[#allocation10 + $0x198] sm:$0xff]  ;;  %v295_v8 = vld [vmem:[#allocation10 + $0x1a0] sm:$0xff] }
  0xb2   :  { %785 = vmatmul.mubr.f32.vlgmr.msra.gmra.mrb[0].mxu1 %v8244_v0  ;;  %4849 = vmatpush1.bf16.msra.mxu0 %v7141_v52  ;;  %8491 = vst [vmem:[#allocation65_spill] sm:$0xff] %v7204_v5  ;;  %8492 = vst [vmem:[#allocation66_spill] sm:$0xff] %v7206_v25  ;;  %v7218_v11 = vpack.c.bf16 %v298_v1, %v294_v59  ;;  %v306_v59 = vld [vmem:[#allocation10 + $0x1f8] sm:$0xff]  ;;  %v299_v1 = vld [vmem:[#allocation10 + $0x1c0] sm:$0xff] }
  0xb3   :  { %4881 = vmatpush1.bf16.msra.mxu1 %v7145_v55  ;;  %4851 = vmatprep.subr.bf16.mxu0 %v7147_v57  ;;  %8493 = vst [vmem:[#allocation67_spill] sm:$0xff] %v7208_v30 }
  0xb4   :  { %4883 = vmatprep.subr.bf16.mxu1 %v7151_v2  ;;  %883 = vmatprep.mubr.f32.mxu0 %v8244_v0  ;;  %8496 = vst [vmem:[#allocation70_spill] sm:$0xff] %v7218_v11 }
  0xb5   :  { %954 = vmatprep.mubr.f32.mxu1 %v8244_v0  ;;  %v7211_v0 = vpack.c.bf16 %v289_v35, %v285_v34  ;;  %v293_v34 = vld [vmem:[#allocation10 + $0x190] sm:$0xff] }
  0xb6   :  { %4853 = vmatpush1.bf16.msra.mxu0 %v7157_v15  ;;  %v297_v35 = vld [vmem:[#allocation10 + $0x1b0] sm:$0xff] }
  0xb7   :  { %4885 = vmatpush1.bf16.msra.mxu1 %v7161_v17  ;;  %4855 = vmatprep.subr.bf16.mxu0 %v7163_v20  ;;  %8494 = vst [vmem:[#allocation68_spill] sm:$0xff] %v7211_v0 }
  0xb8   :  { %4887 = vmatprep.subr.bf16.mxu1 %v7166_v27 }
  0xba   :  { %4857 = vmatpush1.bf16.msra.mxu0 %v7171_v42 }
  0xbb   :  { %4889 = vmatpush1.bf16.msra.mxu1 %v7175_v43  ;;  %4859 = vmatprep.subr.bf16.mxu0 %v7177_v45 }
  0xbc   :  { %4891 = vmatprep.subr.bf16.mxu1 %v7180_v61 }
  0xbe   :  { %4861 = vmatpush1.bf16.msra.mxu0 %v7183_v12  ;;  %v234_v12 = vld [vmem:[#allocation8 + $0x1b8] sm:$0xff] }
  0xbf   :  { %4893 = vmatpush1.bf16.msra.mxu1 %v7187_v21  ;;  %4863 = vmatprep.subr.bf16.mxu0 %v7189_v24  ;;  %v232_v21 = vld [vmem:[#allocation8 + $0x1a8] sm:$0xff] }
  0xc0   :  { %4895 = vmatprep.subr.bf16.mxu1 %v7192_v31  ;;  %v7220_v31 = vpack.c.bf16 %v295_v8, %v291_v7  ;;  %v303_v7 = vld [vmem:[#allocation10 + $0x1e0] sm:$0xff] }
  0xc2   :  { %4865 = vmatpush1.bf16.msra.mxu0 %v7195_v37  ;;  %8497 = vst [vmem:[#allocation71_spill] sm:$0xff] %v7220_v31 }
  0xc3   :  { %4897 = vmatpush1.bf16.msra.mxu1 %v7199_v49  ;;  %4867 = vmatprep.subr.bf16.mxu0 %v7204_v5  ;;  %v292_v49 = vld [vmem:[#allocation10 + $0x188] sm:$0xff]  ;;  %v7232_v5 = vpack.c.bf16 %v303_v7, %v299_v1  ;;  %v183_v1 = vld [vmem:[#allocation8 + $0x20] sm:$0xff] }
  0xc4   :  { %4899 = vmatprep.subr.bf16.mxu1 %v7206_v25  ;;  %v7216_v37 = vpack.c.bf16 %v296_v51, %v292_v49  ;;  %v7223_v25 = vpack.c.bf16 %v297_v35, %v293_v34  ;;  %v304_v49 = vld [vmem:[#allocation10 + $0x1e8] sm:$0xff]  ;;  %v302_v51 = vld [vmem:[#allocation10 + $0x1d8] sm:$0xff]  ;;  %v301_v34 = vld [vmem:[#allocation10 + $0x1d0] sm:$0xff] }
  0xc5   :  { %v7230_v8 = vpack.c.bf16 %v306_v59, %v302_v51  ;;  %8501 = vst [vmem:[#allocation75_spill] sm:$0xff] %v7232_v5  ;;  %v305_v35 = vld [vmem:[#allocation10 + $0x1f0] sm:$0xff]  ;;  %v186_v51 = vld [vmem:[#allocation8 + $0x38] sm:$0xff]  ;;  %v179_v59 = vld [vmem:[#allocation8] sm:$0xff] }
  0xc6   :  { %4869 = vmatpush1.bf16.msra.mxu0 %v7208_v30  ;;  %8495 = vst [vmem:[#allocation69_spill] sm:$0xff] %v7216_v37  ;;  %8498 = vst [vmem:[#allocation72_spill] sm:$0xff] %v7223_v25 }
  0xc7   :  { %4901 = vmatpush1.bf16.msra.mxu1 %v7211_v0  ;;  %4871 = vmatprep.subr.bf16.mxu0 %v7216_v37  ;;  %v300_v0 = vld [vmem:[#allocation10 + $0x1c8] sm:$0xff]  ;;  %8500 = vst [vmem:[#allocation74_spill] sm:$0xff] %v7230_v8  ;;  %v7244_v37 = vpack.c.bf16 %v183_v1, %v179_v59  ;;  %v187_v59 = vld [vmem:[#allocation8 + $0x40] sm:$0xff] }
  0xc8   :  { %4903 = vmatprep.subr.bf16.mxu1 %v7218_v11  ;;  %v7228_v30 = vpack.c.bf16 %v304_v49, %v300_v0  ;;  %v7235_v11 = vpack.c.bf16 %v305_v35, %v301_v34  ;;  %v184_v0 = vld [vmem:[#allocation8 + $0x28] sm:$0xff]  ;;  %v182_v49 = vld [vmem:[#allocation8 + $0x18] sm:$0xff]  ;;  %v181_v34 = vld [vmem:[#allocation8 + $0x10] sm:$0xff] }
  0xc9   :  { %v7242_v7 = vpack.c.bf16 %v186_v51, %v182_v49  ;;  %8505 = vst [vmem:[#allocation79_spill] sm:$0xff] %v7244_v37  ;;  %v185_v35 = vld [vmem:[#allocation8 + $0x30] sm:$0xff]  ;;  %v194_v51 = vld [vmem:[#allocation8 + $0x78] sm:$0xff]  ;;  %v191_v1 = vld [vmem:[#allocation8 + $0x60] sm:$0xff] }
  0xca   :  { %4873 = vmatpush1.bf16.msra.mxu0 %v7220_v31  ;;  %8499 = vst [vmem:[#allocation73_spill] sm:$0xff] %v7228_v30  ;;  %8502 = vst [vmem:[#allocation76_spill] sm:$0xff] %v7235_v11 }
  0xcb   :  { %4905 = vmatpush1.bf16.msra.mxu1 %v7223_v25  ;;  %4875 = vmatprep.subr.bf16.mxu0 %v7228_v30  ;;  %v180_v25 = vld [vmem:[#allocation8 + $0x8] sm:$0xff]  ;;  %8504 = vst [vmem:[#allocation78_spill] sm:$0xff] %v7242_v7 }
  0xcc   :  { %4907 = vmatprep.subr.bf16.mxu1 %v7230_v8  ;;  %v7240_v31 = vpack.c.bf16 %v184_v0, %v180_v25  ;;  %v8506_v8 = vmov 0.0   ;;  %v188_v25 = vld [vmem:[#allocation8 + $0x48] sm:$0xff] }
  0xcd   :  { %v192_v0 = vld [vmem:[#allocation8 + $0x68] sm:$0xff] }
  0xce   :  { %4877 = vmatpush1.bf16.msra.mxu0 %v7232_v5  ;;  %8503 = vst [vmem:[#allocation77_spill] sm:$0xff] %v7240_v31  ;;  %v7248_v5 = vpack.c.bf16 %v185_v35, %v181_v34  ;;  %v7254_v49 = vpack.c.bf16 %v192_v0, %v188_v25  ;;  %v7258_v34 = vpack.c.bf16 %v191_v1, %v187_v59  ;;  %v189_v35 = vld [vmem:[#allocation8 + $0x50] sm:$0xff]  ;;  %v196_v25 = vld [vmem:[#allocation8 + $0x88] sm:$0xff]  ;;  %v195_v59 = vld [vmem:[#allocation8 + $0x80] sm:$0xff] }
  0xcf   :  { %4909 = vmatpush1.bf16.msra.mxu1 %v7235_v11  ;;  %4911 = vmatprep.subr.bf16.mxu0 %v7240_v31  ;;  %v190_v11 = vld [vmem:[#allocation8 + $0x58] sm:$0xff]  ;;  %v200_v0 = vld [vmem:[#allocation8 + $0xa8] sm:$0xff]  ;;  %v199_v1 = vld [vmem:[#allocation8 + $0xa0] sm:$0xff] }
  0xd0   :  { %8507 = vst [vmem:[#allocation80_spill] sm:$0xff] %v7248_v5  ;;  %4943 = vmatprep.subr.bf16.mxu1 %v7242_v7  ;;  %8508 = vst [vmem:[#allocation81_spill] sm:$0xff] %v7254_v49  ;;  %v7256_v31 = vpack.c.bf16 %v194_v51, %v190_v11  ;;  %v193_v7 = vld [vmem:[#allocation8 + $0x70] sm:$0xff]  ;;  %v7268_v11 = vpack.c.bf16 %v200_v0, %v196_v25  ;;  %v202_v51 = vld [vmem:[#allocation8 + $0xb8] sm:$0xff]  ;;  %v7272_v24 = vpack.c.bf16 %v199_v1, %v195_v59 }
  0xd1   :  { %884 = vmatmul.mubr.f32.vlgmr.msra.gmra.mrb[16].mxu0 %v8506_v8  ;;  %8510 = vst [vmem:[#allocation83_spill] sm:$0xff] %v7258_v34  ;;  %v203_v0 = vld [vmem:[#allocation8 + $0xc0] sm:$0xff] }
  0xd2   :  { %955 = vmatmul.mubr.f32.vlgmr.msra.gmra.mrb[16].mxu1 %v8506_v8  ;;  %4913 = vmatpush1.bf16.msra.mxu0 %v7244_v37  ;;  %8509 = vst [vmem:[#allocation82_spill] sm:$0xff] %v7256_v31  ;;  %v7263_v37 = vpack.c.bf16 %v193_v7, %v189_v35  ;;  %8512 = vst [vmem:[#allocation85_spill] sm:$0xff] %v7268_v11  ;;  %v197_v7 = vld [vmem:[#allocation8 + $0x90] sm:$0xff] }
  0xd3   :  { %4945 = vmatpush1.bf16.msra.mxu1 %v7248_v5  ;;  %1025 = vmatprep.mubr.f32.mxu0 %v8506_v8  ;;  %v198_v5 = vld [vmem:[#allocation8 + $0x98] sm:$0xff]  ;;  %8514 = vst [vmem:[#allocation87_spill] sm:$0xff] %v7272_v24  ;;  %v201_v35 = vld [vmem:[#allocation8 + $0xb0] sm:$0xff] }
  0xd4   :  { %1096 = vmatprep.mubr.f32.mxu1 %v8506_v8  ;;  %4915 = vmatprep.subr.bf16.mxu0 %v7254_v49  ;;  %8511 = vst [vmem:[#allocation84_spill] sm:$0xff] %v7263_v37  ;;  %v7270_v30 = vpack.c.bf16 %v202_v51, %v198_v5  ;;  %v208_v49 = vld [vmem:[#allocation8 + $0xe8] sm:$0xff]  ;;  %v210_v5 = vld [vmem:[#allocation8 + $0xf8] sm:$0xff]  ;;  %v207_v51 = vld [vmem:[#allocation8 + $0xe0] sm:$0xff] }
  0xd5   :  { %4947 = vmatprep.subr.bf16.mxu1 %v7256_v31  ;;  %v7275_v31 = vpack.c.bf16 %v201_v35, %v197_v7  ;;  %v7284_v1 = vpack.c.bf16 %v207_v51, %v203_v0  ;;  %v205_v7 = vld [vmem:[#allocation8 + $0xd0] sm:$0xff] }
  0xd6   :  { %4917 = vmatpush1.bf16.msra.mxu0 %v7258_v34  ;;  %8513 = vst [vmem:[#allocation86_spill] sm:$0xff] %v7270_v30  ;;  %v204_v34 = vld [vmem:[#allocation8 + $0xc8] sm:$0xff]  ;;  %v209_v35 = vld [vmem:[#allocation8 + $0xf0] sm:$0xff] }
  0xd7   :  { %4949 = vmatpush1.bf16.msra.mxu1 %v7263_v37  ;;  %4919 = vmatprep.subr.bf16.mxu0 %v7268_v11  ;;  %8515 = vst [vmem:[#allocation88_spill] sm:$0xff] %v7275_v31  ;;  %v206_v37 = vld [vmem:[#allocation8 + $0xd8] sm:$0xff]  ;;  %v7280_v25 = vpack.c.bf16 %v208_v49, %v204_v34  ;;  %8518 = vst [vmem:[#allocation91_spill] sm:$0xff] %v7284_v1  ;;  %v216_v11 = vld [vmem:[#allocation8 + $0x128] sm:$0xff] }
  0xd8   :  { %4951 = vmatprep.subr.bf16.mxu1 %v7270_v30  ;;  %v7282_v59 = vpack.c.bf16 %v210_v5, %v206_v37  ;;  %v7287_v30 = vpack.c.bf16 %v209_v35, %v205_v7  ;;  %v218_v37 = vld [vmem:[#allocation8 + $0x138] sm:$0xff]  ;;  %v211_v34 = vld [vmem:[#allocation8 + $0x100] sm:$0xff]  ;;  %v213_v7 = vld [vmem:[#allocation8 + $0x110] sm:$0xff] }
  0xd9   :  { %8516 = vst [vmem:[#allocation89_spill] sm:$0xff] %v7280_v25  ;;  %v215_v5 = vld [vmem:[#allocation8 + $0x120] sm:$0xff]  ;;  %v217_v35 = vld [vmem:[#allocation8 + $0x130] sm:$0xff] }
  0xda   :  { %4921 = vmatpush1.bf16.msra.mxu0 %v7272_v24  ;;  %8517 = vst [vmem:[#allocation90_spill] sm:$0xff] %v7282_v59  ;;  %8519 = vst [vmem:[#allocation92_spill] sm:$0xff] %v7287_v30  ;;  %v212_v24 = vld [vmem:[#allocation8 + $0x108] sm:$0xff]  ;;  %v7296_v51 = vpack.c.bf16 %v215_v5, %v211_v34 }
  0xdb   :  { %4953 = vmatpush1.bf16.msra.mxu1 %v7275_v31  ;;  %4923 = vmatprep.subr.bf16.mxu0 %v7280_v25  ;;  %v214_v31 = vld [vmem:[#allocation8 + $0x118] sm:$0xff]  ;;  %v7292_v49 = vpack.c.bf16 %v216_v11, %v212_v24  ;;  %v224_v25 = vld [vmem:[#allocation8 + $0x168] sm:$0xff]  ;;  %v219_v11 = vld [vmem:[#allocation8 + $0x140] sm:$0xff] }
  0xdc   :  { %4955 = vmatprep.subr.bf16.mxu1 %v7282_v59  ;;  %v7294_v0 = vpack.c.bf16 %v218_v37, %v214_v31  ;;  %8522 = vst [vmem:[#allocation95_spill] sm:$0xff] %v7296_v51  ;;  %v7299_v59 = vpack.c.bf16 %v217_v35, %v213_v7  ;;  %v226_v31 = vld [vmem:[#allocation8 + $0x178] sm:$0xff]  ;;  %v223_v37 = vld [vmem:[#allocation8 + $0x160] sm:$0xff]  ;;  %v221_v7 = vld [vmem:[#allocation8 + $0x150] sm:$0xff] }
  0xdd   :  { %8520 = vst [vmem:[#allocation93_spill] sm:$0xff] %v7292_v49  ;;  %v7308_v5 = vpack.c.bf16 %v223_v37, %v219_v11  ;;  %v225_v35 = vld [vmem:[#allocation8 + $0x170] sm:$0xff] }
  0xde   :  { %4925 = vmatpush1.bf16.msra.mxu0 %v7284_v1  ;;  %8521 = vst [vmem:[#allocation94_spill] sm:$0xff] %v7294_v0  ;;  %8523 = vst [vmem:[#allocation96_spill] sm:$0xff] %v7299_v59  ;;  %v220_v1 = vld [vmem:[#allocation8 + $0x148] sm:$0xff]  ;;  %v229_v11 = vld [vmem:[#allocation8 + $0x190] sm:$0xff] }
  0xdf   :  { %4957 = vmatpush1.bf16.msra.mxu1 %v7287_v30  ;;  %4927 = vmatprep.subr.bf16.mxu0 %v7292_v49  ;;  %v222_v30 = vld [vmem:[#allocation8 + $0x158] sm:$0xff]  ;;  %v7304_v24 = vpack.c.bf16 %v224_v25, %v220_v1  ;;  %8526 = vst [vmem:[#allocation99_spill] sm:$0xff] %v7308_v5  ;;  %v228_v49 = vld [vmem:[#allocation8 + $0x188] sm:$0xff] }
  0xe0   :  { %4959 = vmatprep.subr.bf16.mxu1 %v7294_v0  ;;  %v7306_v34 = vpack.c.bf16 %v226_v31, %v222_v30  ;;  %v7311_v0 = vpack.c.bf16 %v225_v35, %v221_v7  ;;  %v7314_v25 = vpack.c.bf16 %v232_v21, %v228_v49  ;;  %v227_v30 = vld [vmem:[#allocation8 + $0x180] sm:$0xff]  ;;  %v233_v7 = vld [vmem:[#allocation8 + $0x1b0] sm:$0xff]  ;;  %v236_v35 = vld [vmem:[#allocation8 + $0x1c8] sm:$0xff] }
  0xe1   :  { %8524 = vst [vmem:[#allocation97_spill] sm:$0xff] %v7304_v24  ;;  %v231_v31 = vld [vmem:[#allocation8 + $0x1a0] sm:$0xff]  ;;  %v7324_v21 = vpack.c.bf16 %v233_v7, %v229_v11  ;;  %v238_v49 = vld [vmem:[#allocation8 + $0x1d8] sm:$0xff] }
  0xe2   :  { %4929 = vmatpush1.bf16.msra.mxu0 %v7296_v51  ;;  %8525 = vst [vmem:[#allocation98_spill] sm:$0xff] %v7306_v34  ;;  %8527 = vst [vmem:[#allocation100_spill] sm:$0xff] %v7311_v0  ;;  %v230_v51 = vld [vmem:[#allocation8 + $0x198] sm:$0xff]  ;;  %v7320_v37 = vpack.c.bf16 %v231_v31, %v227_v30  ;;  %v241_v30 = vld [vmem:[#allocation8 + $0x1f0] sm:$0xff] }
  0xe3   :  { %4961 = vmatpush1.bf16.msra.mxu1 %v7299_v59  ;;  %4931 = vmatprep.subr.bf16.mxu0 %v7304_v24  ;;  %8528 = vst [vmem:[#allocation101_spill] sm:$0xff] %v7314_v25  ;;  %v7316_v1 = vpack.c.bf16 %v234_v12, %v230_v51  ;;  %v240_v24 = vld [vmem:[#allocation8 + $0x1e8] sm:$0xff]  ;;  %8531 = vst [vmem:[#allocation104_spill] sm:$0xff] %v7324_v21  ;;  %v242_v51 = vld [vmem:[#allocation8 + $0x1f8] sm:$0xff] }
  0xe4   :  { %4963 = vmatprep.subr.bf16.mxu1 %v7306_v34  ;;  %8530 = vst [vmem:[#allocation103_spill] sm:$0xff] %v7320_v37  ;;  %v7326_v12 = vpack.c.bf16 %v240_v24, %v236_v35  ;;  %v235_v34 = vld [vmem:[#allocation8 + $0x1c0] sm:$0xff]  ;;  %v7328_v59 = vpack.c.bf16 %v242_v51, %v238_v49  ;;  %v309_v24 = vlaneseq }
  0xe5   :  { %8529 = vst [vmem:[#allocation102_spill] sm:$0xff] %v7316_v1 }
  0xe6   :  { %4933 = vmatpush1.bf16.msra.mxu0 %v7308_v5  ;;  %8532 = vst [vmem:[#allocation105_spill] sm:$0xff] %v7326_v12  ;;  %8533 = vst [vmem:[#allocation106_spill] sm:$0xff] %v7328_v59  ;;  %v239_v5 = vld [vmem:[#allocation8 + $0x1e0] sm:$0xff]  ;;  %v7342_v11 = vshrl.u32 %v309_v24, 7 }
  0xe7   :  { %4965 = vmatpush1.bf16.msra.mxu1 %v7311_v0  ;;  %4935 = vmatprep.subr.bf16.mxu0 %v7314_v25  ;;  %v237_v0 = vld [vmem:[#allocation8 + $0x1d0] sm:$0xff]  ;;  %v7332_v31 = vpack.c.bf16 %v239_v5, %v235_v34 }
  0xe8   :  { %4967 = vmatprep.subr.bf16.mxu1 %v7316_v1  ;;  %v7334_v25 = vpack.c.bf16 %v241_v30, %v237_v0  ;;  %v8342_v34 = vsub.s32 0, %v7342_v11  ;;  %v401_v0 = vld [vmem:[%s8237_s3] sm:$0xf]  ;;  %v8343_v5 = vsub.s32 1, %v7342_v11  ;;  %v8350_v51 = vsub.s32 3, %v7342_v11 }
  0xe9   :  { %8534 = vst [vmem:[#allocation107_spill] sm:$0xff] %v7332_v31 }
  0xea   :  { %4937 = vmatpush1.bf16.msra.mxu0 %v7320_v37  ;;  %8535 = vst [vmem:[#allocation108_spill] sm:$0xff] %v7334_v25  ;;  %v7351_v7 = vrot.slane %v401_v0, %v8342_v34  ;;  %v7355_v35 = vrot.slane %v401_v0, %v8343_v5  ;;  %v7362_v34 = vrot.slane %v401_v0, %v8350_v51  ;;  %v8359_v5 = vsub.s32 2, %v7342_v11 }
  0xeb   :  { %4969 = vmatpush1.bf16.msra.mxu1 %v7324_v21  ;;  %4939 = vmatprep.subr.bf16.mxu0 %v7326_v12 }
  0xec   :  { %4971 = vmatprep.subr.bf16.mxu1 %v7328_v59  ;;  %8536 = vst [vmem:[#allocation109_spill] sm:$0xff] %v7351_v7  ;;  %8537 = vst [vmem:[#allocation110_spill] sm:$0xff] %v7355_v35 }
  0xed   :  { %8538 = vst [vmem:[#allocation111_spill] sm:$0xff] %v7362_v34 }
  0xee   :  { %4941 = vmatpush1.bf16.msra.mxu0 %v7332_v31 }
  0xef   :  { %4973 = vmatpush1.bf16.msra.mxu1 %v7334_v25  ;;  %4975 = vmatprep.subr.bf16.mxu0 %v7028_v38 }
  0xf0   :  { %5007 = vmatprep.subr.bf16.mxu1 %v7030_v41 }
 0x184   :  { %v715_v49 = vpop.f32.mrb[0].mxu0 }
 0x185   :  { %v6342_v30 = vadd.f32 %v715_v49, %v7351_v7  ;;  %v786_v24 = vpop.f32.mrb[0].mxu1  ;;  %v717_v41 = vpop.f32.mrb[1].mxu0  ;;  %v7368_v49 = vrot.slane %v401_v0, %v8359_v5  ;;  %v8554_v5 = vld [vmem:[#allocation74_spill] sm:$0xff] }
 0x186   :  { %v6343_v38 = vadd.f32 %v717_v41, %v7355_v35  ;;  %v788_v25 = vpop.f32.mrb[1].mxu1 }
 0x187   :  { %v4617_v31 = vmul.f32 -1.442695, %v6342_v30  ;;  %v6359_v12 = vadd.f32 %v788_v25, %v7362_v34  ;;  %v6358_v41 = vadd.f32 %v786_v24, %v7368_v49 }
 0x188   :  { %v4618_v59 = vmul.f32 -1.442695, %v6343_v38 }
 0x189   :  { %6452 = vpow2.f32 %v4617_v31  ;;  %v4619_v21 = vmul.f32 -1.442695, %v6359_v12 }
 0x18a   :  { %6454 = vpow2.f32 %v4618_v59 }
 0x18b   :  { %6456 = vpow2.f32 %v4619_v21  ;;  %v8540_v21 = vld [vmem:[#allocation60_spill] sm:$0xff] }
 0x18c   :  { %6458 = vtanh.f32 %v6358_v41  ;;  %v8545_v41 = vld [vmem:[#allocation65_spill] sm:$0xff] }
 0x193   :  { %v6453_v37 = vpop.eup %6452 }
 0x194   :  { %v6455_v30 = vpop.eup %6454  ;;  %v798_v38 = vadd.f32 1.0, %v6453_v37 }
 0x195   :  { %v804_v51 = vadd.f32 1.0, %v6455_v30  ;;  %v6457_v31 = vpop.eup %6456  ;;  %v8546_v30 = vld [vmem:[#allocation66_spill] sm:$0xff] }
 0x196   :  { %6460 = vrcp.f32 %v798_v38  ;;  %v6459_v1 = vpop.eup %6458  ;;  %v811_v34 = vadd.f32 1.0, %v6457_v31  ;;  %v8547_v38 = vld [vmem:[#allocation67_spill] sm:$0xff]  ;;  %v8548_v31 = vld [vmem:[#allocation68_spill] sm:$0xff] }
 0x197   :  { %6462 = vrcp.f32 %v804_v51  ;;  %v8544_v51 = vld [vmem:[#allocation64_spill] sm:$0xff] }
 0x198   :  { %6464 = vrcp.f32 %v811_v34  ;;  %v8541_v34 = vld [vmem:[#allocation61_spill] sm:$0xff] }
 0x1a0   :  { %v6461_v59 = vpop.eup %6460 }
 0x1a1   :  { %v6463_v35 = vpop.eup %6462  ;;  %v815_v25 = vmul.f32 %v6461_v59, %v6459_v1  ;;  %v8539_v1 = vld [vmem:[#allocation59_spill] sm:$0xff]  ;;  %v8549_v59 = vld [vmem:[#allocation69_spill] sm:$0xff] }
 0x1a2   :  { %v814_v7 = vmul.f32 0.0, %v6463_v35  ;;  %v6465_v12 = vpop.eup %6464  ;;  %v8543_v35 = vld [vmem:[#allocation63_spill] sm:$0xff] }
 0x1a4   :  { %v7371_v0 = vadd.f32 %v815_v25, %v814_v7  ;;  %v8542_v7 = vld [vmem:[#allocation62_spill] sm:$0xff] }
 0x1a5   :  { %v8550_v25 = vld [vmem:[#allocation70_spill] sm:$0xff] }
 0x1a6   :  { %6466 = vtanh.f32 %v7371_v0 }
 0x1b0   :  { %v6467_v24 = vpop.eup %6466 }
 0x1b1   :  { %v818_v37 = vmul.f32 %v6467_v24, %v6465_v12  ;;  %v8551_v12 = vld [vmem:[#allocation71_spill] sm:$0xff]  ;;  %v8552_v24 = vld [vmem:[#allocation72_spill] sm:$0xff] }
 0x1b3   :  { %1026 = vmatmul.mubr.f32.vlgmr.msra.gmra.mrb[16].mxu0 %v818_v37  ;;  %1097 = vmatmul.mubr.f32.vlgmr.msra.gmra.mrb[16].mxu1 %v818_v37 }
 0x1b4   :  { %4977 = vmatpush1.bf16.msra.mxu0 %v7032_v47  ;;  %5009 = vmatpush1.bf16.msra.mxu1 %v7035_v50 }
 0x1b5   :  { %4979 = vmatprep.subr.bf16.mxu0 %v7038_v53  ;;  %5011 = vmatprep.subr.bf16.mxu1 %v7040_v56 }
 0x1b6   :  { %1195 = vmatprep.mubr.f32.mxu0 %v8506_v8  ;;  %1266 = vmatprep.mubr.f32.mxu1 %v8506_v8 }
 0x1b8   :  { %4981 = vmatpush1.bf16.msra.mxu0 %v7043_v60  ;;  %5013 = vmatpush1.bf16.msra.mxu1 %v7047_v63 }
 0x1b9   :  { %4983 = vmatprep.subr.bf16.mxu0 %v7051_v3  ;;  %5015 = vmatprep.subr.bf16.mxu1 %v7054_v6 }
 0x1bc   :  { %4985 = vmatpush1.bf16.msra.mxu0 %v7057_v10  ;;  %5017 = vmatpush1.bf16.msra.mxu1 %v7061_v13 }
 0x1bd   :  { %4987 = vmatprep.subr.bf16.mxu0 %v7065_v16  ;;  %5019 = vmatprep.subr.bf16.mxu1 %v7068_v19 }
 0x1c0   :  { %4989 = vmatpush1.bf16.msra.mxu0 %v7071_v23  ;;  %5021 = vmatpush1.bf16.msra.mxu1 %v7075_v26 }
 0x1c1   :  { %4991 = vmatprep.subr.bf16.mxu0 %v7079_v29  ;;  %5023 = vmatprep.subr.bf16.mxu1 %v7082_v32 }
 0x1c4   :  { %4993 = vmatpush1.bf16.msra.mxu0 %v7085_v36  ;;  %5025 = vmatpush1.bf16.msra.mxu1 %v7089_v40 }
 0x1c5   :  { %4995 = vmatprep.subr.bf16.mxu0 %v7093_v44  ;;  %5027 = vmatprep.subr.bf16.mxu1 %v7096_v48 }
 0x1c8   :  { %4997 = vmatpush1.bf16.msra.mxu0 %v7099_v54  ;;  %5029 = vmatpush1.bf16.msra.mxu1 %v7103_v58 }
 0x1c9   :  { %4999 = vmatprep.subr.bf16.mxu0 %v7107_v62  ;;  %5031 = vmatprep.subr.bf16.mxu1 %v7110_v4 }
 0x1cc   :  { %5001 = vmatpush1.bf16.msra.mxu0 %v7113_v9  ;;  %5033 = vmatpush1.bf16.msra.mxu1 %v7117_v14 }
 0x1cd   :  { %5003 = vmatprep.subr.bf16.mxu0 %v7121_v18  ;;  %5035 = vmatprep.subr.bf16.mxu1 %v7124_v22 }
 0x1d0   :  { %5005 = vmatpush1.bf16.msra.mxu0 %v7127_v28  ;;  %5037 = vmatpush1.bf16.msra.mxu1 %v7131_v33 }
 0x1d1   :  { %5039 = vmatprep.subr.bf16.mxu0 %v7135_v39  ;;  %5071 = vmatprep.subr.bf16.mxu1 %v7138_v46 }
 0x1d3   :  { %1196 = vmatmul.mubr.f32.vlgmr.msra.gmra.mrb[2].mxu0 %v818_v37  ;;  %1267 = vmatmul.mubr.f32.vlgmr.msra.gmra.mrb[2].mxu1 %v818_v37  ;;  %v8553_v37 = vld [vmem:[#allocation73_spill] sm:$0xff] }
 0x1d4   :  { %5041 = vmatpush1.bf16.msra.mxu0 %v7141_v52  ;;  %5073 = vmatpush1.bf16.msra.mxu1 %v7145_v55 }
 0x1d5   :  { %5043 = vmatprep.subr.bf16.mxu0 %v7147_v57  ;;  %5075 = vmatprep.subr.bf16.mxu1 %v7151_v2 }
 0x1d6   :  { %1365 = vmatprep.mubr.f32.mxu0 %v8506_v8  ;;  %1436 = vmatprep.mubr.f32.mxu1 %v8506_v8 }
 0x1d8   :  { %5045 = vmatpush1.bf16.msra.mxu0 %v7157_v15  ;;  %5077 = vmatpush1.bf16.msra.mxu1 %v7161_v17 }
 0x1d9   :  { %5047 = vmatprep.subr.bf16.mxu0 %v7163_v20  ;;  %5079 = vmatprep.subr.bf16.mxu1 %v7166_v27 }
 0x1dc   :  { %5049 = vmatpush1.bf16.msra.mxu0 %v7171_v42  ;;  %5081 = vmatpush1.bf16.msra.mxu1 %v7175_v43 }
 0x1dd   :  { %5051 = vmatprep.subr.bf16.mxu0 %v7177_v45  ;;  %5083 = vmatprep.subr.bf16.mxu1 %v7180_v61 }
 0x1e0   :  { %5053 = vmatpush1.bf16.msra.mxu0 %v8539_v1  ;;  %5085 = vmatpush1.bf16.msra.mxu1 %v8540_v21 }
 0x1e1   :  { %5055 = vmatprep.subr.bf16.mxu0 %v8541_v34  ;;  %5087 = vmatprep.subr.bf16.mxu1 %v8542_v7  ;;  %v8563_v34 = vsub.s32 3, %v7342_v11 }
 0x1e4   :  { %5057 = vmatpush1.bf16.msra.mxu0 %v8543_v35  ;;  %5089 = vmatpush1.bf16.msra.mxu1 %v8544_v51  ;;  %v8555_v51 = vld [vmem:[#allocation75_spill] sm:$0xff] }
 0x1e5   :  { %5059 = vmatprep.subr.bf16.mxu0 %v8545_v41  ;;  %5091 = vmatprep.subr.bf16.mxu1 %v8546_v30  ;;  %v8556_v41 = vld [vmem:[#allocation76_spill] sm:$0xff]  ;;  %v8557_v30 = vld [vmem:[#allocation77_spill] sm:$0xff] }
 0x1e8   :  { %5061 = vmatpush1.bf16.msra.mxu0 %v8547_v38  ;;  %5093 = vmatpush1.bf16.msra.mxu1 %v8548_v31  ;;  %v8558_v38 = vld [vmem:[#allocation78_spill] sm:$0xff] }
 0x1e9   :  { %5063 = vmatprep.subr.bf16.mxu0 %v8549_v59  ;;  %5095 = vmatprep.subr.bf16.mxu1 %v8550_v25  ;;  %v307_v25 = vld [vmem:[%s8240_s6] sm:$0xf] }
 0x1ea   :  { %v7457_v21 = vrot.slane %v307_v25, %v8563_v34 }
 0x1ec   :  { %5065 = vmatpush1.bf16.msra.mxu0 %v8551_v12  ;;  %5097 = vmatpush1.bf16.msra.mxu1 %v8552_v24  ;;  %v8559_v12 = vsub.s32 0, %v7342_v11  ;;  %8564 = vst [vmem:[#allocation114_spill] sm:$0xff] %v7457_v21 }
 0x1ed   :  { %5067 = vmatprep.subr.bf16.mxu0 %v8553_v37  ;;  %5099 = vmatprep.subr.bf16.mxu1 %v8554_v5  ;;  %v8561_v37 = vsub.s32 1, %v7342_v11 }
 0x1ee   :  { %v7447_v59 = vrot.slane %v307_v25, %v8559_v12 }
 0x1ef   :  { %v7451_v24 = vrot.slane %v307_v25, %v8561_v37  ;;  %v8565_v37 = vsub.s32 2, %v7342_v11 }
 0x1f0   :  { %5069 = vmatpush1.bf16.msra.mxu0 %v8555_v51  ;;  %5101 = vmatpush1.bf16.msra.mxu1 %v8556_v41  ;;  %8560 = vst [vmem:[#allocation112_spill] sm:$0xff] %v7447_v59 }
 0x1f1   :  { %5103 = vmatprep.subr.bf16.mxu0 %v8557_v30  ;;  %5135 = vmatprep.subr.bf16.mxu1 %v8558_v38  ;;  %8562 = vst [vmem:[#allocation113_spill] sm:$0xff] %v7451_v24  ;;  %v7462_v1 = vrot.slane %v307_v25, %v8565_v37 }
 0x1f3   :  { %8566 = vst [vmem:[#allocation115_spill] sm:$0xff] %v7462_v1 }
 0x286   :  { %v1027_v5 = vpop.f32.mrb[16].mxu0  ;;  %v1098_v51 = vpop.f32.mrb[16].mxu1 }
 0x287   :  { %v1103_v41 = vadd.f32 %v1027_v5, %v7447_v59  ;;  %v1029_v31 = vpop.f32.mrb[17].mxu0  ;;  %v1100_v30 = vpop.f32.mrb[17].mxu1  ;;  %v1105_v5 = vadd.f32 %v1098_v51, %v7462_v1  ;;  %v8568_v51 = vld [vmem:[#allocation109_spill] sm:$0xff] }
 0x288   :  { %v1104_v38 = vadd.f32 %v1029_v31, %v7451_v24  ;;  %v1106_v12 = vadd.f32 %v1100_v30, %v7457_v21 }
 0x289   :  { %v4620_v35 = vmul.f32 -1.442695, %v1103_v41 }
 0x28a   :  { %v4621_v7 = vmul.f32 -1.442695, %v1104_v38  ;;  %v4622_v61 = vmul.f32 -1.442695, %v1106_v12 }
 0x28b   :  { %6468 = vpow2.f32 %v4620_v35 }
 0x28c   :  { %6470 = vpow2.f32 %v4621_v7 }
 0x28d   :  { %6472 = vpow2.f32 %v4622_v61 }
 0x28e   :  { %6474 = vtanh.f32 %v1105_v5 }
 0x295   :  { %v6469_v59 = vpop.eup %6468 }
 0x296   :  { %v6471_v45 = vpop.eup %6470  ;;  %v1110_v31 = vadd.f32 1.0, %v6469_v59 }
 0x297   :  { %v1116_v41 = vadd.f32 1.0, %v6471_v45  ;;  %v6473_v34 = vpop.eup %6472  ;;  %v8569_v45 = vld [vmem:[#allocation110_spill] sm:$0xff] }
 0x298   :  { %6476 = vrcp.f32 %v1110_v31  ;;  %v6475_v35 = vpop.eup %6474  ;;  %v1123_v21 = vadd.f32 1.0, %v6473_v34 }
 0x299   :  { %6478 = vrcp.f32 %v1116_v41 }
 0x29a   :  { %6480 = vrcp.f32 %v1123_v21 }
 0x2a2   :  { %v6477_v7 = vpop.eup %6476 }
 0x2a3   :  { %v6479_v38 = vpop.eup %6478  ;;  %v1127_v30 = vmul.f32 %v6477_v7, %v6475_v35  ;;  %v8570_v35 = vld [vmem:[#allocation111_spill] sm:$0xff] }
 0x2a4   :  { %v1126_v11 = vmul.f32 0.0, %v6479_v38  ;;  %v6481_v7 = vpop.eup %6480 }
 0x2a6   :  { %v7465_v25 = vadd.f32 %v1127_v30, %v1126_v11  ;;  %v1197_v12 = vpop.f32.mrb[2].mxu0  ;;  %v1268_v37 = vpop.f32.mrb[2].mxu1 }
 0x2a7   :  { %v6344_v1 = vadd.f32 %v1197_v12, %v8568_v51  ;;  %v1199_v59 = vpop.f32.mrb[3].mxu0  ;;  %v1270_v61 = vpop.f32.mrb[3].mxu1  ;;  %v6360_v11 = vadd.f32 %v1268_v37, %v7368_v49  ;;  %v8575_v37 = vld [vmem:[#allocation83_spill] sm:$0xff] }
 0x2a8   :  { %8567 = vst [vmem:[#allocation116_spill] sm:$0xff] %v7465_v25  ;;  %6482 = vtanh.f32 %v7465_v25  ;;  %v6345_v5 = vadd.f32 %v1199_v59, %v8569_v45  ;;  %v6361_v34 = vadd.f32 %v1270_v61, %v8570_v35  ;;  %v8571_v25 = vld [vmem:[#allocation79_spill] sm:$0xff]  ;;  %v8574_v61 = vld [vmem:[#allocation82_spill] sm:$0xff] }
 0x2a9   :  { %v4623_v31 = vmul.f32 -1.442695, %v6344_v1  ;;  %v8572_v1 = vld [vmem:[#allocation80_spill] sm:$0xff] }
 0x2aa   :  { %v4624_v41 = vmul.f32 -1.442695, %v6345_v5  ;;  %v4625_v30 = vmul.f32 -1.442695, %v6361_v34  ;;  %v8573_v5 = vld [vmem:[#allocation81_spill] sm:$0xff]  ;;  %v8579_v34 = vld [vmem:[#allocation87_spill] sm:$0xff] }
 0x2ab   :  { %6484 = vpow2.f32 %v4623_v31  ;;  %v8577_v31 = vld [vmem:[#allocation85_spill] sm:$0xff] }
 0x2ac   :  { %6486 = vpow2.f32 %v4624_v41  ;;  %v8578_v41 = vld [vmem:[#allocation86_spill] sm:$0xff] }
 0x2ad   :  { %6488 = vpow2.f32 %v4625_v30 }
 0x2ae   :  { %6490 = vtanh.f32 %v6360_v11 }
 0x2b2   :  { %v6483_v38 = vpop.eup %6482 }
 0x2b3   :  { %v1130_v21 = vmul.f32 %v6483_v38, %v6481_v7  ;;  %v8580_v7 = vld [vmem:[#allocation88_spill] sm:$0xff]  ;;  %v8581_v38 = vld [vmem:[#allocation89_spill] sm:$0xff] }
 0x2b5   :  { %v6485_v24 = vpop.eup %6484  ;;  %1366 = vmatmul.mubr.f32.vlgmr.msra.gmra.mrb[18].mxu0 %v1130_v21  ;;  %1437 = vmatmul.mubr.f32.vlgmr.msra.gmra.mrb[18].mxu1 %v1130_v21 }
 0x2b6   :  { %v6487_v12 = vpop.eup %6486  ;;  %v1280_v51 = vadd.f32 1.0, %v6485_v24  ;;  %5105 = vmatpush1.bf16.msra.mxu0 %v8571_v25  ;;  %5137 = vmatpush1.bf16.msra.mxu1 %v8572_v1  ;;  %v8576_v24 = vld [vmem:[#allocation84_spill] sm:$0xff] }
 0x2b7   :  { %v1286_v59 = vadd.f32 1.0, %v6487_v12  ;;  %5107 = vmatprep.subr.bf16.mxu0 %v8573_v5  ;;  %5139 = vmatprep.subr.bf16.mxu1 %v8574_v61  ;;  %v6489_v30 = vpop.eup %6488  ;;  %v8583_v12 = vld [vmem:[#allocation91_spill] sm:$0xff]  ;;  %v8585_v61 = vld [vmem:[#allocation93_spill] sm:$0xff] }
 0x2b8   :  { %6492 = vrcp.f32 %v1280_v51  ;;  %1507 = vmatprep.mubr.f32.mxu0 %v8506_v8  ;;  %1578 = vmatprep.mubr.f32.mxu1 %v8506_v8  ;;  %v8582_v51 = vld [vmem:[#allocation90_spill] sm:$0xff]  ;;  %v6491_v11 = vpop.eup %6490  ;;  %v8589_v5 = vld [vmem:[#allocation97_spill] sm:$0xff] }
 0x2b9   :  { %6494 = vrcp.f32 %v1286_v59  ;;  %v8584_v59 = vld [vmem:[#allocation92_spill] sm:$0xff] }
 0x2ba   :  { %5109 = vmatpush1.bf16.msra.mxu0 %v8575_v37  ;;  %5141 = vmatpush1.bf16.msra.mxu1 %v8576_v24 }
 0x2bb   :  { %5111 = vmatprep.subr.bf16.mxu0 %v8577_v31  ;;  %5143 = vmatprep.subr.bf16.mxu1 %v8578_v41  ;;  %v1293_v31 = vadd.f32 1.0, %v6489_v30  ;;  %v8586_v41 = vld [vmem:[#allocation94_spill] sm:$0xff]  ;;  %v8591_v30 = vld [vmem:[#allocation99_spill] sm:$0xff] }
 0x2bd   :  { %6496 = vrcp.f32 %v1293_v31  ;;  %v8598_v31 = vld [vmem:[#allocation106_spill] sm:$0xff] }
 0x2be   :  { %5113 = vmatpush1.bf16.msra.mxu0 %v8579_v34  ;;  %5145 = vmatpush1.bf16.msra.mxu1 %v8580_v7 }
 0x2bf   :  { %5115 = vmatprep.subr.bf16.mxu0 %v8581_v38  ;;  %5147 = vmatprep.subr.bf16.mxu1 %v8582_v51  ;;  %v8587_v38 = vld [vmem:[#allocation95_spill] sm:$0xff]  ;;  %v8588_v51 = vld [vmem:[#allocation96_spill] sm:$0xff] }
 0x2c2   :  { %v6493_v21 = vpop.eup %6492  ;;  %5117 = vmatpush1.bf16.msra.mxu0 %v8583_v12  ;;  %5149 = vmatpush1.bf16.msra.mxu1 %v8584_v59  ;;  %v8590_v12 = vld [vmem:[#allocation98_spill] sm:$0xff] }
 0x2c3   :  { %v6495_v24 = vpop.eup %6494  ;;  %v1297_v37 = vmul.f32 %v6493_v21, %v6491_v11  ;;  %5119 = vmatprep.subr.bf16.mxu0 %v8585_v61  ;;  %5151 = vmatprep.subr.bf16.mxu1 %v8586_v41  ;;  %v8592_v11 = vld [vmem:[#allocation100_spill] sm:$0xff]  ;;  %v8593_v21 = vld [vmem:[#allocation101_spill] sm:$0xff] }
 0x2c4   :  { %v1296_v7 = vmul.f32 %v6495_v24, %v7371_v0  ;;  %v8594_v0 = vld [vmem:[#allocation102_spill] sm:$0xff]  ;;  %v8596_v24 = vld [vmem:[#allocation104_spill] sm:$0xff] }
 0x2c6   :  { %v7491_v34 = vadd.f32 %v1297_v37, %v1296_v7  ;;  %5121 = vmatpush1.bf16.msra.mxu0 %v8587_v38  ;;  %5153 = vmatpush1.bf16.msra.mxu1 %v8588_v51  ;;  %v8595_v37 = vld [vmem:[#allocation103_spill] sm:$0xff]  ;;  %v8597_v7 = vld [vmem:[#allocation105_spill] sm:$0xff]  ;;  %v8600_v38 = vld [vmem:[#allocation108_spill] sm:$0xff] }
 0x2c7   :  { %5123 = vmatprep.subr.bf16.mxu0 %v8589_v5  ;;  %5155 = vmatprep.subr.bf16.mxu1 %v8590_v12  ;;  %v6497_v5 = vpop.eup %6496  ;;  %v8599_v51 = vld [vmem:[#allocation107_spill] sm:$0xff] }
 0x2c8   :  { %6498 = vtanh.f32 %v7491_v34 }
 0x2ca   :  { %5125 = vmatpush1.bf16.msra.mxu0 %v8591_v30  ;;  %5157 = vmatpush1.bf16.msra.mxu1 %v8592_v11  ;;  %v8601_v11 = vld [vmem:[#allocation19_spill] sm:$0xff] }
 0x2cb   :  { %5127 = vmatprep.subr.bf16.mxu0 %v8593_v21  ;;  %5159 = vmatprep.subr.bf16.mxu1 %v8594_v0  ;;  %v8602_v21 = vld [vmem:[#allocation20_spill] sm:$0xff] }
 0x2ce   :  { %5129 = vmatpush1.bf16.msra.mxu0 %v8595_v37  ;;  %5161 = vmatpush1.bf16.msra.mxu1 %v8596_v24 }
 0x2cf   :  { %5131 = vmatprep.subr.bf16.mxu0 %v8597_v7  ;;  %5163 = vmatprep.subr.bf16.mxu1 %v8598_v31 }
 0x2d2   :  { %v6499_v12 = vpop.eup %6498  ;;  %5133 = vmatpush1.bf16.msra.mxu0 %v8599_v51  ;;  %5165 = vmatpush1.bf16.msra.mxu1 %v8600_v38 }
 0x2d3   :  { %v1300_v30 = vmul.f32 %v6499_v12, %v6497_v5  ;;  %5167 = vmatprep.subr.bf16.mxu0 %v8601_v11  ;;  %5199 = vmatprep.subr.bf16.mxu1 %v8602_v21  ;;  %v8603_v5 = vld [vmem:[#allocation57_spill] sm:$0xff]  ;;  %v8604_v12 = vld [vmem:[#allocation58_spill] sm:$0xff] }
 0x2d5   :  { %1508 = vmatmul.mubr.f32.vlgmr.msra.gmra.mrb[18].mxu0 %v1300_v30  ;;  %1579 = vmatmul.mubr.f32.vlgmr.msra.gmra.mrb[18].mxu1 %v1300_v30 }
 0x2d6   :  { %5169 = vmatpush1.bf16.msra.mxu0 %v7032_v47  ;;  %5201 = vmatpush1.bf16.msra.mxu1 %v7035_v50 }
 0x2d7   :  { %5171 = vmatprep.subr.bf16.mxu0 %v7038_v53  ;;  %5203 = vmatprep.subr.bf16.mxu1 %v7040_v56 }
 0x2d8   :  { %1677 = vmatprep.mubr.f32.mxu0 %v8506_v8  ;;  %1748 = vmatprep.mubr.f32.mxu1 %v8506_v8 }
 0x2da   :  { %5173 = vmatpush1.bf16.msra.mxu0 %v7043_v60  ;;  %5205 = vmatpush1.bf16.msra.mxu1 %v7047_v63 }
 0x2db   :  { %5175 = vmatprep.subr.bf16.mxu0 %v7051_v3  ;;  %5207 = vmatprep.subr.bf16.mxu1 %v7054_v6 }
 0x2de   :  { %5177 = vmatpush1.bf16.msra.mxu0 %v7057_v10  ;;  %5209 = vmatpush1.bf16.msra.mxu1 %v7061_v13 }
 0x2df   :  { %5179 = vmatprep.subr.bf16.mxu0 %v7065_v16  ;;  %5211 = vmatprep.subr.bf16.mxu1 %v7068_v19 }
 0x2e2   :  { %5181 = vmatpush1.bf16.msra.mxu0 %v7071_v23  ;;  %5213 = vmatpush1.bf16.msra.mxu1 %v7075_v26 }
 0x2e3   :  { %5183 = vmatprep.subr.bf16.mxu0 %v7079_v29  ;;  %5215 = vmatprep.subr.bf16.mxu1 %v7082_v32 }
 0x2e6   :  { %5185 = vmatpush1.bf16.msra.mxu0 %v7085_v36  ;;  %5217 = vmatpush1.bf16.msra.mxu1 %v7089_v40 }
 0x2e7   :  { %5187 = vmatprep.subr.bf16.mxu0 %v7093_v44  ;;  %5219 = vmatprep.subr.bf16.mxu1 %v7096_v48 }
 0x2ea   :  { %5189 = vmatpush1.bf16.msra.mxu0 %v7099_v54  ;;  %5221 = vmatpush1.bf16.msra.mxu1 %v7103_v58 }
 0x2eb   :  { %5191 = vmatprep.subr.bf16.mxu0 %v7107_v62  ;;  %5223 = vmatprep.subr.bf16.mxu1 %v7110_v4 }
 0x2ee   :  { %5193 = vmatpush1.bf16.msra.mxu0 %v7113_v9  ;;  %5225 = vmatpush1.bf16.msra.mxu1 %v7117_v14 }
 0x2ef   :  { %5195 = vmatprep.subr.bf16.mxu0 %v7121_v18  ;;  %5227 = vmatprep.subr.bf16.mxu1 %v7124_v22 }
 0x2f2   :  { %5197 = vmatpush1.bf16.msra.mxu0 %v7127_v28  ;;  %5229 = vmatpush1.bf16.msra.mxu1 %v7131_v33 }
 0x2f3   :  { %5231 = vmatprep.subr.bf16.mxu0 %v7135_v39  ;;  %5263 = vmatprep.subr.bf16.mxu1 %v7138_v46  ;;  %v8626_v46 = vld [vmem:[#allocation113_spill] sm:$0xff] }
 0x2f5   :  { %1678 = vmatmul.mubr.f32.vlgmr.msra.gmra.mrb[4].mxu0 %v1300_v30  ;;  %1749 = vmatmul.mubr.f32.vlgmr.msra.gmra.mrb[4].mxu1 %v1300_v30  ;;  %v8605_v30 = vld [vmem:[#allocation59_spill] sm:$0xff] }
 0x2f6   :  { %5233 = vmatpush1.bf16.msra.mxu0 %v7141_v52  ;;  %5265 = vmatpush1.bf16.msra.mxu1 %v7145_v55  ;;  %v8625_v55 = vld [vmem:[#allocation112_spill] sm:$0xff] }
 0x2f7   :  { %5235 = vmatprep.subr.bf16.mxu0 %v7147_v57  ;;  %5267 = vmatprep.subr.bf16.mxu1 %v7151_v2  ;;  %v8606_v2 = vld [vmem:[#allocation60_spill] sm:$0xff]  ;;  %v8607_v57 = vld [vmem:[#allocation61_spill] sm:$0xff] }
 0x2f8   :  { %1847 = vmatprep.mubr.f32.mxu0 %v8506_v8  ;;  %1918 = vmatprep.mubr.f32.mxu1 %v8506_v8 }
 0x2fa   :  { %5237 = vmatpush1.bf16.msra.mxu0 %v7157_v15  ;;  %5269 = vmatpush1.bf16.msra.mxu1 %v7161_v17  ;;  %v8608_v15 = vld [vmem:[#allocation62_spill] sm:$0xff]  ;;  %v8609_v17 = vld [vmem:[#allocation63_spill] sm:$0xff] }
 0x2fb   :  { %5239 = vmatprep.subr.bf16.mxu0 %v7163_v20  ;;  %5271 = vmatprep.subr.bf16.mxu1 %v7166_v27  ;;  %v8610_v20 = vld [vmem:[#allocation64_spill] sm:$0xff]  ;;  %v8611_v27 = vld [vmem:[#allocation65_spill] sm:$0xff] }
 0x2fe   :  { %5241 = vmatpush1.bf16.msra.mxu0 %v7171_v42  ;;  %5273 = vmatpush1.bf16.msra.mxu1 %v7175_v43  ;;  %v8612_v42 = vld [vmem:[#allocation66_spill] sm:$0xff]  ;;  %v8613_v43 = vld [vmem:[#allocation67_spill] sm:$0xff] }
 0x2ff   :  { %5243 = vmatprep.subr.bf16.mxu0 %v8603_v5  ;;  %5275 = vmatprep.subr.bf16.mxu1 %v8604_v12  ;;  %v8614_v5 = vld [vmem:[#allocation68_spill] sm:$0xff]  ;;  %v8615_v12 = vld [vmem:[#allocation69_spill] sm:$0xff] }
 0x302   :  { %5245 = vmatpush1.bf16.msra.mxu0 %v8605_v30  ;;  %5277 = vmatpush1.bf16.msra.mxu1 %v8606_v2  ;;  %v8616_v30 = vld [vmem:[#allocation70_spill] sm:$0xff]  ;;  %v8617_v2 = vld [vmem:[#allocation71_spill] sm:$0xff] }
 0x303   :  { %5247 = vmatprep.subr.bf16.mxu0 %v8607_v57  ;;  %5279 = vmatprep.subr.bf16.mxu1 %v8608_v15  ;;  %v8618_v57 = vld [vmem:[#allocation72_spill] sm:$0xff]  ;;  %v8619_v15 = vld [vmem:[#allocation73_spill] sm:$0xff] }
 0x306   :  { %5249 = vmatpush1.bf16.msra.mxu0 %v8609_v17  ;;  %5281 = vmatpush1.bf16.msra.mxu1 %v8610_v20  ;;  %v8620_v17 = vld [vmem:[#allocation74_spill] sm:$0xff]  ;;  %v8621_v20 = vld [vmem:[#allocation75_spill] sm:$0xff] }
 0x307   :  { %5251 = vmatprep.subr.bf16.mxu0 %v8611_v27  ;;  %5283 = vmatprep.subr.bf16.mxu1 %v8612_v42  ;;  %v8622_v27 = vld [vmem:[#allocation76_spill] sm:$0xff]  ;;  %v8623_v42 = vld [vmem:[#allocation77_spill] sm:$0xff] }
 0x30a   :  { %5253 = vmatpush1.bf16.msra.mxu0 %v8613_v43  ;;  %5285 = vmatpush1.bf16.msra.mxu1 %v8614_v5  ;;  %v8624_v43 = vld [vmem:[#allocation78_spill] sm:$0xff] }
 0x30b   :  { %5255 = vmatprep.subr.bf16.mxu0 %v8615_v12  ;;  %5287 = vmatprep.subr.bf16.mxu1 %v8616_v30 }
 0x30e   :  { %5257 = vmatpush1.bf16.msra.mxu0 %v8617_v2  ;;  %5289 = vmatpush1.bf16.msra.mxu1 %v8618_v57 }
 0x30f   :  { %5259 = vmatprep.subr.bf16.mxu0 %v8619_v15  ;;  %5291 = vmatprep.subr.bf16.mxu1 %v8620_v17  ;;  %v8627_v17 = vld [vmem:[#allocation114_spill] sm:$0xff] }
 0x312   :  { %5261 = vmatpush1.bf16.msra.mxu0 %v8621_v20  ;;  %5293 = vmatpush1.bf16.msra.mxu1 %v8622_v27  ;;  %v8628_v27 = vld [vmem:[#allocation115_spill] sm:$0xff] }
 0x313   :  { %5295 = vmatprep.subr.bf16.mxu0 %v8623_v42  ;;  %5327 = vmatprep.subr.bf16.mxu1 %v8624_v43 }
 0x3a8   :  { %v1509_v5 = vpop.f32.mrb[18].mxu0  ;;  %v1580_v12 = vpop.f32.mrb[18].mxu1 }
 0x3a9   :  { %v1585_v30 = vadd.f32 %v1509_v5, %v8625_v55  ;;  %v1511_v52 = vpop.f32.mrb[19].mxu0  ;;  %v1582_v2 = vpop.f32.mrb[19].mxu1  ;;  %v1587_v28 = vadd.f32 %v1580_v12, %v8628_v27  ;;  %v8630_v27 = vld [vmem:[#allocation109_spill] sm:$0xff] }
 0x3aa   :  { %v1586_v57 = vadd.f32 %v1511_v52, %v8626_v46  ;;  %v1588_v20 = vadd.f32 %v1582_v2, %v8627_v17 }
 0x3ab   :  { %v4626_v39 = vmul.f32 -1.442695, %v1585_v30 }
 0x3ac   :  { %v4627_v15 = vmul.f32 -1.442695, %v1586_v57  ;;  %v4628_v33 = vmul.f32 -1.442695, %v1588_v20 }
 0x3ad   :  { %6500 = vpow2.f32 %v4626_v39 }
 0x3ae   :  { %6502 = vpow2.f32 %v4627_v15  ;;  %v8629_v15 = vld [vmem:[#allocation116_spill] sm:$0xff] }
 0x3af   :  { %6504 = vpow2.f32 %v4628_v33 }
 0x3b0   :  { %6506 = vtanh.f32 %v1587_v28 }
 0x3b7   :  { %v6501_v42 = vpop.eup %6500 }
 0x3b8   :  { %v6503_v22 = vpop.eup %6502  ;;  %v1592_v43 = vadd.f32 1.0, %v6501_v42 }
 0x3b9   :  { %v1598_v18 = vadd.f32 1.0, %v6503_v22  ;;  %v6505_v5 = vpop.eup %6504 }
 0x3ba   :  { %6508 = vrcp.f32 %v1592_v43  ;;  %v6507_v55 = vpop.eup %6506  ;;  %v1605_v39 = vadd.f32 1.0, %v6505_v5 }
 0x3bb   :  { %6510 = vrcp.f32 %v1598_v18 }
 0x3bc   :  { %6512 = vrcp.f32 %v1605_v39 }
 0x3c4   :  { %v6509_v52 = vpop.eup %6508 }
 0x3c5   :  { %v6511_v30 = vpop.eup %6510  ;;  %v1609_v57 = vmul.f32 %v6509_v52, %v6507_v55 }
 0x3c6   :  { %v1608_v46 = vmul.f32 %v6511_v30, %v8629_v15  ;;  %v6513_v5 = vpop.eup %6512 }
 0x3c8   :  { %v7583_v2 = vadd.f32 %v1609_v57, %v1608_v46  ;;  %v1679_v20 = vpop.f32.mrb[4].mxu0  ;;  %v1750_v12 = vpop.f32.mrb[4].mxu1 }
 0x3c9   :  { %v6346_v42 = vadd.f32 %v1679_v20, %v8630_v27  ;;  %v1681_v33 = vpop.f32.mrb[5].mxu0  ;;  %v1752_v28 = vpop.f32.mrb[5].mxu1  ;;  %v6362_v30 = vadd.f32 %v1750_v12, %v7368_v49  ;;  %v8633_v12 = vld [vmem:[#allocation83_spill] sm:$0xff] }
 0x3ca   :  { %v6347_v22 = vadd.f32 %v1681_v33, %v8569_v45  ;;  %6514 = vtanh.f32 %v7583_v2  ;;  %v6363_v55 = vadd.f32 %v1752_v28, %v8570_v35  ;;  %v8631_v33 = vld [vmem:[#allocation81_spill] sm:$0xff]  ;;  %v8632_v28 = vld [vmem:[#allocation82_spill] sm:$0xff] }
 0x3cb   :  { %v4629_v18 = vmul.f32 -1.442695, %v6346_v42 }
 0x3cc   :  { %v4630_v43 = vmul.f32 -1.442695, %v6347_v22  ;;  %v4631_v52 = vmul.f32 -1.442695, %v6363_v55  ;;  %v8634_v22 = vld [vmem:[#allocation84_spill] sm:$0xff]  ;;  %v8637_v55 = vld [vmem:[#allocation87_spill] sm:$0xff] }
 0x3cd   :  { %6516 = vpow2.f32 %v4629_v18  ;;  %v8635_v18 = vld [vmem:[#allocation85_spill] sm:$0xff] }
 0x3ce   :  { %6518 = vpow2.f32 %v4630_v43  ;;  %v8636_v43 = vld [vmem:[#allocation86_spill] sm:$0xff] }
 0x3cf   :  { %6520 = vpow2.f32 %v4631_v52  ;;  %v8640_v52 = vld [vmem:[#allocation90_spill] sm:$0xff] }
 0x3d0   :  { %6522 = vtanh.f32 %v6362_v30 }
 0x3d4   :  { %v6515_v46 = vpop.eup %6514 }
 0x3d5   :  { %v1612_v57 = vmul.f32 %v6515_v46, %v6513_v5  ;;  %v8638_v5 = vld [vmem:[#allocation88_spill] sm:$0xff]  ;;  %v8639_v46 = vld [vmem:[#allocation89_spill] sm:$0xff] }
 0x3d7   :  { %v6517_v39 = vpop.eup %6516  ;;  %1848 = vmatmul.mubr.f32.vlgmr.msra.gmra.mrb[20].mxu0 %v1612_v57  ;;  %1919 = vmatmul.mubr.f32.vlgmr.msra.gmra.mrb[20].mxu1 %v1612_v57 }
 0x3d8   :  { %v6519_v15 = vpop.eup %6518  ;;  %v1762_v20 = vadd.f32 1.0, %v6517_v39  ;;  %5297 = vmatpush1.bf16.msra.mxu0 %v8571_v25  ;;  %5329 = vmatpush1.bf16.msra.mxu1 %v8572_v1 }
 0x3d9   :  { %v1768_v42 = vadd.f32 1.0, %v6519_v15  ;;  %5299 = vmatprep.subr.bf16.mxu0 %v8631_v33  ;;  %5331 = vmatprep.subr.bf16.mxu1 %v8632_v28  ;;  %v6521_v30 = vpop.eup %6520  ;;  %v8641_v15 = vld [vmem:[#allocation91_spill] sm:$0xff] }
 0x3da   :  { %6524 = vrcp.f32 %v1762_v20  ;;  %1989 = vmatprep.mubr.f32.mxu0 %v8506_v8  ;;  %2060 = vmatprep.mubr.f32.mxu1 %v8506_v8  ;;  %v6523_v57 = vpop.eup %6522 }
 0x3db   :  { %6526 = vrcp.f32 %v1768_v42 }
 0x3dc   :  { %5301 = vmatpush1.bf16.msra.mxu0 %v8633_v12  ;;  %5333 = vmatpush1.bf16.msra.mxu1 %v8634_v22 }
 0x3dd   :  { %5303 = vmatprep.subr.bf16.mxu0 %v8635_v18  ;;  %5335 = vmatprep.subr.bf16.mxu1 %v8636_v43  ;;  %v1775_v18 = vadd.f32 1.0, %v6521_v30  ;;  %v8644_v43 = vld [vmem:[#allocation97_spill] sm:$0xff]  ;;  %v8646_v30 = vld [vmem:[#allocation99_spill] sm:$0xff] }
 0x3df   :  { %6528 = vrcp.f32 %v1775_v18 }
 0x3e0   :  { %5305 = vmatpush1.bf16.msra.mxu0 %v8637_v55  ;;  %5337 = vmatpush1.bf16.msra.mxu1 %v8638_v5 }
 0x3e1   :  { %5307 = vmatprep.subr.bf16.mxu0 %v8639_v46  ;;  %5339 = vmatprep.subr.bf16.mxu1 %v8640_v52  ;;  %v8642_v46 = vld [vmem:[#allocation95_spill] sm:$0xff]  ;;  %v8643_v52 = vld [vmem:[#allocation96_spill] sm:$0xff] }
 0x3e4   :  { %v6525_v39 = vpop.eup %6524  ;;  %5309 = vmatpush1.bf16.msra.mxu0 %v8641_v15  ;;  %5341 = vmatpush1.bf16.msra.mxu1 %v8584_v59  ;;  %v8645_v15 = vld [vmem:[#allocation98_spill] sm:$0xff] }
 0x3e5   :  { %v6527_v20 = vpop.eup %6526  ;;  %v1779_v42 = vmul.f32 %v6525_v39, %v6523_v57  ;;  %5311 = vmatprep.subr.bf16.mxu0 %v8585_v61  ;;  %5343 = vmatprep.subr.bf16.mxu1 %v8586_v41  ;;  %v8647_v57 = vld [vmem:[#allocation100_spill] sm:$0xff]  ;;  %v8648_v39 = vld [vmem:[#allocation101_spill] sm:$0xff] }
 0x3e6   :  { %v1778_v5 = vmul.f32 %v6527_v20, %v7491_v34  ;;  %v8649_v20 = vld [vmem:[#allocation41_spill] sm:$0xff] }
 0x3e8   :  { %v7609_v55 = vadd.f32 %v1779_v42, %v1778_v5  ;;  %5313 = vmatpush1.bf16.msra.mxu0 %v8642_v46  ;;  %5345 = vmatpush1.bf16.msra.mxu1 %v8643_v52  ;;  %v8650_v42 = vld [vmem:[#allocation42_spill] sm:$0xff] }
 0x3e9   :  { %5315 = vmatprep.subr.bf16.mxu0 %v8644_v43  ;;  %5347 = vmatprep.subr.bf16.mxu1 %v8645_v15  ;;  %v6529_v34 = vpop.eup %6528 }
 0x3ea   :  { %6530 = vtanh.f32 %v7609_v55 }
 0x3ec   :  { %5317 = vmatpush1.bf16.msra.mxu0 %v8646_v30  ;;  %5349 = vmatpush1.bf16.msra.mxu1 %v8647_v57 }
 0x3ed   :  { %5319 = vmatprep.subr.bf16.mxu0 %v8648_v39  ;;  %5351 = vmatprep.subr.bf16.mxu1 %v8594_v0 }
 0x3f0   :  { %5321 = vmatpush1.bf16.msra.mxu0 %v8595_v37  ;;  %5353 = vmatpush1.bf16.msra.mxu1 %v8596_v24 }
 0x3f1   :  { %5323 = vmatprep.subr.bf16.mxu0 %v8597_v7  ;;  %5355 = vmatprep.subr.bf16.mxu1 %v8598_v31 }
 0x3f4   :  { %v6531_v18 = vpop.eup %6530  ;;  %5325 = vmatpush1.bf16.msra.mxu0 %v8599_v51  ;;  %5357 = vmatpush1.bf16.msra.mxu1 %v8600_v38 }
 0x3f5   :  { %5359 = vmatprep.subr.bf16.mxu0 %v8601_v11  ;;  %5391 = vmatprep.subr.bf16.mxu1 %v8602_v21  ;;  %v1782_v5 = vmul.f32 %v6531_v18, %v6529_v34  ;;  %v8651_v34 = vld [vmem:[#allocation43_spill] sm:$0xff]  ;;  %v8652_v18 = vld [vmem:[#allocation44_spill] sm:$0xff] }
 0x3f7   :  { %1990 = vmatmul.mubr.f32.vlgmr.msra.gmra.mrb[20].mxu0 %v1782_v5  ;;  %2061 = vmatmul.mubr.f32.vlgmr.msra.gmra.mrb[20].mxu1 %v1782_v5 }
 0x3f8   :  { %5361 = vmatpush1.bf16.msra.mxu0 %v7032_v47  ;;  %5393 = vmatpush1.bf16.msra.mxu1 %v7035_v50 }
 0x3f9   :  { %5363 = vmatprep.subr.bf16.mxu0 %v7038_v53  ;;  %5395 = vmatprep.subr.bf16.mxu1 %v7040_v56 }
 0x3fa   :  { %2159 = vmatprep.mubr.f32.mxu0 %v8506_v8  ;;  %2230 = vmatprep.mubr.f32.mxu1 %v8506_v8 }
 0x3fc   :  { %5365 = vmatpush1.bf16.msra.mxu0 %v7043_v60  ;;  %5397 = vmatpush1.bf16.msra.mxu1 %v7047_v63 }
 0x3fd   :  { %5367 = vmatprep.subr.bf16.mxu0 %v7051_v3  ;;  %5399 = vmatprep.subr.bf16.mxu1 %v7054_v6 }
 0x400   :  { %5369 = vmatpush1.bf16.msra.mxu0 %v7057_v10  ;;  %5401 = vmatpush1.bf16.msra.mxu1 %v7061_v13 }
 0x401   :  { %5371 = vmatprep.subr.bf16.mxu0 %v7065_v16  ;;  %5403 = vmatprep.subr.bf16.mxu1 %v7068_v19 }
 0x404   :  { %5373 = vmatpush1.bf16.msra.mxu0 %v7071_v23  ;;  %5405 = vmatpush1.bf16.msra.mxu1 %v7075_v26 }
 0x405   :  { %5375 = vmatprep.subr.bf16.mxu0 %v7079_v29  ;;  %5407 = vmatprep.subr.bf16.mxu1 %v7082_v32 }
 0x408   :  { %5377 = vmatpush1.bf16.msra.mxu0 %v7085_v36  ;;  %5409 = vmatpush1.bf16.msra.mxu1 %v7089_v40  ;;  %v8688_v40 = vld [vmem:[#allocation113_spill] sm:$0xff] }
 0x409   :  { %5379 = vmatprep.subr.bf16.mxu0 %v7093_v44  ;;  %5411 = vmatprep.subr.bf16.mxu1 %v7096_v48  ;;  %v8653_v48 = vld [vmem:[#allocation45_spill] sm:$0xff] }
 0x40c   :  { %5381 = vmatpush1.bf16.msra.mxu0 %v7099_v54  ;;  %5413 = vmatpush1.bf16.msra.mxu1 %v7103_v58  ;;  %v8654_v54 = vld [vmem:[#allocation46_spill] sm:$0xff]  ;;  %v8687_v58 = vld [vmem:[#allocation112_spill] sm:$0xff] }
 0x40d   :  { %5383 = vmatprep.subr.bf16.mxu0 %v7107_v62  ;;  %5415 = vmatprep.subr.bf16.mxu1 %v7110_v4  ;;  %v8655_v62 = vld [vmem:[#allocation47_spill] sm:$0xff]  ;;  %v8656_v4 = vld [vmem:[#allocation48_spill] sm:$0xff] }
 0x410   :  { %5385 = vmatpush1.bf16.msra.mxu0 %v7113_v9  ;;  %5417 = vmatpush1.bf16.msra.mxu1 %v7117_v14  ;;  %v8657_v9 = vld [vmem:[#allocation49_spill] sm:$0xff]  ;;  %v8658_v14 = vld [vmem:[#allocation50_spill] sm:$0xff] }
 0x411   :  { %5387 = vmatprep.subr.bf16.mxu0 %v8649_v20  ;;  %5419 = vmatprep.subr.bf16.mxu1 %v8650_v42  ;;  %v8668_v42 = vld [vmem:[#allocation60_spill] sm:$0xff]  ;;  %v8669_v20 = vld [vmem:[#allocation61_spill] sm:$0xff] }
 0x414   :  { %5389 = vmatpush1.bf16.msra.mxu0 %v8651_v34  ;;  %5421 = vmatpush1.bf16.msra.mxu1 %v8652_v18  ;;  %v8659_v34 = vld [vmem:[#allocation51_spill] sm:$0xff]  ;;  %v8660_v18 = vld [vmem:[#allocation52_spill] sm:$0xff] }
 0x415   :  { %5423 = vmatprep.subr.bf16.mxu0 %v8653_v48  ;;  %5455 = vmatprep.subr.bf16.mxu1 %v8654_v54  ;;  %v8661_v48 = vld [vmem:[#allocation53_spill] sm:$0xff]  ;;  %v8662_v54 = vld [vmem:[#allocation54_spill] sm:$0xff] }
 0x417   :  { %2160 = vmatmul.mubr.f32.vlgmr.msra.gmra.mrb[6].mxu0 %v1782_v5  ;;  %2231 = vmatmul.mubr.f32.vlgmr.msra.gmra.mrb[6].mxu1 %v1782_v5  ;;  %v8663_v5 = vld [vmem:[#allocation55_spill] sm:$0xff] }
 0x418   :  { %5425 = vmatpush1.bf16.msra.mxu0 %v8655_v62  ;;  %5457 = vmatpush1.bf16.msra.mxu1 %v8656_v4  ;;  %v8664_v62 = vld [vmem:[#allocation56_spill] sm:$0xff]  ;;  %v8665_v4 = vld [vmem:[#allocation57_spill] sm:$0xff] }
 0x419   :  { %5427 = vmatprep.subr.bf16.mxu0 %v8657_v9  ;;  %5459 = vmatprep.subr.bf16.mxu1 %v8658_v14  ;;  %v8666_v9 = vld [vmem:[#allocation58_spill] sm:$0xff]  ;;  %v8667_v14 = vld [vmem:[#allocation59_spill] sm:$0xff] }
 0x41a   :  { %2329 = vmatprep.mubr.f32.mxu0 %v8506_v8  ;;  %2400 = vmatprep.mubr.f32.mxu1 %v8506_v8 }
 0x41c   :  { %5429 = vmatpush1.bf16.msra.mxu0 %v8659_v34  ;;  %5461 = vmatpush1.bf16.msra.mxu1 %v8660_v18  ;;  %v8670_v34 = vld [vmem:[#allocation62_spill] sm:$0xff]  ;;  %v8671_v18 = vld [vmem:[#allocation63_spill] sm:$0xff] }
 0x41d   :  { %5431 = vmatprep.subr.bf16.mxu0 %v8661_v48  ;;  %5463 = vmatprep.subr.bf16.mxu1 %v8662_v54  ;;  %v8672_v48 = vld [vmem:[#allocation64_spill] sm:$0xff]  ;;  %v8673_v54 = vld [vmem:[#allocation65_spill] sm:$0xff] }
 0x420   :  { %5433 = vmatpush1.bf16.msra.mxu0 %v8663_v5  ;;  %5465 = vmatpush1.bf16.msra.mxu1 %v8664_v62  ;;  %v8674_v5 = vld [vmem:[#allocation66_spill] sm:$0xff]  ;;  %v8675_v62 = vld [vmem:[#allocation67_spill] sm:$0xff] }
 0x421   :  { %5435 = vmatprep.subr.bf16.mxu0 %v8665_v4  ;;  %5467 = vmatprep.subr.bf16.mxu1 %v8666_v9  ;;  %v8676_v4 = vld [vmem:[#allocation68_spill] sm:$0xff]  ;;  %v8677_v9 = vld [vmem:[#allocation69_spill] sm:$0xff] }
 0x424   :  { %5437 = vmatpush1.bf16.msra.mxu0 %v8667_v14  ;;  %5469 = vmatpush1.bf16.msra.mxu1 %v8668_v42  ;;  %v8678_v14 = vld [vmem:[#allocation70_spill] sm:$0xff]  ;;  %v8679_v42 = vld [vmem:[#allocation71_spill] sm:$0xff] }
 0x425   :  { %5439 = vmatprep.subr.bf16.mxu0 %v8669_v20  ;;  %5471 = vmatprep.subr.bf16.mxu1 %v8670_v34  ;;  %v8680_v20 = vld [vmem:[#allocation72_spill] sm:$0xff]  ;;  %v8681_v34 = vld [vmem:[#allocation73_spill] sm:$0xff] }
 0x428   :  { %5441 = vmatpush1.bf16.msra.mxu0 %v8671_v18  ;;  %5473 = vmatpush1.bf16.msra.mxu1 %v8672_v48  ;;  %v8682_v18 = vld [vmem:[#allocation74_spill] sm:$0xff]  ;;  %v8683_v48 = vld [vmem:[#allocation75_spill] sm:$0xff] }
 0x429   :  { %5443 = vmatprep.subr.bf16.mxu0 %v8673_v54  ;;  %5475 = vmatprep.subr.bf16.mxu1 %v8674_v5  ;;  %v8684_v54 = vld [vmem:[#allocation76_spill] sm:$0xff]  ;;  %v8685_v5 = vld [vmem:[#allocation77_spill] sm:$0xff] }
 0x42c   :  { %5445 = vmatpush1.bf16.msra.mxu0 %v8675_v62  ;;  %5477 = vmatpush1.bf16.msra.mxu1 %v8676_v4  ;;  %v8686_v62 = vld [vmem:[#allocation78_spill] sm:$0xff] }
 0x42d   :  { %5447 = vmatprep.subr.bf16.mxu0 %v8677_v9  ;;  %5479 = vmatprep.subr.bf16.mxu1 %v8678_v14 }
 0x430   :  { %5449 = vmatpush1.bf16.msra.mxu0 %v8679_v42  ;;  %5481 = vmatpush1.bf16.msra.mxu1 %v8680_v20 }
 0x431   :  { %5451 = vmatprep.subr.bf16.mxu0 %v8681_v34  ;;  %5483 = vmatprep.subr.bf16.mxu1 %v8682_v18 }
 0x434   :  { %5453 = vmatpush1.bf16.msra.mxu0 %v8683_v48  ;;  %5485 = vmatpush1.bf16.msra.mxu1 %v8684_v54  ;;  %v8689_v54 = vld [vmem:[#allocation115_spill] sm:$0xff] }
 0x435   :  { %5487 = vmatprep.subr.bf16.mxu0 %v8685_v5  ;;  %5519 = vmatprep.subr.bf16.mxu1 %v8686_v62 }
 0x4ca   :  { %v1991_v4 = vpop.f32.mrb[20].mxu0  ;;  %v2062_v9 = vpop.f32.mrb[20].mxu1 }
 0x4cb   :  { %v2067_v14 = vadd.f32 %v1991_v4, %v8687_v58  ;;  %v1993_v44 = vpop.f32.mrb[21].mxu0  ;;  %v2064_v42 = vpop.f32.mrb[21].mxu1  ;;  %v2069_v32 = vadd.f32 %v2062_v9, %v8689_v54 }
 0x4cc   :  { %v2068_v20 = vadd.f32 %v1993_v44, %v8688_v40  ;;  %v2070_v48 = vadd.f32 %v2064_v42, %v8627_v17 }
 0x4cd   :  { %v4632_v36 = vmul.f32 -1.442695, %v2067_v14 }
 0x4ce   :  { %v4633_v34 = vmul.f32 -1.442695, %v2068_v20  ;;  %v4634_v18 = vmul.f32 -1.442695, %v2070_v48 }
 0x4cf   :  { %6532 = vpow2.f32 %v4632_v36 }
 0x4d0   :  { %6534 = vpow2.f32 %v4633_v34 }
 0x4d1   :  { %6536 = vpow2.f32 %v4634_v18 }
 0x4d2   :  { %6538 = vtanh.f32 %v2069_v32 }
 0x4d9   :  { %v6533_v5 = vpop.eup %6532 }
 0x4da   :  { %v6535_v29 = vpop.eup %6534  ;;  %v2074_v62 = vadd.f32 1.0, %v6533_v5 }
 0x4db   :  { %v2080_v26 = vadd.f32 1.0, %v6535_v29  ;;  %v6537_v4 = vpop.eup %6536 }
 0x4dc   :  { %6540 = vrcp.f32 %v2074_v62  ;;  %v6539_v58 = vpop.eup %6538  ;;  %v2087_v36 = vadd.f32 1.0, %v6537_v4 }
 0x4dd   :  { %6542 = vrcp.f32 %v2080_v26 }
 0x4de   :  { %6544 = vrcp.f32 %v2087_v36 }
 0x4e6   :  { %v6541_v44 = vpop.eup %6540 }
 0x4e7   :  { %v6543_v14 = vpop.eup %6542  ;;  %v2091_v20 = vmul.f32 %v6541_v44, %v6539_v58 }
 0x4e8   :  { %v2090_v34 = vmul.f32 %v6543_v14, %v7583_v2  ;;  %v6545_v2 = vpop.eup %6544 }
 0x4ea   :  { %v7701_v42 = vadd.f32 %v2091_v20, %v2090_v34  ;;  %v2161_v48 = vpop.f32.mrb[6].mxu0  ;;  %v2232_v9 = vpop.f32.mrb[6].mxu1 }
 0x4eb   :  { %v6348_v5 = vadd.f32 %v2161_v48, %v8630_v27  ;;  %v2163_v18 = vpop.f32.mrb[7].mxu0  ;;  %v2234_v32 = vpop.f32.mrb[7].mxu1  ;;  %v6364_v14 = vadd.f32 %v2232_v9, %v7368_v49  ;;  %v8690_v9 = vld [vmem:[#allocation85_spill] sm:$0xff] }
 0x4ec   :  { %v6349_v29 = vadd.f32 %v2163_v18, %v8569_v45  ;;  %6546 = vtanh.f32 %v7701_v42  ;;  %v6365_v58 = vadd.f32 %v2234_v32, %v8570_v35  ;;  %v8691_v18 = vld [vmem:[#allocation86_spill] sm:$0xff]  ;;  %v8692_v32 = vld [vmem:[#allocation87_spill] sm:$0xff] }
 0x4ed   :  { %v4635_v26 = vmul.f32 -1.442695, %v6348_v5 }
 0x4ee   :  { %v4636_v62 = vmul.f32 -1.442695, %v6349_v29  ;;  %v4637_v44 = vmul.f32 -1.442695, %v6365_v58  ;;  %v8693_v29 = vld [vmem:[#allocation88_spill] sm:$0xff] }
 0x4ef   :  { %6548 = vpow2.f32 %v4635_v26  ;;  %v8694_v26 = vld [vmem:[#allocation89_spill] sm:$0xff] }
 0x4f0   :  { %6550 = vpow2.f32 %v4636_v62  ;;  %v8695_v62 = vld [vmem:[#allocation90_spill] sm:$0xff] }
 0x4f1   :  { %6552 = vpow2.f32 %v4637_v44  ;;  %v8696_v44 = vld [vmem:[#allocation91_spill] sm:$0xff] }
 0x4f2   :  { %6554 = vtanh.f32 %v6364_v14 }
 0x4f6   :  { %v6547_v4 = vpop.eup %6546 }
 0x4f7   :  { %v2094_v20 = vmul.f32 %v6547_v4, %v6545_v2 }
 0x4f9   :  { %v6549_v36 = vpop.eup %6548  ;;  %2330 = vmatmul.mubr.f32.vlgmr.msra.gmra.mrb[22].mxu0 %v2094_v20  ;;  %2401 = vmatmul.mubr.f32.vlgmr.msra.gmra.mrb[22].mxu1 %v2094_v20 }
 0x4fa   :  { %v6551_v34 = vpop.eup %6550  ;;  %v2244_v48 = vadd.f32 1.0, %v6549_v36  ;;  %5489 = vmatpush1.bf16.msra.mxu0 %v8571_v25  ;;  %5521 = vmatpush1.bf16.msra.mxu1 %v8572_v1 }
 0x4fb   :  { %v2250_v5 = vadd.f32 1.0, %v6551_v34  ;;  %5491 = vmatprep.subr.bf16.mxu0 %v8631_v33  ;;  %5523 = vmatprep.subr.bf16.mxu1 %v8632_v28  ;;  %v6553_v58 = vpop.eup %6552 }
 0x4fc   :  { %6556 = vrcp.f32 %v2244_v48  ;;  %2471 = vmatprep.mubr.f32.mxu0 %v8506_v8  ;;  %2542 = vmatprep.mubr.f32.mxu1 %v8506_v8  ;;  %v6555_v2 = vpop.eup %6554  ;;  %v2257_v36 = vadd.f32 1.0, %v6553_v58 }
 0x4fd   :  { %6558 = vrcp.f32 %v2250_v5 }
 0x4fe   :  { %5493 = vmatpush1.bf16.msra.mxu0 %v8633_v12  ;;  %5525 = vmatpush1.bf16.msra.mxu1 %v8634_v22  ;;  %6560 = vrcp.f32 %v2257_v36  ;;  %v8701_v36 = vld [vmem:[#allocation32_spill] sm:$0xff] }
 0x4ff   :  { %5495 = vmatprep.subr.bf16.mxu0 %v8690_v9  ;;  %5527 = vmatprep.subr.bf16.mxu1 %v8691_v18 }
 0x502   :  { %5497 = vmatpush1.bf16.msra.mxu0 %v8692_v32  ;;  %5529 = vmatpush1.bf16.msra.mxu1 %v8693_v29 }
 0x503   :  { %5499 = vmatprep.subr.bf16.mxu0 %v8694_v26  ;;  %5531 = vmatprep.subr.bf16.mxu1 %v8695_v62 }
 0x506   :  { %v6557_v4 = vpop.eup %6556  ;;  %5501 = vmatpush1.bf16.msra.mxu0 %v8696_v44  ;;  %5533 = vmatpush1.bf16.msra.mxu1 %v8584_v59 }
 0x507   :  { %v6559_v14 = vpop.eup %6558  ;;  %v2261_v20 = vmul.f32 %v6557_v4, %v6555_v2  ;;  %5503 = vmatprep.subr.bf16.mxu0 %v8585_v61  ;;  %5535 = vmatprep.subr.bf16.mxu1 %v8586_v41  ;;  %v8697_v2 = vld [vmem:[#allocation28_spill] sm:$0xff]  ;;  %v8698_v4 = vld [vmem:[#allocation29_spill] sm:$0xff] }
 0x508   :  { %v2260_v34 = vmul.f32 %v6559_v14, %v7609_v55  ;;  %v6561_v55 = vpop.eup %6560  ;;  %v8699_v14 = vld [vmem:[#allocation30_spill] sm:$0xff] }
 0x50a   :  { %v7727_v48 = vadd.f32 %v2261_v20, %v2260_v34  ;;  %5505 = vmatpush1.bf16.msra.mxu0 %v8642_v46  ;;  %5537 = vmatpush1.bf16.msra.mxu1 %v8643_v52  ;;  %v8700_v20 = vld [vmem:[#allocation31_spill] sm:$0xff]  ;;  %v8702_v34 = vld [vmem:[#allocation33_spill] sm:$0xff] }
 0x50b   :  { %5507 = vmatprep.subr.bf16.mxu0 %v8644_v43  ;;  %5539 = vmatprep.subr.bf16.mxu1 %v8645_v15 }
 0x50c   :  { %6562 = vtanh.f32 %v7727_v48 }
 0x50e   :  { %5509 = vmatpush1.bf16.msra.mxu0 %v8646_v30  ;;  %5541 = vmatpush1.bf16.msra.mxu1 %v8647_v57 }
 0x50f   :  { %5511 = vmatprep.subr.bf16.mxu0 %v8648_v39  ;;  %5543 = vmatprep.subr.bf16.mxu1 %v8594_v0 }
 0x512   :  { %5513 = vmatpush1.bf16.msra.mxu0 %v8595_v37  ;;  %5545 = vmatpush1.bf16.msra.mxu1 %v8596_v24 }
 0x513   :  { %5515 = vmatprep.subr.bf16.mxu0 %v8597_v7  ;;  %5547 = vmatprep.subr.bf16.mxu1 %v8598_v31 }
 0x516   :  { %v6563_v5 = vpop.eup %6562  ;;  %5517 = vmatpush1.bf16.msra.mxu0 %v8599_v51  ;;  %5549 = vmatpush1.bf16.msra.mxu1 %v8600_v38 }
 0x517   :  { %v2264_v58 = vmul.f32 %v6563_v5, %v6561_v55  ;;  %5551 = vmatprep.subr.bf16.mxu0 %v8601_v11  ;;  %5583 = vmatprep.subr.bf16.mxu1 %v8602_v21  ;;  %v8703_v55 = vld [vmem:[#allocation34_spill] sm:$0xff]  ;;  %v8704_v5 = vld [vmem:[#allocation35_spill] sm:$0xff] }
 0x519   :  { %2472 = vmatmul.mubr.f32.vlgmr.msra.gmra.mrb[22].mxu0 %v2264_v58  ;;  %2543 = vmatmul.mubr.f32.vlgmr.msra.gmra.mrb[22].mxu1 %v2264_v58 }
 0x51a   :  { %5553 = vmatpush1.bf16.msra.mxu0 %v7032_v47  ;;  %5585 = vmatpush1.bf16.msra.mxu1 %v7035_v50 }
 0x51b   :  { %5555 = vmatprep.subr.bf16.mxu0 %v7038_v53  ;;  %5587 = vmatprep.subr.bf16.mxu1 %v7040_v56 }
 0x51c   :  { %2641 = vmatprep.mubr.f32.mxu0 %v8506_v8  ;;  %2712 = vmatprep.mubr.f32.mxu1 %v8506_v8 }
 0x51e   :  { %5557 = vmatpush1.bf16.msra.mxu0 %v7043_v60  ;;  %5589 = vmatpush1.bf16.msra.mxu1 %v7047_v63 }
 0x51f   :  { %5559 = vmatprep.subr.bf16.mxu0 %v7051_v3  ;;  %5591 = vmatprep.subr.bf16.mxu1 %v7054_v6 }
 0x522   :  { %5561 = vmatpush1.bf16.msra.mxu0 %v7057_v10  ;;  %5593 = vmatpush1.bf16.msra.mxu1 %v7061_v13 }
 0x523   :  { %5563 = vmatprep.subr.bf16.mxu0 %v7065_v16  ;;  %5595 = vmatprep.subr.bf16.mxu1 %v7068_v19  ;;  %v8705_v16 = vld [vmem:[#allocation36_spill] sm:$0xff]  ;;  %v8706_v19 = vld [vmem:[#allocation37_spill] sm:$0xff] }
 0x526   :  { %5565 = vmatpush1.bf16.msra.mxu0 %v7071_v23  ;;  %5597 = vmatpush1.bf16.msra.mxu1 %v8697_v2  ;;  %v8707_v23 = vld [vmem:[#allocation38_spill] sm:$0xff]  ;;  %v8708_v2 = vld [vmem:[#allocation39_spill] sm:$0xff] }
 0x527   :  { %5567 = vmatprep.subr.bf16.mxu0 %v8698_v4  ;;  %5599 = vmatprep.subr.bf16.mxu1 %v8699_v14  ;;  %v8709_v4 = vld [vmem:[#allocation40_spill] sm:$0xff]  ;;  %v8710_v14 = vld [vmem:[#allocation41_spill] sm:$0xff] }
 0x52a   :  { %5569 = vmatpush1.bf16.msra.mxu0 %v8700_v20  ;;  %5601 = vmatpush1.bf16.msra.mxu1 %v8701_v36  ;;  %v8711_v20 = vld [vmem:[#allocation42_spill] sm:$0xff]  ;;  %v8712_v36 = vld [vmem:[#allocation43_spill] sm:$0xff] }
 0x52b   :  { %5571 = vmatprep.subr.bf16.mxu0 %v8702_v34  ;;  %5603 = vmatprep.subr.bf16.mxu1 %v8703_v55  ;;  %v8713_v34 = vld [vmem:[#allocation44_spill] sm:$0xff]  ;;  %v8714_v55 = vld [vmem:[#allocation45_spill] sm:$0xff] }
 0x52e   :  { %5573 = vmatpush1.bf16.msra.mxu0 %v8704_v5  ;;  %5605 = vmatpush1.bf16.msra.mxu1 %v8705_v16  ;;  %v8715_v5 = vld [vmem:[#allocation46_spill] sm:$0xff]  ;;  %v8748_v16 = vld [vmem:[#allocation112_spill] sm:$0xff] }
 0x52f   :  { %5575 = vmatprep.subr.bf16.mxu0 %v8706_v19  ;;  %5607 = vmatprep.subr.bf16.mxu1 %v8707_v23  ;;  %v8716_v19 = vld [vmem:[#allocation47_spill] sm:$0xff]  ;;  %v8717_v23 = vld [vmem:[#allocation48_spill] sm:$0xff] }
 0x532   :  { %5577 = vmatpush1.bf16.msra.mxu0 %v8708_v2  ;;  %5609 = vmatpush1.bf16.msra.mxu1 %v8709_v4  ;;  %v8718_v2 = vld [vmem:[#allocation49_spill] sm:$0xff]  ;;  %v8719_v4 = vld [vmem:[#allocation50_spill] sm:$0xff] }
 0x533   :  { %5579 = vmatprep.subr.bf16.mxu0 %v8710_v14  ;;  %5611 = vmatprep.subr.bf16.mxu1 %v8711_v20  ;;  %v8729_v20 = vld [vmem:[#allocation60_spill] sm:$0xff]  ;;  %v8730_v14 = vld [vmem:[#allocation61_spill] sm:$0xff] }
 0x536   :  { %5581 = vmatpush1.bf16.msra.mxu0 %v8712_v36  ;;  %5613 = vmatpush1.bf16.msra.mxu1 %v8713_v34  ;;  %v8720_v36 = vld [vmem:[#allocation51_spill] sm:$0xff]  ;;  %v8721_v34 = vld [vmem:[#allocation52_spill] sm:$0xff] }
 0x537   :  { %5615 = vmatprep.subr.bf16.mxu0 %v8714_v55  ;;  %5647 = vmatprep.subr.bf16.mxu1 %v8715_v5  ;;  %v8722_v55 = vld [vmem:[#allocation53_spill] sm:$0xff]  ;;  %v8723_v5 = vld [vmem:[#allocation54_spill] sm:$0xff] }
 0x539   :  { %2642 = vmatmul.mubr.f32.vlgmr.msra.gmra.mrb[8].mxu0 %v2264_v58  ;;  %2713 = vmatmul.mubr.f32.vlgmr.msra.gmra.mrb[8].mxu1 %v2264_v58  ;;  %v8724_v58 = vld [vmem:[#allocation55_spill] sm:$0xff] }
 0x53a   :  { %5617 = vmatpush1.bf16.msra.mxu0 %v8716_v19  ;;  %5649 = vmatpush1.bf16.msra.mxu1 %v8717_v23  ;;  %v8725_v19 = vld [vmem:[#allocation56_spill] sm:$0xff]  ;;  %v8726_v23 = vld [vmem:[#allocation57_spill] sm:$0xff] }
 0x53b   :  { %5619 = vmatprep.subr.bf16.mxu0 %v8718_v2  ;;  %5651 = vmatprep.subr.bf16.mxu1 %v8719_v4  ;;  %v8727_v2 = vld [vmem:[#allocation58_spill] sm:$0xff]  ;;  %v8728_v4 = vld [vmem:[#allocation59_spill] sm:$0xff] }
 0x53c   :  { %2811 = vmatprep.mubr.f32.mxu0 %v8506_v8  ;;  %2882 = vmatprep.mubr.f32.mxu1 %v8506_v8 }
 0x53e   :  { %5621 = vmatpush1.bf16.msra.mxu0 %v8720_v36  ;;  %5653 = vmatpush1.bf16.msra.mxu1 %v8721_v34  ;;  %v8731_v36 = vld [vmem:[#allocation62_spill] sm:$0xff]  ;;  %v8732_v34 = vld [vmem:[#allocation63_spill] sm:$0xff] }
 0x53f   :  { %5623 = vmatprep.subr.bf16.mxu0 %v8722_v55  ;;  %5655 = vmatprep.subr.bf16.mxu1 %v8723_v5  ;;  %v8733_v55 = vld [vmem:[#allocation64_spill] sm:$0xff]  ;;  %v8734_v5 = vld [vmem:[#allocation65_spill] sm:$0xff] }
 0x542   :  { %5625 = vmatpush1.bf16.msra.mxu0 %v8724_v58  ;;  %5657 = vmatpush1.bf16.msra.mxu1 %v8725_v19  ;;  %v8735_v58 = vld [vmem:[#allocation66_spill] sm:$0xff]  ;;  %v8736_v19 = vld [vmem:[#allocation67_spill] sm:$0xff] }
 0x543   :  { %5627 = vmatprep.subr.bf16.mxu0 %v8726_v23  ;;  %5659 = vmatprep.subr.bf16.mxu1 %v8727_v2  ;;  %v8737_v23 = vld [vmem:[#allocation68_spill] sm:$0xff]  ;;  %v8738_v2 = vld [vmem:[#allocation69_spill] sm:$0xff] }
 0x546   :  { %5629 = vmatpush1.bf16.msra.mxu0 %v8728_v4  ;;  %5661 = vmatpush1.bf16.msra.mxu1 %v8729_v20  ;;  %v8739_v4 = vld [vmem:[#allocation70_spill] sm:$0xff]  ;;  %v8740_v20 = vld [vmem:[#allocation71_spill] sm:$0xff] }
 0x547   :  { %5631 = vmatprep.subr.bf16.mxu0 %v8730_v14  ;;  %5663 = vmatprep.subr.bf16.mxu1 %v8731_v36  ;;  %v8741_v14 = vld [vmem:[#allocation72_spill] sm:$0xff]  ;;  %v8742_v36 = vld [vmem:[#allocation73_spill] sm:$0xff] }
 0x54a   :  { %5633 = vmatpush1.bf16.msra.mxu0 %v8732_v34  ;;  %5665 = vmatpush1.bf16.msra.mxu1 %v8733_v55  ;;  %v8743_v34 = vld [vmem:[#allocation74_spill] sm:$0xff]  ;;  %v8744_v55 = vld [vmem:[#allocation75_spill] sm:$0xff] }
 0x54b   :  { %5635 = vmatprep.subr.bf16.mxu0 %v8734_v5  ;;  %5667 = vmatprep.subr.bf16.mxu1 %v8735_v58  ;;  %v8745_v5 = vld [vmem:[#allocation76_spill] sm:$0xff]  ;;  %v8746_v58 = vld [vmem:[#allocation77_spill] sm:$0xff] }
 0x54e   :  { %5637 = vmatpush1.bf16.msra.mxu0 %v8736_v19  ;;  %5669 = vmatpush1.bf16.msra.mxu1 %v8737_v23  ;;  %v8747_v19 = vld [vmem:[#allocation78_spill] sm:$0xff] }
 0x54f   :  { %5639 = vmatprep.subr.bf16.mxu0 %v8738_v2  ;;  %5671 = vmatprep.subr.bf16.mxu1 %v8739_v4 }
 0x552   :  { %5641 = vmatpush1.bf16.msra.mxu0 %v8740_v20  ;;  %5673 = vmatpush1.bf16.msra.mxu1 %v8741_v14 }
 0x553   :  { %5643 = vmatprep.subr.bf16.mxu0 %v8742_v36  ;;  %5675 = vmatprep.subr.bf16.mxu1 %v8743_v34 }
 0x556   :  { %5645 = vmatpush1.bf16.msra.mxu0 %v8744_v55  ;;  %5677 = vmatpush1.bf16.msra.mxu1 %v8745_v5 }
 0x557   :  { %5679 = vmatprep.subr.bf16.mxu0 %v8746_v58  ;;  %5711 = vmatprep.subr.bf16.mxu1 %v8747_v19 }
 0x5ec   :  { %v2473_v23 = vpop.f32.mrb[22].mxu0  ;;  %v2544_v2 = vpop.f32.mrb[22].mxu1 }
 0x5ed   :  { %v2549_v4 = vadd.f32 %v2473_v23, %v8748_v16  ;;  %v2475_v13 = vpop.f32.mrb[23].mxu0  ;;  %v2546_v20 = vpop.f32.mrb[23].mxu1  ;;  %v2551_v5 = vadd.f32 %v2544_v2, %v8689_v54 }
 0x5ee   :  { %v2550_v14 = vadd.f32 %v2475_v13, %v8688_v40  ;;  %v2552_v55 = vadd.f32 %v2546_v20, %v8627_v17 }
 0x5ef   :  { %v4638_v10 = vmul.f32 -1.442695, %v2549_v4 }
 0x5f0   :  { %v4639_v36 = vmul.f32 -1.442695, %v2550_v14  ;;  %v4640_v34 = vmul.f32 -1.442695, %v2552_v55 }
 0x5f1   :  { %6564 = vpow2.f32 %v4638_v10 }
 0x5f2   :  { %6566 = vpow2.f32 %v4639_v36 }
 0x5f3   :  { %6568 = vpow2.f32 %v4640_v34 }
 0x5f4   :  { %6570 = vtanh.f32 %v2551_v5 }
 0x5fb   :  { %v6565_v58 = vpop.eup %6564 }
 0x5fc   :  { %v6567_v6 = vpop.eup %6566  ;;  %v2556_v19 = vadd.f32 1.0, %v6565_v58 }
 0x5fd   :  { %v2562_v3 = vadd.f32 1.0, %v6567_v6  ;;  %v6569_v23 = vpop.eup %6568 }
 0x5fe   :  { %6572 = vrcp.f32 %v2556_v19  ;;  %v6571_v16 = vpop.eup %6570  ;;  %v2569_v10 = vadd.f32 1.0, %v6569_v23 }
 0x5ff   :  { %6574 = vrcp.f32 %v2562_v3 }
 0x600   :  { %6576 = vrcp.f32 %v2569_v10 }
 0x608   :  { %v6573_v13 = vpop.eup %6572 }
 0x609   :  { %v6575_v4 = vpop.eup %6574  ;;  %v2573_v14 = vmul.f32 %v6573_v13, %v6571_v16 }
 0x60a   :  { %v2572_v36 = vmul.f32 %v6575_v4, %v7701_v42  ;;  %v6577_v42 = vpop.eup %6576 }
 0x60c   :  { %v7819_v20 = vadd.f32 %v2573_v14, %v2572_v36  ;;  %v2643_v55 = vpop.f32.mrb[8].mxu0  ;;  %v2714_v2 = vpop.f32.mrb[8].mxu1 }
 0x60d   :  { %v6350_v58 = vadd.f32 %v2643_v55, %v8630_v27  ;;  %v2645_v34 = vpop.f32.mrb[9].mxu0  ;;  %v2716_v5 = vpop.f32.mrb[9].mxu1  ;;  %v6366_v4 = vadd.f32 %v2714_v2, %v7368_v49 }
 0x60e   :  { %v6351_v6 = vadd.f32 %v2645_v34, %v8569_v45  ;;  %6578 = vtanh.f32 %v7819_v20  ;;  %v6367_v16 = vadd.f32 %v2716_v5, %v8570_v35 }
 0x60f   :  { %v4641_v3 = vmul.f32 -1.442695, %v6350_v58 }
 0x610   :  { %v4642_v19 = vmul.f32 -1.442695, %v6351_v6  ;;  %v4643_v13 = vmul.f32 -1.442695, %v6367_v16 }
 0x611   :  { %6580 = vpow2.f32 %v4641_v3 }
 0x612   :  { %6582 = vpow2.f32 %v4642_v19 }
 0x613   :  { %6584 = vpow2.f32 %v4643_v13 }
 0x614   :  { %6586 = vtanh.f32 %v6366_v4  ;;  %v8749_v4 = vld [vmem:[#allocation21_spill] sm:$0xff] }
 0x618   :  { %v6579_v23 = vpop.eup %6578 }
 0x619   :  { %v2576_v14 = vmul.f32 %v6579_v23, %v6577_v42 }
 0x61b   :  { %v6581_v10 = vpop.eup %6580  ;;  %2812 = vmatmul.mubr.f32.vlgmr.msra.gmra.mrb[24].mxu0 %v2576_v14  ;;  %2883 = vmatmul.mubr.f32.vlgmr.msra.gmra.mrb[24].mxu1 %v2576_v14  ;;  %v8750_v14 = vld [vmem:[#allocation22_spill] sm:$0xff] }
 0x61c   :  { %v6583_v36 = vpop.eup %6582  ;;  %v2726_v55 = vadd.f32 1.0, %v6581_v10  ;;  %5681 = vmatpush1.bf16.msra.mxu0 %v8571_v25  ;;  %5713 = vmatpush1.bf16.msra.mxu1 %v8572_v1  ;;  %v8751_v10 = vld [vmem:[#allocation23_spill] sm:$0xff] }
 0x61d   :  { %v2732_v58 = vadd.f32 1.0, %v6583_v36  ;;  %5683 = vmatprep.subr.bf16.mxu0 %v8631_v33  ;;  %5715 = vmatprep.subr.bf16.mxu1 %v8632_v28  ;;  %v6585_v2 = vpop.eup %6584  ;;  %v8752_v36 = vld [vmem:[#allocation24_spill] sm:$0xff] }
 0x61e   :  { %6588 = vrcp.f32 %v2726_v55  ;;  %2953 = vmatprep.mubr.f32.mxu0 %v8506_v8  ;;  %3024 = vmatprep.mubr.f32.mxu1 %v8506_v8  ;;  %v6587_v34 = vpop.eup %6586  ;;  %v2739_v19 = vadd.f32 1.0, %v6585_v2  ;;  %v8753_v55 = vld [vmem:[#allocation25_spill] sm:$0xff]  ;;  %v8755_v2 = vld [vmem:[#allocation27_spill] sm:$0xff] }
 0x61f   :  { %6590 = vrcp.f32 %v2732_v58  ;;  %v8754_v58 = vld [vmem:[#allocation26_spill] sm:$0xff] }
 0x620   :  { %5685 = vmatpush1.bf16.msra.mxu0 %v8633_v12  ;;  %5717 = vmatpush1.bf16.msra.mxu1 %v8634_v22  ;;  %6592 = vrcp.f32 %v2739_v19  ;;  %v8760_v19 = vld [vmem:[#allocation32_spill] sm:$0xff] }
 0x621   :  { %5687 = vmatprep.subr.bf16.mxu0 %v8690_v9  ;;  %5719 = vmatprep.subr.bf16.mxu1 %v8691_v18 }
 0x624   :  { %5689 = vmatpush1.bf16.msra.mxu0 %v8692_v32  ;;  %5721 = vmatpush1.bf16.msra.mxu1 %v8693_v29 }
 0x625   :  { %5691 = vmatprep.subr.bf16.mxu0 %v8694_v26  ;;  %5723 = vmatprep.subr.bf16.mxu1 %v8695_v62 }
 0x628   :  { %v6589_v5 = vpop.eup %6588  ;;  %5693 = vmatpush1.bf16.msra.mxu0 %v8696_v44  ;;  %5725 = vmatpush1.bf16.msra.mxu1 %v8584_v59 }
 0x629   :  { %v6591_v6 = vpop.eup %6590  ;;  %v2743_v3 = vmul.f32 %v6589_v5, %v6587_v34  ;;  %5695 = vmatprep.subr.bf16.mxu0 %v8585_v61  ;;  %5727 = vmatprep.subr.bf16.mxu1 %v8586_v41  ;;  %v8756_v34 = vld [vmem:[#allocation28_spill] sm:$0xff]  ;;  %v8757_v5 = vld [vmem:[#allocation29_spill] sm:$0xff] }
 0x62a   :  { %v2742_v16 = vmul.f32 %v6591_v6, %v7727_v48  ;;  %v6593_v48 = vpop.eup %6592  ;;  %v8758_v6 = vld [vmem:[#allocation30_spill] sm:$0xff] }
 0x62c   :  { %v7845_v42 = vadd.f32 %v2743_v3, %v2742_v16  ;;  %5697 = vmatpush1.bf16.msra.mxu0 %v8642_v46  ;;  %5729 = vmatpush1.bf16.msra.mxu1 %v8643_v52  ;;  %v8759_v3 = vld [vmem:[#allocation31_spill] sm:$0xff]  ;;  %v8761_v16 = vld [vmem:[#allocation33_spill] sm:$0xff] }
 0x62d   :  { %5699 = vmatprep.subr.bf16.mxu0 %v8644_v43  ;;  %5731 = vmatprep.subr.bf16.mxu1 %v8645_v15 }
 0x62e   :  { %6594 = vtanh.f32 %v7845_v42 }
 0x630   :  { %5701 = vmatpush1.bf16.msra.mxu0 %v8646_v30  ;;  %5733 = vmatpush1.bf16.msra.mxu1 %v8647_v57 }
 0x631   :  { %5703 = vmatprep.subr.bf16.mxu0 %v8648_v39  ;;  %5735 = vmatprep.subr.bf16.mxu1 %v8594_v0 }
 0x634   :  { %5705 = vmatpush1.bf16.msra.mxu0 %v8595_v37  ;;  %5737 = vmatpush1.bf16.msra.mxu1 %v8596_v24 }
 0x635   :  { %5707 = vmatprep.subr.bf16.mxu0 %v8597_v7  ;;  %5739 = vmatprep.subr.bf16.mxu1 %v8598_v31 }
 0x638   :  { %v6595_v23 = vpop.eup %6594  ;;  %5709 = vmatpush1.bf16.msra.mxu0 %v8599_v51  ;;  %5741 = vmatpush1.bf16.msra.mxu1 %v8600_v38 }
 0x639   :  { %5743 = vmatprep.subr.bf16.mxu0 %v8601_v11  ;;  %5775 = vmatprep.subr.bf16.mxu1 %v8602_v21  ;;  %v2746_v13 = vmul.f32 %v6595_v23, %v6593_v48  ;;  %v8762_v48 = vld [vmem:[#allocation34_spill] sm:$0xff]  ;;  %v8763_v23 = vld [vmem:[#allocation35_spill] sm:$0xff] }
 0x63b   :  { %2954 = vmatmul.mubr.f32.vlgmr.msra.gmra.mrb[24].mxu0 %v2746_v13  ;;  %3025 = vmatmul.mubr.f32.vlgmr.msra.gmra.mrb[24].mxu1 %v2746_v13 }
 0x63c   :  { %5745 = vmatpush1.bf16.msra.mxu0 %v7032_v47  ;;  %5777 = vmatpush1.bf16.msra.mxu1 %v7035_v50 }
 0x63d   :  { %5747 = vmatprep.subr.bf16.mxu0 %v7038_v53  ;;  %5779 = vmatprep.subr.bf16.mxu1 %v7040_v56 }
 0x63e   :  { %3123 = vmatprep.mubr.f32.mxu0 %v8506_v8  ;;  %3194 = vmatprep.mubr.f32.mxu1 %v8506_v8 }
 0x640   :  { %5749 = vmatpush1.bf16.msra.mxu0 %v7043_v60  ;;  %5781 = vmatpush1.bf16.msra.mxu1 %v7047_v63 }
 0x641   :  { %5751 = vmatprep.subr.bf16.mxu0 %v8749_v4  ;;  %5783 = vmatprep.subr.bf16.mxu1 %v8750_v14 }
 0x644   :  { %5753 = vmatpush1.bf16.msra.mxu0 %v8751_v10  ;;  %5785 = vmatpush1.bf16.msra.mxu1 %v8752_v36 }
 0x645   :  { %5755 = vmatprep.subr.bf16.mxu0 %v8753_v55  ;;  %5787 = vmatprep.subr.bf16.mxu1 %v8754_v58  ;;  %v8764_v55 = vld [vmem:[#allocation36_spill] sm:$0xff]  ;;  %v8765_v58 = vld [vmem:[#allocation37_spill] sm:$0xff] }
 0x648   :  { %5757 = vmatpush1.bf16.msra.mxu0 %v8755_v2  ;;  %5789 = vmatpush1.bf16.msra.mxu1 %v8756_v34  ;;  %v8766_v2 = vld [vmem:[#allocation38_spill] sm:$0xff]  ;;  %v8767_v34 = vld [vmem:[#allocation39_spill] sm:$0xff] }
 0x649   :  { %5759 = vmatprep.subr.bf16.mxu0 %v8757_v5  ;;  %5791 = vmatprep.subr.bf16.mxu1 %v8758_v6  ;;  %v8768_v5 = vld [vmem:[#allocation40_spill] sm:$0xff]  ;;  %v8769_v6 = vld [vmem:[#allocation41_spill] sm:$0xff] }
 0x64c   :  { %5761 = vmatpush1.bf16.msra.mxu0 %v8759_v3  ;;  %5793 = vmatpush1.bf16.msra.mxu1 %v8760_v19  ;;  %v8770_v3 = vld [vmem:[#allocation42_spill] sm:$0xff]  ;;  %v8771_v19 = vld [vmem:[#allocation43_spill] sm:$0xff] }
 0x64d   :  { %5763 = vmatprep.subr.bf16.mxu0 %v8761_v16  ;;  %5795 = vmatprep.subr.bf16.mxu1 %v8762_v48  ;;  %v8772_v16 = vld [vmem:[#allocation44_spill] sm:$0xff]  ;;  %v8773_v48 = vld [vmem:[#allocation45_spill] sm:$0xff] }
 0x650   :  { %5765 = vmatpush1.bf16.msra.mxu0 %v8763_v23  ;;  %5797 = vmatpush1.bf16.msra.mxu1 %v8764_v55  ;;  %v8774_v23 = vld [vmem:[#allocation46_spill] sm:$0xff]  ;;  %v8807_v55 = vld [vmem:[#allocation112_spill] sm:$0xff] }
 0x651   :  { %5767 = vmatprep.subr.bf16.mxu0 %v8765_v58  ;;  %5799 = vmatprep.subr.bf16.mxu1 %v8766_v2  ;;  %v8775_v58 = vld [vmem:[#allocation47_spill] sm:$0xff]  ;;  %v8776_v2 = vld [vmem:[#allocation48_spill] sm:$0xff] }
 0x654   :  { %5769 = vmatpush1.bf16.msra.mxu0 %v8767_v34  ;;  %5801 = vmatpush1.bf16.msra.mxu1 %v8768_v5  ;;  %v8777_v34 = vld [vmem:[#allocation49_spill] sm:$0xff]  ;;  %v8778_v5 = vld [vmem:[#allocation50_spill] sm:$0xff] }
 0x655   :  { %5771 = vmatprep.subr.bf16.mxu0 %v8769_v6  ;;  %5803 = vmatprep.subr.bf16.mxu1 %v8770_v3  ;;  %v8788_v3 = vld [vmem:[#allocation60_spill] sm:$0xff]  ;;  %v8789_v6 = vld [vmem:[#allocation61_spill] sm:$0xff] }
 0x658   :  { %5773 = vmatpush1.bf16.msra.mxu0 %v8771_v19  ;;  %5805 = vmatpush1.bf16.msra.mxu1 %v8772_v16  ;;  %v8779_v19 = vld [vmem:[#allocation51_spill] sm:$0xff]  ;;  %v8780_v16 = vld [vmem:[#allocation52_spill] sm:$0xff] }
 0x659   :  { %5807 = vmatprep.subr.bf16.mxu0 %v8773_v48  ;;  %5839 = vmatprep.subr.bf16.mxu1 %v8774_v23  ;;  %v8781_v48 = vld [vmem:[#allocation53_spill] sm:$0xff]  ;;  %v8782_v23 = vld [vmem:[#allocation54_spill] sm:$0xff] }
 0x65b   :  { %3124 = vmatmul.mubr.f32.vlgmr.msra.gmra.mrb[10].mxu0 %v2746_v13  ;;  %3195 = vmatmul.mubr.f32.vlgmr.msra.gmra.mrb[10].mxu1 %v2746_v13  ;;  %v8783_v13 = vld [vmem:[#allocation55_spill] sm:$0xff] }
 0x65c   :  { %5809 = vmatpush1.bf16.msra.mxu0 %v8775_v58  ;;  %5841 = vmatpush1.bf16.msra.mxu1 %v8776_v2  ;;  %v8784_v58 = vld [vmem:[#allocation56_spill] sm:$0xff]  ;;  %v8785_v2 = vld [vmem:[#allocation57_spill] sm:$0xff] }
 0x65d   :  { %5811 = vmatprep.subr.bf16.mxu0 %v8777_v34  ;;  %5843 = vmatprep.subr.bf16.mxu1 %v8778_v5  ;;  %v8786_v34 = vld [vmem:[#allocation58_spill] sm:$0xff]  ;;  %v8787_v5 = vld [vmem:[#allocation59_spill] sm:$0xff] }
 0x65e   :  { %3293 = vmatprep.mubr.f32.mxu0 %v8506_v8  ;;  %3364 = vmatprep.mubr.f32.mxu1 %v8506_v8 }
 0x660   :  { %5813 = vmatpush1.bf16.msra.mxu0 %v8779_v19  ;;  %5845 = vmatpush1.bf16.msra.mxu1 %v8780_v16  ;;  %v8790_v19 = vld [vmem:[#allocation62_spill] sm:$0xff]  ;;  %v8791_v16 = vld [vmem:[#allocation63_spill] sm:$0xff] }
 0x661   :  { %5815 = vmatprep.subr.bf16.mxu0 %v8781_v48  ;;  %5847 = vmatprep.subr.bf16.mxu1 %v8782_v23  ;;  %v8792_v48 = vld [vmem:[#allocation64_spill] sm:$0xff]  ;;  %v8793_v23 = vld [vmem:[#allocation65_spill] sm:$0xff] }
 0x664   :  { %5817 = vmatpush1.bf16.msra.mxu0 %v8783_v13  ;;  %5849 = vmatpush1.bf16.msra.mxu1 %v8784_v58  ;;  %v8794_v13 = vld [vmem:[#allocation66_spill] sm:$0xff]  ;;  %v8795_v58 = vld [vmem:[#allocation67_spill] sm:$0xff] }
 0x665   :  { %5819 = vmatprep.subr.bf16.mxu0 %v8785_v2  ;;  %5851 = vmatprep.subr.bf16.mxu1 %v8786_v34  ;;  %v8796_v2 = vld [vmem:[#allocation68_spill] sm:$0xff]  ;;  %v8797_v34 = vld [vmem:[#allocation69_spill] sm:$0xff] }
 0x668   :  { %5821 = vmatpush1.bf16.msra.mxu0 %v8787_v5  ;;  %5853 = vmatpush1.bf16.msra.mxu1 %v8788_v3  ;;  %v8798_v5 = vld [vmem:[#allocation70_spill] sm:$0xff]  ;;  %v8799_v3 = vld [vmem:[#allocation71_spill] sm:$0xff] }
 0x669   :  { %5823 = vmatprep.subr.bf16.mxu0 %v8789_v6  ;;  %5855 = vmatprep.subr.bf16.mxu1 %v8790_v19  ;;  %v8800_v6 = vld [vmem:[#allocation72_spill] sm:$0xff]  ;;  %v8801_v19 = vld [vmem:[#allocation73_spill] sm:$0xff] }
 0x66c   :  { %5825 = vmatpush1.bf16.msra.mxu0 %v8791_v16  ;;  %5857 = vmatpush1.bf16.msra.mxu1 %v8792_v48  ;;  %v8802_v16 = vld [vmem:[#allocation74_spill] sm:$0xff]  ;;  %v8803_v48 = vld [vmem:[#allocation75_spill] sm:$0xff] }
 0x66d   :  { %5827 = vmatprep.subr.bf16.mxu0 %v8793_v23  ;;  %5859 = vmatprep.subr.bf16.mxu1 %v8794_v13  ;;  %v8804_v23 = vld [vmem:[#allocation76_spill] sm:$0xff]  ;;  %v8805_v13 = vld [vmem:[#allocation77_spill] sm:$0xff] }
 0x670   :  { %5829 = vmatpush1.bf16.msra.mxu0 %v8795_v58  ;;  %5861 = vmatpush1.bf16.msra.mxu1 %v8796_v2  ;;  %v8806_v58 = vld [vmem:[#allocation78_spill] sm:$0xff] }
 0x671   :  { %5831 = vmatprep.subr.bf16.mxu0 %v8797_v34  ;;  %5863 = vmatprep.subr.bf16.mxu1 %v8798_v5 }
 0x674   :  { %5833 = vmatpush1.bf16.msra.mxu0 %v8799_v3  ;;  %5865 = vmatpush1.bf16.msra.mxu1 %v8800_v6 }
 0x675   :  { %5835 = vmatprep.subr.bf16.mxu0 %v8801_v19  ;;  %5867 = vmatprep.subr.bf16.mxu1 %v8802_v16 }
 0x678   :  { %5837 = vmatpush1.bf16.msra.mxu0 %v8803_v48  ;;  %5869 = vmatpush1.bf16.msra.mxu1 %v8804_v23 }
 0x679   :  { %5871 = vmatprep.subr.bf16.mxu0 %v8805_v13  ;;  %5903 = vmatprep.subr.bf16.mxu1 %v8806_v58 }
 0x70e   :  { %v2955_v2 = vpop.f32.mrb[24].mxu0  ;;  %v3026_v34 = vpop.f32.mrb[24].mxu1 }
 0x70f   :  { %v3031_v5 = vadd.f32 %v2955_v2, %v8807_v55  ;;  %v2957_v36 = vpop.f32.mrb[25].mxu0  ;;  %v3028_v3 = vpop.f32.mrb[25].mxu1  ;;  %v3033_v23 = vadd.f32 %v3026_v34, %v8689_v54 }
 0x710   :  { %v3032_v6 = vadd.f32 %v2957_v36, %v8688_v40  ;;  %v3034_v48 = vadd.f32 %v3028_v3, %v8627_v17 }
 0x711   :  { %v4644_v10 = vmul.f32 -1.442695, %v3031_v5 }
 0x712   :  { %v4645_v19 = vmul.f32 -1.442695, %v3032_v6  ;;  %v4646_v16 = vmul.f32 -1.442695, %v3034_v48 }
 0x713   :  { %6596 = vpow2.f32 %v4644_v10 }
 0x714   :  { %6598 = vpow2.f32 %v4645_v19 }
 0x715   :  { %6600 = vpow2.f32 %v4646_v16 }
 0x716   :  { %6602 = vtanh.f32 %v3033_v23 }
 0x71d   :  { %v6597_v13 = vpop.eup %6596 }
 0x71e   :  { %v6599_v14 = vpop.eup %6598  ;;  %v3038_v58 = vadd.f32 1.0, %v6597_v13 }
 0x71f   :  { %v3044_v4 = vadd.f32 1.0, %v6599_v14  ;;  %v6601_v2 = vpop.eup %6600 }
 0x720   :  { %6604 = vrcp.f32 %v3038_v58  ;;  %v6603_v55 = vpop.eup %6602  ;;  %v3051_v10 = vadd.f32 1.0, %v6601_v2 }
 0x721   :  { %6606 = vrcp.f32 %v3044_v4 }
 0x722   :  { %6608 = vrcp.f32 %v3051_v10 }
 0x72a   :  { %v6605_v36 = vpop.eup %6604 }
 0x72b   :  { %v6607_v5 = vpop.eup %6606  ;;  %v3055_v6 = vmul.f32 %v6605_v36, %v6603_v55 }
 0x72c   :  { %v3054_v19 = vmul.f32 %v6607_v5, %v7819_v20  ;;  %v6609_v20 = vpop.eup %6608 }
 0x72e   :  { %v7937_v3 = vadd.f32 %v3055_v6, %v3054_v19  ;;  %v3125_v48 = vpop.f32.mrb[10].mxu0  ;;  %v3196_v34 = vpop.f32.mrb[10].mxu1 }
 0x72f   :  { %v6352_v13 = vadd.f32 %v3125_v48, %v8630_v27  ;;  %v3127_v16 = vpop.f32.mrb[11].mxu0  ;;  %v3198_v23 = vpop.f32.mrb[11].mxu1  ;;  %v6368_v5 = vadd.f32 %v3196_v34, %v7368_v49 }
 0x730   :  { %v6353_v14 = vadd.f32 %v3127_v16, %v8569_v45  ;;  %6610 = vtanh.f32 %v7937_v3  ;;  %v6369_v55 = vadd.f32 %v3198_v23, %v8570_v35 }
 0x731   :  { %v4647_v4 = vmul.f32 -1.442695, %v6352_v13 }
 0x732   :  { %v4648_v58 = vmul.f32 -1.442695, %v6353_v14  ;;  %v4649_v36 = vmul.f32 -1.442695, %v6369_v55 }
 0x733   :  { %6612 = vpow2.f32 %v4647_v4 }
 0x734   :  { %6614 = vpow2.f32 %v4648_v58 }
 0x735   :  { %6616 = vpow2.f32 %v4649_v36 }
 0x736   :  { %6618 = vtanh.f32 %v6368_v5  ;;  %v8808_v5 = vld [vmem:[#allocation21_spill] sm:$0xff] }
 0x73a   :  { %v6611_v2 = vpop.eup %6610 }
 0x73b   :  { %v3058_v6 = vmul.f32 %v6611_v2, %v6609_v20 }
 0x73d   :  { %v6613_v10 = vpop.eup %6612  ;;  %3294 = vmatmul.mubr.f32.vlgmr.msra.gmra.mrb[26].mxu0 %v3058_v6  ;;  %3365 = vmatmul.mubr.f32.vlgmr.msra.gmra.mrb[26].mxu1 %v3058_v6  ;;  %v8809_v6 = vld [vmem:[#allocation22_spill] sm:$0xff] }
 0x73e   :  { %v6615_v19 = vpop.eup %6614  ;;  %v3208_v48 = vadd.f32 1.0, %v6613_v10  ;;  %5873 = vmatpush1.bf16.msra.mxu0 %v8571_v25  ;;  %5905 = vmatpush1.bf16.msra.mxu1 %v8572_v1  ;;  %v8810_v10 = vld [vmem:[#allocation23_spill] sm:$0xff] }
 0x73f   :  { %v3214_v13 = vadd.f32 1.0, %v6615_v19  ;;  %5875 = vmatprep.subr.bf16.mxu0 %v8631_v33  ;;  %5907 = vmatprep.subr.bf16.mxu1 %v8632_v28  ;;  %v6617_v34 = vpop.eup %6616  ;;  %v8811_v19 = vld [vmem:[#allocation24_spill] sm:$0xff] }
 0x740   :  { %6620 = vrcp.f32 %v3208_v48  ;;  %3435 = vmatprep.mubr.f32.mxu0 %v8506_v8  ;;  %3506 = vmatprep.mubr.f32.mxu1 %v8506_v8  ;;  %v6619_v16 = vpop.eup %6618  ;;  %v3221_v58 = vadd.f32 1.0, %v6617_v34  ;;  %v8812_v48 = vld [vmem:[#allocation25_spill] sm:$0xff]  ;;  %v8814_v34 = vld [vmem:[#allocation27_spill] sm:$0xff] }
 0x741   :  { %6622 = vrcp.f32 %v3214_v13  ;;  %v8813_v13 = vld [vmem:[#allocation26_spill] sm:$0xff] }
 0x742   :  { %5877 = vmatpush1.bf16.msra.mxu0 %v8633_v12  ;;  %5909 = vmatpush1.bf16.msra.mxu1 %v8634_v22  ;;  %6624 = vrcp.f32 %v3221_v58  ;;  %v8819_v58 = vld [vmem:[#allocation32_spill] sm:$0xff] }
 0x743   :  { %5879 = vmatprep.subr.bf16.mxu0 %v8690_v9  ;;  %5911 = vmatprep.subr.bf16.mxu1 %v8691_v18 }
 0x746   :  { %5881 = vmatpush1.bf16.msra.mxu0 %v8692_v32  ;;  %5913 = vmatpush1.bf16.msra.mxu1 %v8693_v29 }
 0x747   :  { %5883 = vmatprep.subr.bf16.mxu0 %v8694_v26  ;;  %5915 = vmatprep.subr.bf16.mxu1 %v8695_v62 }
 0x74a   :  { %v6621_v23 = vpop.eup %6620  ;;  %5885 = vmatpush1.bf16.msra.mxu0 %v8696_v44  ;;  %5917 = vmatpush1.bf16.msra.mxu1 %v8584_v59 }
 0x74b   :  { %v6623_v14 = vpop.eup %6622  ;;  %v3225_v4 = vmul.f32 %v6621_v23, %v6619_v16  ;;  %5887 = vmatprep.subr.bf16.mxu0 %v8585_v61  ;;  %5919 = vmatprep.subr.bf16.mxu1 %v8586_v41  ;;  %v8815_v16 = vld [vmem:[#allocation28_spill] sm:$0xff]  ;;  %v8816_v23 = vld [vmem:[#allocation29_spill] sm:$0xff] }
 0x74c   :  { %v3224_v55 = vmul.f32 %v6623_v14, %v7845_v42  ;;  %v6625_v42 = vpop.eup %6624  ;;  %v8817_v14 = vld [vmem:[#allocation30_spill] sm:$0xff] }
 0x74e   :  { %v7963_v20 = vadd.f32 %v3225_v4, %v3224_v55  ;;  %5889 = vmatpush1.bf16.msra.mxu0 %v8642_v46  ;;  %5921 = vmatpush1.bf16.msra.mxu1 %v8643_v52  ;;  %v8818_v4 = vld [vmem:[#allocation31_spill] sm:$0xff]  ;;  %v8820_v55 = vld [vmem:[#allocation33_spill] sm:$0xff] }
 0x74f   :  { %5891 = vmatprep.subr.bf16.mxu0 %v8644_v43  ;;  %5923 = vmatprep.subr.bf16.mxu1 %v8645_v15 }
 0x750   :  { %6626 = vtanh.f32 %v7963_v20 }
 0x752   :  { %5893 = vmatpush1.bf16.msra.mxu0 %v8646_v30  ;;  %5925 = vmatpush1.bf16.msra.mxu1 %v8647_v57 }
 0x753   :  { %5895 = vmatprep.subr.bf16.mxu0 %v8648_v39  ;;  %5927 = vmatprep.subr.bf16.mxu1 %v8594_v0 }
 0x756   :  { %5897 = vmatpush1.bf16.msra.mxu0 %v8595_v37  ;;  %5929 = vmatpush1.bf16.msra.mxu1 %v8596_v24 }
 0x757   :  { %5899 = vmatprep.subr.bf16.mxu0 %v8597_v7  ;;  %5931 = vmatprep.subr.bf16.mxu1 %v8598_v31 }
 0x75a   :  { %v6627_v2 = vpop.eup %6626  ;;  %5901 = vmatpush1.bf16.msra.mxu0 %v8599_v51  ;;  %5933 = vmatpush1.bf16.msra.mxu1 %v8600_v38 }
 0x75b   :  { %v3228_v36 = vmul.f32 %v6627_v2, %v6625_v42  ;;  %5935 = vmatprep.subr.bf16.mxu0 %v8601_v11  ;;  %5967 = vmatprep.subr.bf16.mxu1 %v8602_v21  ;;  %v8821_v42 = vld [vmem:[#allocation34_spill] sm:$0xff]  ;;  %v8822_v2 = vld [vmem:[#allocation35_spill] sm:$0xff] }
 0x75d   :  { %3436 = vmatmul.mubr.f32.vlgmr.msra.gmra.mrb[26].mxu0 %v3228_v36  ;;  %3507 = vmatmul.mubr.f32.vlgmr.msra.gmra.mrb[26].mxu1 %v3228_v36 }
 0x75e   :  { %5937 = vmatpush1.bf16.msra.mxu0 %v7032_v47  ;;  %5969 = vmatpush1.bf16.msra.mxu1 %v7035_v50 }
 0x75f   :  { %5939 = vmatprep.subr.bf16.mxu0 %v7038_v53  ;;  %5971 = vmatprep.subr.bf16.mxu1 %v7040_v56 }
 0x760   :  { %3605 = vmatprep.mubr.f32.mxu0 %v8506_v8  ;;  %3676 = vmatprep.mubr.f32.mxu1 %v8506_v8 }
 0x762   :  { %5941 = vmatpush1.bf16.msra.mxu0 %v7043_v60  ;;  %5973 = vmatpush1.bf16.msra.mxu1 %v7047_v63 }
 0x763   :  { %5943 = vmatprep.subr.bf16.mxu0 %v8808_v5  ;;  %5975 = vmatprep.subr.bf16.mxu1 %v8809_v6 }
 0x766   :  { %5945 = vmatpush1.bf16.msra.mxu0 %v8810_v10  ;;  %5977 = vmatpush1.bf16.msra.mxu1 %v8811_v19 }
 0x767   :  { %5947 = vmatprep.subr.bf16.mxu0 %v8812_v48  ;;  %5979 = vmatprep.subr.bf16.mxu1 %v8813_v13  ;;  %v8823_v48 = vld [vmem:[#allocation36_spill] sm:$0xff]  ;;  %v8824_v13 = vld [vmem:[#allocation37_spill] sm:$0xff] }
 0x76a   :  { %5949 = vmatpush1.bf16.msra.mxu0 %v8814_v34  ;;  %5981 = vmatpush1.bf16.msra.mxu1 %v8815_v16  ;;  %v8825_v34 = vld [vmem:[#allocation38_spill] sm:$0xff]  ;;  %v8826_v16 = vld [vmem:[#allocation39_spill] sm:$0xff] }
 0x76b   :  { %5951 = vmatprep.subr.bf16.mxu0 %v8816_v23  ;;  %5983 = vmatprep.subr.bf16.mxu1 %v8817_v14  ;;  %v8827_v23 = vld [vmem:[#allocation40_spill] sm:$0xff]  ;;  %v8828_v14 = vld [vmem:[#allocation41_spill] sm:$0xff] }
 0x76e   :  { %5953 = vmatpush1.bf16.msra.mxu0 %v8818_v4  ;;  %5985 = vmatpush1.bf16.msra.mxu1 %v8819_v58  ;;  %v8829_v4 = vld [vmem:[#allocation42_spill] sm:$0xff]  ;;  %v8830_v58 = vld [vmem:[#allocation43_spill] sm:$0xff] }
 0x76f   :  { %5955 = vmatprep.subr.bf16.mxu0 %v8820_v55  ;;  %5987 = vmatprep.subr.bf16.mxu1 %v8821_v42  ;;  %v8831_v55 = vld [vmem:[#allocation44_spill] sm:$0xff]  ;;  %v8832_v42 = vld [vmem:[#allocation45_spill] sm:$0xff] }
 0x772   :  { %5957 = vmatpush1.bf16.msra.mxu0 %v8822_v2  ;;  %5989 = vmatpush1.bf16.msra.mxu1 %v8823_v48  ;;  %v8833_v2 = vld [vmem:[#allocation46_spill] sm:$0xff]  ;;  %v8866_v48 = vld [vmem:[#allocation112_spill] sm:$0xff] }
 0x773   :  { %5959 = vmatprep.subr.bf16.mxu0 %v8824_v13  ;;  %5991 = vmatprep.subr.bf16.mxu1 %v8825_v34  ;;  %v8834_v13 = vld [vmem:[#allocation47_spill] sm:$0xff]  ;;  %v8835_v34 = vld [vmem:[#allocation48_spill] sm:$0xff] }
 0x776   :  { %5961 = vmatpush1.bf16.msra.mxu0 %v8826_v16  ;;  %5993 = vmatpush1.bf16.msra.mxu1 %v8827_v23  ;;  %v8836_v16 = vld [vmem:[#allocation49_spill] sm:$0xff]  ;;  %v8837_v23 = vld [vmem:[#allocation50_spill] sm:$0xff] }
 0x777   :  { %5963 = vmatprep.subr.bf16.mxu0 %v8828_v14  ;;  %5995 = vmatprep.subr.bf16.mxu1 %v8829_v4  ;;  %v8847_v4 = vld [vmem:[#allocation60_spill] sm:$0xff]  ;;  %v8848_v14 = vld [vmem:[#allocation61_spill] sm:$0xff] }
 0x77a   :  { %5965 = vmatpush1.bf16.msra.mxu0 %v8830_v58  ;;  %5997 = vmatpush1.bf16.msra.mxu1 %v8831_v55  ;;  %v8838_v58 = vld [vmem:[#allocation51_spill] sm:$0xff]  ;;  %v8839_v55 = vld [vmem:[#allocation52_spill] sm:$0xff] }
 0x77b   :  { %5999 = vmatprep.subr.bf16.mxu0 %v8832_v42  ;;  %6031 = vmatprep.subr.bf16.mxu1 %v8833_v2  ;;  %v8840_v42 = vld [vmem:[#allocation53_spill] sm:$0xff]  ;;  %v8841_v2 = vld [vmem:[#allocation54_spill] sm:$0xff] }
 0x77d   :  { %3606 = vmatmul.mubr.f32.vlgmr.msra.gmra.mrb[12].mxu0 %v3228_v36  ;;  %3677 = vmatmul.mubr.f32.vlgmr.msra.gmra.mrb[12].mxu1 %v3228_v36  ;;  %v8842_v36 = vld [vmem:[#allocation55_spill] sm:$0xff] }
 0x77e   :  { %6001 = vmatpush1.bf16.msra.mxu0 %v8834_v13  ;;  %6033 = vmatpush1.bf16.msra.mxu1 %v8835_v34  ;;  %v8843_v13 = vld [vmem:[#allocation56_spill] sm:$0xff]  ;;  %v8844_v34 = vld [vmem:[#allocation57_spill] sm:$0xff] }
 0x77f   :  { %6003 = vmatprep.subr.bf16.mxu0 %v8836_v16  ;;  %6035 = vmatprep.subr.bf16.mxu1 %v8837_v23  ;;  %v8845_v16 = vld [vmem:[#allocation58_spill] sm:$0xff]  ;;  %v8846_v23 = vld [vmem:[#allocation59_spill] sm:$0xff] }
 0x780   :  { %3775 = vmatprep.mubr.f32.mxu0 %v8506_v8  ;;  %3846 = vmatprep.mubr.f32.mxu1 %v8506_v8 }
 0x782   :  { %6005 = vmatpush1.bf16.msra.mxu0 %v8838_v58  ;;  %6037 = vmatpush1.bf16.msra.mxu1 %v8839_v55  ;;  %v8849_v58 = vld [vmem:[#allocation62_spill] sm:$0xff]  ;;  %v8850_v55 = vld [vmem:[#allocation63_spill] sm:$0xff] }
 0x783   :  { %6007 = vmatprep.subr.bf16.mxu0 %v8840_v42  ;;  %6039 = vmatprep.subr.bf16.mxu1 %v8841_v2  ;;  %v8851_v42 = vld [vmem:[#allocation64_spill] sm:$0xff]  ;;  %v8852_v2 = vld [vmem:[#allocation65_spill] sm:$0xff] }
 0x786   :  { %6009 = vmatpush1.bf16.msra.mxu0 %v8842_v36  ;;  %6041 = vmatpush1.bf16.msra.mxu1 %v8843_v13  ;;  %v8853_v36 = vld [vmem:[#allocation66_spill] sm:$0xff]  ;;  %v8854_v13 = vld [vmem:[#allocation67_spill] sm:$0xff] }
 0x787   :  { %6011 = vmatprep.subr.bf16.mxu0 %v8844_v34  ;;  %6043 = vmatprep.subr.bf16.mxu1 %v8845_v16  ;;  %v8855_v34 = vld [vmem:[#allocation68_spill] sm:$0xff]  ;;  %v8856_v16 = vld [vmem:[#allocation69_spill] sm:$0xff] }
 0x78a   :  { %6013 = vmatpush1.bf16.msra.mxu0 %v8846_v23  ;;  %6045 = vmatpush1.bf16.msra.mxu1 %v8847_v4  ;;  %v8857_v23 = vld [vmem:[#allocation70_spill] sm:$0xff]  ;;  %v8858_v4 = vld [vmem:[#allocation71_spill] sm:$0xff] }
 0x78b   :  { %6015 = vmatprep.subr.bf16.mxu0 %v8848_v14  ;;  %6047 = vmatprep.subr.bf16.mxu1 %v8849_v58  ;;  %v8859_v14 = vld [vmem:[#allocation72_spill] sm:$0xff]  ;;  %v8860_v58 = vld [vmem:[#allocation73_spill] sm:$0xff] }
 0x78e   :  { %6017 = vmatpush1.bf16.msra.mxu0 %v8850_v55  ;;  %6049 = vmatpush1.bf16.msra.mxu1 %v8851_v42  ;;  %v8861_v55 = vld [vmem:[#allocation74_spill] sm:$0xff]  ;;  %v8862_v42 = vld [vmem:[#allocation75_spill] sm:$0xff] }
 0x78f   :  { %6019 = vmatprep.subr.bf16.mxu0 %v8852_v2  ;;  %6051 = vmatprep.subr.bf16.mxu1 %v8853_v36  ;;  %v8863_v2 = vld [vmem:[#allocation76_spill] sm:$0xff]  ;;  %v8864_v36 = vld [vmem:[#allocation77_spill] sm:$0xff] }
 0x792   :  { %6021 = vmatpush1.bf16.msra.mxu0 %v8854_v13  ;;  %6053 = vmatpush1.bf16.msra.mxu1 %v8855_v34  ;;  %v8865_v13 = vld [vmem:[#allocation78_spill] sm:$0xff] }
 0x793   :  { %6023 = vmatprep.subr.bf16.mxu0 %v8856_v16  ;;  %6055 = vmatprep.subr.bf16.mxu1 %v8857_v23 }
 0x796   :  { %6025 = vmatpush1.bf16.msra.mxu0 %v8858_v4  ;;  %6057 = vmatpush1.bf16.msra.mxu1 %v8859_v14 }
 0x797   :  { %6027 = vmatprep.subr.bf16.mxu0 %v8860_v58  ;;  %6059 = vmatprep.subr.bf16.mxu1 %v8861_v55 }
 0x79a   :  { %6029 = vmatpush1.bf16.msra.mxu0 %v8862_v42  ;;  %6061 = vmatpush1.bf16.msra.mxu1 %v8863_v2 }
 0x79b   :  { %6063 = vmatprep.subr.bf16.mxu0 %v8864_v36  ;;  %6095 = vmatprep.subr.bf16.mxu1 %v8865_v13 }
 0x830   :  { %v3437_v34 = vpop.f32.mrb[26].mxu0  ;;  %v3508_v16 = vpop.f32.mrb[26].mxu1 }
 0x831   :  { %v3513_v23 = vadd.f32 %v3437_v34, %v8866_v48  ;;  %v3439_v19 = vpop.f32.mrb[27].mxu0  ;;  %v3510_v4 = vpop.f32.mrb[27].mxu1  ;;  %v3515_v2 = vadd.f32 %v3508_v16, %v8689_v54 }
 0x832   :  { %v3514_v14 = vadd.f32 %v3439_v19, %v8688_v40  ;;  %v3516_v42 = vadd.f32 %v3510_v4, %v8627_v17 }
 0x833   :  { %v4650_v10 = vmul.f32 -1.442695, %v3513_v23 }
 0x834   :  { %v4651_v58 = vmul.f32 -1.442695, %v3514_v14  ;;  %v4652_v55 = vmul.f32 -1.442695, %v3516_v42 }
 0x835   :  { %6628 = vpow2.f32 %v4650_v10 }
 0x836   :  { %6630 = vpow2.f32 %v4651_v58 }
 0x837   :  { %6632 = vpow2.f32 %v4652_v55 }
 0x838   :  { %6634 = vtanh.f32 %v3515_v2 }
 0x83f   :  { %v6629_v36 = vpop.eup %6628 }
 0x840   :  { %v6631_v6 = vpop.eup %6630  ;;  %v3520_v13 = vadd.f32 1.0, %v6629_v36 }
 0x841   :  { %v3526_v5 = vadd.f32 1.0, %v6631_v6  ;;  %v6633_v34 = vpop.eup %6632 }
 0x842   :  { %6636 = vrcp.f32 %v3520_v13  ;;  %v6635_v48 = vpop.eup %6634  ;;  %v3533_v10 = vadd.f32 1.0, %v6633_v34 }
 0x843   :  { %6638 = vrcp.f32 %v3526_v5 }
 0x844   :  { %6640 = vrcp.f32 %v3533_v10 }
 0x84c   :  { %v6637_v19 = vpop.eup %6636 }
 0x84d   :  { %v6639_v23 = vpop.eup %6638  ;;  %v3537_v14 = vmul.f32 %v6637_v19, %v6635_v48 }
 0x84e   :  { %v3536_v58 = vmul.f32 %v6639_v23, %v7937_v3  ;;  %v6641_v3 = vpop.eup %6640 }
 0x850   :  { %v8055_v4 = vadd.f32 %v3537_v14, %v3536_v58  ;;  %v3607_v42 = vpop.f32.mrb[12].mxu0  ;;  %v3678_v16 = vpop.f32.mrb[12].mxu1 }
 0x851   :  { %v6354_v36 = vadd.f32 %v3607_v42, %v8630_v27  ;;  %v3609_v55 = vpop.f32.mrb[13].mxu0  ;;  %v3680_v2 = vpop.f32.mrb[13].mxu1  ;;  %v6370_v23 = vadd.f32 %v3678_v16, %v7368_v49 }
 0x852   :  { %v6355_v6 = vadd.f32 %v3609_v55, %v8569_v45  ;;  %6642 = vtanh.f32 %v8055_v4  ;;  %v6371_v48 = vadd.f32 %v3680_v2, %v8570_v35 }
 0x853   :  { %v4653_v5 = vmul.f32 -1.442695, %v6354_v36 }
 0x854   :  { %v4654_v13 = vmul.f32 -1.442695, %v6355_v6  ;;  %v4655_v19 = vmul.f32 -1.442695, %v6371_v48 }
 0x855   :  { %6644 = vpow2.f32 %v4653_v5 }
 0x856   :  { %6646 = vpow2.f32 %v4654_v13 }
 0x857   :  { %6648 = vpow2.f32 %v4655_v19 }
 0x858   :  { %6650 = vtanh.f32 %v6370_v23  ;;  %v8869_v23 = vld [vmem:[#allocation23_spill] sm:$0xff] }
 0x85c   :  { %v6643_v34 = vpop.eup %6642 }
 0x85d   :  { %v3540_v14 = vmul.f32 %v6643_v34, %v6641_v3 }
 0x85f   :  { %v6645_v10 = vpop.eup %6644  ;;  %3776 = vmatmul.mubr.f32.vlgmr.msra.gmra.mrb[28].mxu0 %v3540_v14  ;;  %3847 = vmatmul.mubr.f32.vlgmr.msra.gmra.mrb[28].mxu1 %v3540_v14  ;;  %v8874_v14 = vld [vmem:[#allocation28_spill] sm:$0xff] }
 0x860   :  { %v6647_v58 = vpop.eup %6646  ;;  %v3690_v42 = vadd.f32 1.0, %v6645_v10  ;;  %6065 = vmatpush1.bf16.msra.mxu0 %v8571_v25  ;;  %6097 = vmatpush1.bf16.msra.mxu1 %v8572_v1  ;;  %v8875_v10 = vld [vmem:[#allocation29_spill] sm:$0xff] }
 0x861   :  { %v3696_v36 = vadd.f32 1.0, %v6647_v58  ;;  %6067 = vmatprep.subr.bf16.mxu0 %v8631_v33  ;;  %6099 = vmatprep.subr.bf16.mxu1 %v8632_v28  ;;  %v6649_v16 = vpop.eup %6648  ;;  %v8878_v58 = vld [vmem:[#allocation32_spill] sm:$0xff] }
 0x862   :  { %6652 = vrcp.f32 %v3690_v42  ;;  %3917 = vmatprep.mubr.f32.mxu0 %v8506_v8  ;;  %3988 = vmatprep.mubr.f32.mxu1 %v8506_v8  ;;  %v6651_v55 = vpop.eup %6650  ;;  %v3703_v13 = vadd.f32 1.0, %v6649_v16  ;;  %v8879_v42 = vld [vmem:[#allocation33_spill] sm:$0xff]  ;;  %v8881_v16 = vld [vmem:[#allocation35_spill] sm:$0xff] }
 0x863   :  { %6654 = vrcp.f32 %v3696_v36  ;;  %v8880_v36 = vld [vmem:[#allocation34_spill] sm:$0xff] }
 0x864   :  { %6069 = vmatpush1.bf16.msra.mxu0 %v8633_v12  ;;  %6101 = vmatpush1.bf16.msra.mxu1 %v8634_v22  ;;  %6656 = vrcp.f32 %v3703_v13  ;;  %v8886_v13 = vld [vmem:[#allocation40_spill] sm:$0xff] }
 0x865   :  { %6071 = vmatprep.subr.bf16.mxu0 %v8690_v9  ;;  %6103 = vmatprep.subr.bf16.mxu1 %v8691_v18 }
 0x868   :  { %6073 = vmatpush1.bf16.msra.mxu0 %v8692_v32  ;;  %6105 = vmatpush1.bf16.msra.mxu1 %v8693_v29 }
 0x869   :  { %6075 = vmatprep.subr.bf16.mxu0 %v8694_v26  ;;  %6107 = vmatprep.subr.bf16.mxu1 %v8695_v62 }
 0x86c   :  { %v6653_v2 = vpop.eup %6652  ;;  %6077 = vmatpush1.bf16.msra.mxu0 %v8696_v44  ;;  %6109 = vmatpush1.bf16.msra.mxu1 %v8584_v59 }
 0x86d   :  { %v6655_v6 = vpop.eup %6654  ;;  %v3707_v5 = vmul.f32 %v6653_v2, %v6651_v55  ;;  %6079 = vmatprep.subr.bf16.mxu0 %v8585_v61  ;;  %6111 = vmatprep.subr.bf16.mxu1 %v8586_v41  ;;  %v8882_v55 = vld [vmem:[#allocation36_spill] sm:$0xff]  ;;  %v8883_v2 = vld [vmem:[#allocation37_spill] sm:$0xff] }
 0x86e   :  { %v3706_v48 = vmul.f32 %v6655_v6, %v7963_v20  ;;  %v6657_v20 = vpop.eup %6656  ;;  %v8884_v6 = vld [vmem:[#allocation38_spill] sm:$0xff] }
 0x870   :  { %v8081_v3 = vadd.f32 %v3707_v5, %v3706_v48  ;;  %6081 = vmatpush1.bf16.msra.mxu0 %v8642_v46  ;;  %6113 = vmatpush1.bf16.msra.mxu1 %v8643_v52  ;;  %v8885_v5 = vld [vmem:[#allocation39_spill] sm:$0xff]  ;;  %v8887_v48 = vld [vmem:[#allocation41_spill] sm:$0xff] }
 0x871   :  { %6083 = vmatprep.subr.bf16.mxu0 %v8644_v43  ;;  %6115 = vmatprep.subr.bf16.mxu1 %v8645_v15 }
 0x872   :  { %6658 = vtanh.f32 %v8081_v3 }
 0x874   :  { %6085 = vmatpush1.bf16.msra.mxu0 %v8646_v30  ;;  %6117 = vmatpush1.bf16.msra.mxu1 %v8647_v57 }
 0x875   :  { %6087 = vmatprep.subr.bf16.mxu0 %v8648_v39  ;;  %6119 = vmatprep.subr.bf16.mxu1 %v8594_v0 }
 0x878   :  { %6089 = vmatpush1.bf16.msra.mxu0 %v8595_v37  ;;  %6121 = vmatpush1.bf16.msra.mxu1 %v8596_v24 }
 0x879   :  { %6091 = vmatprep.subr.bf16.mxu0 %v8597_v7  ;;  %6123 = vmatprep.subr.bf16.mxu1 %v8598_v31 }
 0x87c   :  { %v6659_v34 = vpop.eup %6658  ;;  %6093 = vmatpush1.bf16.msra.mxu0 %v8599_v51  ;;  %6125 = vmatpush1.bf16.msra.mxu1 %v8600_v38 }
 0x87d   :  { %6127 = vmatprep.subr.bf16.mxu0 %v8601_v11  ;;  %6159 = vmatprep.subr.bf16.mxu1 %v8602_v21  ;;  %v3710_v19 = vmul.f32 %v6659_v34, %v6657_v20  ;;  %v8867_v11 = vld [vmem:[#allocation21_spill] sm:$0xff]  ;;  %v8868_v21 = vld [vmem:[#allocation22_spill] sm:$0xff]  ;;  %v8889_v34 = vld [vmem:[#allocation43_spill] sm:$0xff] }
 0x87e   :  { %v8888_v20 = vld [vmem:[#allocation42_spill] sm:$0xff] }
 0x87f   :  { %3918 = vmatmul.mubr.f32.vlgmr.msra.gmra.mrb[28].mxu0 %v3710_v19  ;;  %3989 = vmatmul.mubr.f32.vlgmr.msra.gmra.mrb[28].mxu1 %v3710_v19 }
 0x880   :  { %6129 = vmatpush1.bf16.msra.mxu0 %v7032_v47  ;;  %6161 = vmatpush1.bf16.msra.mxu1 %v7035_v50  ;;  %v8870_v47 = vld [vmem:[#allocation24_spill] sm:$0xff]  ;;  %v8871_v50 = vld [vmem:[#allocation25_spill] sm:$0xff] }
 0x881   :  { %6131 = vmatprep.subr.bf16.mxu0 %v7038_v53  ;;  %6163 = vmatprep.subr.bf16.mxu1 %v7040_v56  ;;  %v8872_v53 = vld [vmem:[#allocation26_spill] sm:$0xff]  ;;  %v8873_v56 = vld [vmem:[#allocation27_spill] sm:$0xff] }
 0x882   :  { %4087 = vmatprep.mubr.f32.mxu0 %v8506_v8  ;;  %4158 = vmatprep.mubr.f32.mxu1 %v8506_v8 }
 0x884   :  { %6133 = vmatpush1.bf16.msra.mxu0 %v7043_v60  ;;  %6165 = vmatpush1.bf16.msra.mxu1 %v7047_v63  ;;  %v8876_v60 = vld [vmem:[#allocation30_spill] sm:$0xff]  ;;  %v8877_v63 = vld [vmem:[#allocation31_spill] sm:$0xff] }
 0x885   :  { %6135 = vmatprep.subr.bf16.mxu0 %v8867_v11  ;;  %6167 = vmatprep.subr.bf16.mxu1 %v8868_v21  ;;  %v8890_v11 = vld [vmem:[#allocation44_spill] sm:$0xff]  ;;  %v8891_v21 = vld [vmem:[#allocation45_spill] sm:$0xff] }
 0x888   :  { %6137 = vmatpush1.bf16.msra.mxu0 %v8869_v23  ;;  %6169 = vmatpush1.bf16.msra.mxu1 %v8870_v47  ;;  %v8892_v23 = vld [vmem:[#allocation46_spill] sm:$0xff]  ;;  %v8893_v47 = vld [vmem:[#allocation47_spill] sm:$0xff] }
 0x889   :  { %6139 = vmatprep.subr.bf16.mxu0 %v8871_v50  ;;  %6171 = vmatprep.subr.bf16.mxu1 %v8872_v53  ;;  %v8894_v50 = vld [vmem:[#allocation48_spill] sm:$0xff]  ;;  %v8895_v53 = vld [vmem:[#allocation49_spill] sm:$0xff] }
 0x88c   :  { %6141 = vmatpush1.bf16.msra.mxu0 %v8873_v56  ;;  %6173 = vmatpush1.bf16.msra.mxu1 %v8874_v14  ;;  %v8896_v56 = vld [vmem:[#allocation50_spill] sm:$0xff]  ;;  %v8897_v14 = vld [vmem:[#allocation51_spill] sm:$0xff] }
 0x88d   :  { %6143 = vmatprep.subr.bf16.mxu0 %v8875_v10  ;;  %6175 = vmatprep.subr.bf16.mxu1 %v8876_v60  ;;  %v8898_v10 = vld [vmem:[#allocation52_spill] sm:$0xff]  ;;  %v8899_v60 = vld [vmem:[#allocation53_spill] sm:$0xff] }
 0x890   :  { %6145 = vmatpush1.bf16.msra.mxu0 %v8877_v63  ;;  %6177 = vmatpush1.bf16.msra.mxu1 %v8878_v58  ;;  %v8900_v63 = vld [vmem:[#allocation54_spill] sm:$0xff]  ;;  %v8902_v58 = vld [vmem:[#allocation56_spill] sm:$0xff] }
 0x891   :  { %6147 = vmatprep.subr.bf16.mxu0 %v8879_v42  ;;  %6179 = vmatprep.subr.bf16.mxu1 %v8880_v36  ;;  %v8903_v42 = vld [vmem:[#allocation57_spill] sm:$0xff]  ;;  %v8904_v36 = vld [vmem:[#allocation58_spill] sm:$0xff] }
 0x894   :  { %6149 = vmatpush1.bf16.msra.mxu0 %v8881_v16  ;;  %6181 = vmatpush1.bf16.msra.mxu1 %v8882_v55  ;;  %v8905_v16 = vld [vmem:[#allocation59_spill] sm:$0xff]  ;;  %v8906_v55 = vld [vmem:[#allocation60_spill] sm:$0xff] }
 0x895   :  { %6151 = vmatprep.subr.bf16.mxu0 %v8883_v2  ;;  %6183 = vmatprep.subr.bf16.mxu1 %v8884_v6  ;;  %v8907_v2 = vld [vmem:[#allocation61_spill] sm:$0xff]  ;;  %v8908_v6 = vld [vmem:[#allocation62_spill] sm:$0xff] }
 0x898   :  { %6153 = vmatpush1.bf16.msra.mxu0 %v8885_v5  ;;  %6185 = vmatpush1.bf16.msra.mxu1 %v8886_v13  ;;  %v8909_v5 = vld [vmem:[#allocation63_spill] sm:$0xff]  ;;  %v8910_v13 = vld [vmem:[#allocation64_spill] sm:$0xff] }
 0x899   :  { %6155 = vmatprep.subr.bf16.mxu0 %v8887_v48  ;;  %6187 = vmatprep.subr.bf16.mxu1 %v8888_v20  ;;  %v8911_v48 = vld [vmem:[#allocation65_spill] sm:$0xff]  ;;  %v8912_v20 = vld [vmem:[#allocation66_spill] sm:$0xff] }
 0x89c   :  { %6157 = vmatpush1.bf16.msra.mxu0 %v8889_v34  ;;  %6189 = vmatpush1.bf16.msra.mxu1 %v8890_v11  ;;  %v8913_v34 = vld [vmem:[#allocation67_spill] sm:$0xff]  ;;  %v8914_v11 = vld [vmem:[#allocation68_spill] sm:$0xff] }
 0x89d   :  { %6191 = vmatprep.subr.bf16.mxu0 %v8891_v21  ;;  %6223 = vmatprep.subr.bf16.mxu1 %v8892_v23  ;;  %v8915_v21 = vld [vmem:[#allocation69_spill] sm:$0xff]  ;;  %v8916_v23 = vld [vmem:[#allocation70_spill] sm:$0xff] }
 0x89f   :  { %4088 = vmatmul.mubr.f32.vlgmr.msra.gmra.mrb[14].mxu0 %v3710_v19  ;;  %4159 = vmatmul.mubr.f32.vlgmr.msra.gmra.mrb[14].mxu1 %v3710_v19  ;;  %v8901_v19 = vld [vmem:[#allocation55_spill] sm:$0xff] }
 0x8a0   :  { %6193 = vmatpush1.bf16.msra.mxu0 %v8893_v47  ;;  %6225 = vmatpush1.bf16.msra.mxu1 %v8894_v50  ;;  %v8917_v47 = vld [vmem:[#allocation71_spill] sm:$0xff]  ;;  %v8918_v50 = vld [vmem:[#allocation72_spill] sm:$0xff] }
 0x8a1   :  { %6195 = vmatprep.subr.bf16.mxu0 %v8895_v53  ;;  %6227 = vmatprep.subr.bf16.mxu1 %v8896_v56  ;;  %v8919_v53 = vld [vmem:[#allocation73_spill] sm:$0xff]  ;;  %v8920_v56 = vld [vmem:[#allocation74_spill] sm:$0xff] }
 0x8a2   :  { %4257 = vmatprep.mubr.f32.mxu0 %v8506_v8  ;;  %4328 = vmatprep.mubr.f32.mxu1 %v8506_v8 }
 0x8a4   :  { %6197 = vmatpush1.bf16.msra.mxu0 %v8897_v14  ;;  %6229 = vmatpush1.bf16.msra.mxu1 %v8898_v10  ;;  %v8921_v14 = vld [vmem:[#allocation75_spill] sm:$0xff]  ;;  %v8922_v10 = vld [vmem:[#allocation76_spill] sm:$0xff] }
 0x8a5   :  { %6199 = vmatprep.subr.bf16.mxu0 %v8899_v60  ;;  %6231 = vmatprep.subr.bf16.mxu1 %v8900_v63  ;;  %v8923_v60 = vld [vmem:[#allocation77_spill] sm:$0xff]  ;;  %v8924_v63 = vld [vmem:[#allocation78_spill] sm:$0xff] }
 0x8a8   :  { %6201 = vmatpush1.bf16.msra.mxu0 %v8901_v19  ;;  %6233 = vmatpush1.bf16.msra.mxu1 %v8902_v58 }
 0x8a9   :  { %6203 = vmatprep.subr.bf16.mxu0 %v8903_v42  ;;  %6235 = vmatprep.subr.bf16.mxu1 %v8904_v36  ;;  %v8925_v42 = vld [vmem:[#allocation112_spill] sm:$0xff] }
 0x8ac   :  { %6205 = vmatpush1.bf16.msra.mxu0 %v8905_v16  ;;  %6237 = vmatpush1.bf16.msra.mxu1 %v8906_v55 }
 0x8ad   :  { %6207 = vmatprep.subr.bf16.mxu0 %v8907_v2  ;;  %6239 = vmatprep.subr.bf16.mxu1 %v8908_v6 }
 0x8b0   :  { %6209 = vmatpush1.bf16.msra.mxu0 %v8909_v5  ;;  %6241 = vmatpush1.bf16.msra.mxu1 %v8910_v13 }
 0x8b1   :  { %6211 = vmatprep.subr.bf16.mxu0 %v8911_v48  ;;  %6243 = vmatprep.subr.bf16.mxu1 %v8912_v20 }
 0x8b4   :  { %6213 = vmatpush1.bf16.msra.mxu0 %v8913_v34  ;;  %6245 = vmatpush1.bf16.msra.mxu1 %v8914_v11 }
 0x8b5   :  { %6215 = vmatprep.subr.bf16.mxu0 %v8915_v21  ;;  %6247 = vmatprep.subr.bf16.mxu1 %v8916_v23 }
 0x8b8   :  { %6217 = vmatpush1.bf16.msra.mxu0 %v8917_v47  ;;  %6249 = vmatpush1.bf16.msra.mxu1 %v8918_v50 }
 0x8b9   :  { %6219 = vmatprep.subr.bf16.mxu0 %v8919_v53  ;;  %6251 = vmatprep.subr.bf16.mxu1 %v8920_v56 }
 0x8bc   :  { %6221 = vmatpush1.bf16.msra.mxu0 %v8921_v14  ;;  %6253 = vmatpush1.bf16.msra.mxu1 %v8922_v10 }
 0x8bd   :  { %6255 = vmatprep.subr.bf16.mxu0 %v8923_v60  ;;  %6287 = vmatprep.subr.bf16.mxu1 %v8924_v63 }
 0x952   :  { %v3919_v19 = vpop.f32.mrb[28].mxu0  ;;  %v3990_v58 = vpop.f32.mrb[28].mxu1 }
 0x953   :  { %v3995_v36 = vadd.f32 %v3919_v19, %v8925_v42  ;;  %v3921_v16 = vpop.f32.mrb[29].mxu0  ;;  %v3992_v55 = vpop.f32.mrb[29].mxu1  ;;  %v3997_v20 = vadd.f32 %v3990_v58, %v8689_v54 }
 0x954   :  { %v3996_v2 = vadd.f32 %v3921_v16, %v8688_v40  ;;  %v3998_v13 = vadd.f32 %v3992_v55, %v8627_v17 }
 0x955   :  { %v4656_v6 = vmul.f32 -1.442695, %v3995_v36 }
 0x956   :  { %v4657_v5 = vmul.f32 -1.442695, %v3996_v2  ;;  %v4658_v48 = vmul.f32 -1.442695, %v3998_v13 }
 0x957   :  { %6660 = vpow2.f32 %v4656_v6 }
 0x958   :  { %6662 = vpow2.f32 %v4657_v5 }
 0x959   :  { %6664 = vpow2.f32 %v4658_v48 }
 0x95a   :  { %6666 = vtanh.f32 %v3997_v20 }
 0x961   :  { %v6661_v34 = vpop.eup %6660 }
 0x962   :  { %v6663_v11 = vpop.eup %6662  ;;  %v4002_v21 = vadd.f32 1.0, %v6661_v34 }
 0x963   :  { %v4008_v23 = vadd.f32 1.0, %v6663_v11  ;;  %v6665_v47 = vpop.eup %6664 }
 0x964   :  { %6668 = vrcp.f32 %v4002_v21  ;;  %v6667_v50 = vpop.eup %6666  ;;  %v4015_v10 = vadd.f32 1.0, %v6665_v47  ;;  %v4519_v47 = vld [vmem:[#allocation11 + $0x70] sm:$0xff] }
 0x965   :  { %6670 = vrcp.f32 %v4008_v23 }
 0x966   :  { %6672 = vrcp.f32 %v4015_v10 }
 0x96e   :  { %v6669_v53 = vpop.eup %6668 }
 0x96f   :  { %v6671_v56 = vpop.eup %6670  ;;  %v4019_v14 = vmul.f32 %v6669_v53, %v6667_v50  ;;  %v4520_v50 = vld [vmem:[#allocation11 + $0x78] sm:$0xff] }
 0x970   :  { %v4018_v60 = vmul.f32 %v6671_v56, %v8055_v4  ;;  %v6673_v4 = vpop.eup %6672  ;;  %v6340_v53 = vpack.c.bf16 %v4520_v50, %v4519_v47 }
 0x972   :  { %v8173_v63 = vadd.f32 %v4019_v14, %v4018_v60  ;;  %v4089_v19 = vpop.f32.mrb[14].mxu0  ;;  %v4160_v58 = vpop.f32.mrb[14].mxu1 }
 0x973   :  { %v6356_v36 = vadd.f32 %v4089_v19, %v8630_v27  ;;  %v4091_v16 = vpop.f32.mrb[15].mxu0  ;;  %v4162_v55 = vpop.f32.mrb[15].mxu1  ;;  %v6372_v34 = vadd.f32 %v4160_v58, %v7368_v49 }
 0x974   :  { %v6357_v2 = vadd.f32 %v4091_v16, %v8569_v45  ;;  %6674 = vtanh.f32 %v8173_v63  ;;  %v6373_v13 = vadd.f32 %v4162_v55, %v8570_v35 }
 0x975   :  { %v4659_v6 = vmul.f32 -1.442695, %v6356_v36 }
 0x976   :  { %v4660_v5 = vmul.f32 -1.442695, %v6357_v2  ;;  %v4661_v20 = vmul.f32 -1.442695, %v6373_v13 }
 0x977   :  { %6676 = vpow2.f32 %v4659_v6 }
 0x978   :  { %6678 = vpow2.f32 %v4660_v5 }
 0x979   :  { %6680 = vpow2.f32 %v4661_v20 }
 0x97a   :  { %6682 = vtanh.f32 %v6372_v34 }
 0x97e   :  { %v6675_v48 = vpop.eup %6674 }
 0x97f   :  { %v4022_v11 = vmul.f32 %v6675_v48, %v6673_v4 }
 0x981   :  { %v6677_v21 = vpop.eup %6676  ;;  %4258 = vmatmul.mubr.f32.vlgmr.msra.gmra.mrb[30].mxu0 %v4022_v11  ;;  %4329 = vmatmul.mubr.f32.vlgmr.msra.gmra.mrb[30].mxu1 %v4022_v11 }
 0x982   :  { %v6679_v27 = vpop.eup %6678  ;;  %v4172_v23 = vadd.f32 1.0, %v6677_v21  ;;  %6257 = vmatpush1.bf16.msra.mxu0 %v8571_v25  ;;  %6289 = vmatpush1.bf16.msra.mxu1 %v8572_v1 }
 0x983   :  { %v4178_v45 = vadd.f32 1.0, %v6679_v27  ;;  %6259 = vmatprep.subr.bf16.mxu0 %v8631_v33  ;;  %6291 = vmatprep.subr.bf16.mxu1 %v8632_v28  ;;  %v6681_v49 = vpop.eup %6680 }
 0x984   :  { %6684 = vrcp.f32 %v4172_v23  ;;  %4399 = vmatprep.mubr.f32.mxu0 %v8506_v8  ;;  %4470 = vmatprep.mubr.f32.mxu1 %v8506_v8  ;;  %v6683_v25 = vpop.eup %6682  ;;  %v4185_v28 = vadd.f32 1.0, %v6681_v49 }
 0x985   :  { %6686 = vrcp.f32 %v4178_v45  ;;  %v4665_v45 = vld [vmem:[%s8242_s8] ss:$0 sm:$0xff] }
 0x986   :  { %6261 = vmatpush1.bf16.msra.mxu0 %v8633_v12  ;;  %6293 = vmatpush1.bf16.msra.mxu1 %v8634_v22  ;;  %6688 = vrcp.f32 %v4185_v28 }
 0x987   :  { %6263 = vmatprep.subr.bf16.mxu0 %v8690_v9  ;;  %6295 = vmatprep.subr.bf16.mxu1 %v8691_v18  ;;  %v4514_v9 = vld [vmem:[#allocation11 + $0x48] sm:$0xff] }
 0x98a   :  { %6265 = vmatpush1.bf16.msra.mxu0 %v8692_v32  ;;  %6297 = vmatpush1.bf16.msra.mxu1 %v8693_v29  ;;  %v4515_v32 = vld [vmem:[#allocation11 + $0x50] sm:$0xff]  ;;  %v4516_v29 = vld [vmem:[#allocation11 + $0x58] sm:$0xff] }
 0x98b   :  { %6267 = vmatprep.subr.bf16.mxu0 %v8694_v26  ;;  %6299 = vmatprep.subr.bf16.mxu1 %v8695_v62  ;;  %v4517_v26 = vld [vmem:[#allocation11 + $0x60] sm:$0xff]  ;;  %v6334_v62 = vpack.c.bf16 %v4516_v29, %v4515_v32 }
 0x98e   :  { %v6685_v35 = vpop.eup %6684  ;;  %6269 = vmatpush1.bf16.msra.mxu0 %v8696_v44  ;;  %6301 = vmatpush1.bf16.msra.mxu1 %v8584_v59  ;;  %v4518_v44 = vld [vmem:[#allocation11 + $0x68] sm:$0xff] }
 0x98f   :  { %v6687_v1 = vpop.eup %6686  ;;  %v4189_v33 = vmul.f32 %v6685_v35, %v6683_v25  ;;  %6271 = vmatprep.subr.bf16.mxu0 %v8585_v61  ;;  %6303 = vmatprep.subr.bf16.mxu1 %v8586_v41 }
 0x990   :  { %v4188_v12 = vmul.f32 %v6687_v1, %v8081_v3  ;;  %v6689_v61 = vpop.eup %6688  ;;  %v6337_v3 = vpack.c.bf16 %v4518_v44, %v4517_v26 }
 0x992   :  { %v4190_v22 = vadd.f32 %v4189_v33, %v4188_v12  ;;  %6273 = vmatpush1.bf16.msra.mxu0 %v8642_v46  ;;  %6305 = vmatpush1.bf16.msra.mxu1 %v8643_v52  ;;  %v4506_v46 = vld [vmem:[#allocation11 + $0x8] sm:$0xff]  ;;  %v6883_v52 = vmov 0.0|0.0  }
 0x993   :  { %6275 = vmatprep.subr.bf16.mxu0 %v8644_v43  ;;  %6307 = vmatprep.subr.bf16.mxu1 %v8645_v15  ;;  %v4505_v43 = vld [vmem:[#allocation11] sm:$0xff]  ;;  %v4510_v15 = vld [vmem:[#allocation11 + $0x28] sm:$0xff] }
 0x994   :  { %6690 = vtanh.f32 %v4190_v22 }
 0x996   :  { %6277 = vmatpush1.bf16.msra.mxu0 %v8646_v30  ;;  %6309 = vmatpush1.bf16.msra.mxu1 %v8647_v57  ;;  %v4512_v30 = vld [vmem:[#allocation11 + $0x38] sm:$0xff] }
 0x997   :  { %6279 = vmatprep.subr.bf16.mxu0 %v8648_v39  ;;  %6311 = vmatprep.subr.bf16.mxu1 %v8594_v0  ;;  %v6319_v0 = vpack.c.bf16 %v4506_v46, %v4505_v43  ;;  %v4513_v39 = vld [vmem:[#allocation11 + $0x40] sm:$0xff] }
 0x998   :  { %v6331_v18 = vpack.c.bf16 %v4514_v9, %v4513_v39 }
 0x99a   :  { %6281 = vmatpush1.bf16.msra.mxu0 %v8595_v37  ;;  %6313 = vmatpush1.bf16.msra.mxu1 %v8596_v24  ;;  %v4507_v37 = vld [vmem:[#allocation11 + $0x10] sm:$0xff]  ;;  %v4508_v24 = vld [vmem:[#allocation11 + $0x18] sm:$0xff] }
 0x99b   :  { %6283 = vmatprep.subr.bf16.mxu0 %v8597_v7  ;;  %6315 = vmatprep.subr.bf16.mxu1 %v8598_v31  ;;  %v6322_v7 = vpack.c.bf16 %v4508_v24, %v4507_v37  ;;  %v4509_v31 = vld [vmem:[#allocation11 + $0x20] sm:$0xff] }
 0x99e   :  { %v6691_v41 = vpop.eup %6690  ;;  %6285 = vmatpush1.bf16.msra.mxu0 %v8599_v51  ;;  %6317 = vmatpush1.bf16.msra.mxu1 %v8600_v38  ;;  %v6325_v51 = vpack.c.bf16 %v4510_v15, %v4509_v31  ;;  %v4511_v38 = vld [vmem:[#allocation11 + $0x30] sm:$0xff] }
 0x99f   :  { %v4192_v59 = vmul.f32 %v6691_v41, %v6689_v61  ;;  %6318 = vmatprep.subr.bf16.mxu0 %v6883_v52  ;;  %v6328_v57 = vpack.c.bf16 %v4512_v30, %v4511_v38 }
 0x9a1   :  { %4400 = vmatmul.mubr.f32.vlgmr.msra.gmra.mrb[30].mxu0 %v4192_v59  ;;  %4471 = vmatmul.mubr.f32.vlgmr.msra.gmra.mrb[30].mxu1 %v4192_v59 }
 0x9a2   :  { %6320 = vmatpush3.bf16.msra.mxu0 %v6319_v0  ;;  %4715 = vmatprep.mubr.msk.f32.mxu0 %vm6884_vm0, %v8506_v8 }
 0x9a3   :  { %6321 = vmatprep.subr.bf16.mxu0 %v6883_v52 }
 0x9a6   :  { %6323 = vmatpush3.bf16.msra.mxu0 %v6322_v7 }
 0x9a7   :  { %6324 = vmatprep.subr.bf16.mxu0 %v6883_v52 }
 0x9aa   :  { %6326 = vmatpush3.bf16.msra.mxu0 %v6325_v51 }
 0x9ab   :  { %6327 = vmatprep.subr.bf16.mxu0 %v6883_v52 }
 0x9ae   :  { %6329 = vmatpush3.bf16.msra.mxu0 %v6328_v57 }
 0x9af   :  { %6330 = vmatprep.subr.bf16.mxu0 %v6883_v52 }
 0x9b2   :  { %6332 = vmatpush3.bf16.msra.mxu0 %v6331_v18 }
 0x9b3   :  { %6333 = vmatprep.subr.bf16.mxu0 %v6883_v52 }
 0x9b6   :  { %6335 = vmatpush3.bf16.msra.mxu0 %v6334_v62 }
 0x9b7   :  { %6336 = vmatprep.subr.bf16.mxu0 %v6883_v52 }
 0x9ba   :  { %6338 = vmatpush3.bf16.msra.mxu0 %v6337_v3 }
 0x9bb   :  { %6339 = vmatprep.subr.bf16.mxu0 %v6883_v52 }
 0x9be   :  { %6341 = vmatpush3.bf16.msra.mxu0 %v6340_v53 }
 0xa74   :  { %v4401_v56 = vpop.f32.mrb[30].mxu0  ;;  %v4472_v14 = vpop.f32.mrb[30].mxu1 }
 0xa75   :  { %v4477_v10 = vadd.f32 %v4401_v56, %v8925_v42  ;;  %v4403_v60 = vpop.f32.mrb[31].mxu0  ;;  %v4474_v19 = vpop.f32.mrb[31].mxu1  ;;  %v4479_v2 = vadd.f32 %v4472_v14, %v8689_v54 }
 0xa76   :  { %v4478_v58 = vadd.f32 %v4403_v60, %v8688_v40  ;;  %v4480_v8 = vadd.f32 %v4474_v19, %v8627_v17 }
 0xa77   :  { %v4662_v36 = vmul.f32 -1.442695, %v4477_v10 }
 0xa78   :  { %v4663_v16 = vmul.f32 -1.442695, %v4478_v58  ;;  %v4664_v55 = vmul.f32 -1.442695, %v4480_v8 }
 0xa79   :  { %6692 = vpow2.f32 %v4662_v36 }
 0xa7a   :  { %6694 = vpow2.f32 %v4663_v16 }
 0xa7b   :  { %6696 = vpow2.f32 %v4664_v55 }
 0xa7c   :  { %6698 = vtanh.f32 %v4479_v2 }
 0xa83   :  { %v6693_v6 = vpop.eup %6692 }
 0xa84   :  { %v6695_v5 = vpop.eup %6694  ;;  %v4484_v13 = vadd.f32 1.0, %v6693_v6 }
 0xa85   :  { %v4490_v4 = vadd.f32 1.0, %v6695_v5  ;;  %v6697_v42 = vpop.eup %6696 }
 0xa86   :  { %6700 = vrcp.f32 %v4484_v13  ;;  %v6699_v48 = vpop.eup %6698  ;;  %v4497_v11 = vadd.f32 1.0, %v6697_v42 }
 0xa87   :  { %6702 = vrcp.f32 %v4490_v4 }
 0xa88   :  { %6704 = vrcp.f32 %v4497_v11 }
 0xa90   :  { %v6701_v40 = vpop.eup %6700 }
 0xa91   :  { %v6703_v20 = vpop.eup %6702  ;;  %v4501_v34 = vmul.f32 %v6701_v40, %v6699_v48 }
 0xa92   :  { %v4500_v21 = vmul.f32 %v6703_v20, %v8173_v63  ;;  %v6705_v54 = vpop.eup %6704 }
 0xa94   :  { %v4502_v17 = vadd.f32 %v4501_v34, %v4500_v21 }
 0xa96   :  { %6706 = vtanh.f32 %v4502_v17 }
 0xaa0   :  { %v6707_v27 = vpop.eup %6706 }
 0xaa1   :  { %v4504_v23 = vmul.f32 %v6707_v27, %v6705_v54 }
 0xaa3   :  { %4716 = vmatmul.mubr.f32.vlgmr.msra.gmra.mrb[32].mxu0 %v4504_v23 }
 0xb76   :  { %v4594_v49 = vpop.f32.mrb[32].mxu0 }
 0xb77   :  { %v4595_v25 = vadd.f32 %v4665_v45, %v4594_v49  ;;  %v4717_v35 = vpop.f32.mrb[33].mxu0 }
 0xb79   :  { %4598 = vst [vmem:[#allocation13] sm:$0xff] %v4595_v25 }
 0xb7a   :  { %6851 = shalt.err (!%p6848_p10)
}
 0xb7b   :  { %s6852_s27 = scalar_lea.hbm %s8243_s9, 128 }
 0xb7c   :  { %p6853_p11 = scmp.ne.s32.totalorder %s8243_s9, %s6852_s27  ;;  %p6856_p12 = scmp.lt.u32.totalorder %s6852_s27, %s8243_s9 }
 0xb7e   :  { %p6858_p13 = pnand %p6856_p12, %p6853_p11 }
 0xb80   :  { %6861 = shalt.err (!%p6858_p13)
}
 0xb81   :  { %4608 = dma.vmem_to_hbm [thread:$0]  %s4606_s21, 128, %s8243_s9, [#allocation4]  }
 0xb82   :  { %6870 = dma.done.wait [#allocation4], 128  }
 0xb83   :  { %6871 = vsyncadd [#allocation4], 4294967168 }
 0xb84   :  { %4612 = vsyncpa [#allocation3], 1 }
 0xb85   :  { %4613 = vsyncpa [#allocation6], 1 }
 0xb86   :  { %4614 = vsyncpa [#allocation9], 1 }
 0xb87   :  { %4615 = vsyncpa [#allocation12], 1 }
 0xb88   :  { %4616 = vsyncpa [#allocation4], 1 }

</bundles_post_ra>
